<compile_context>
chip_gen: v5e
topology: v5e:2x2
jax: 0.10.0
libtpu: 0.0.40
codegen_flags: <defaults>
</compile_context>

<pallas_src>
import jax
import jax.numpy as jnp
from jax.experimental import pallas as pl
from jax.experimental.pallas import tpu as pltpu

# ----------------------------- hyper-parameters ------------------------------
BS = 2                  # batch size
N_FRAMES = 8            # sequence length == val_max_frames (classifier needs this)
W = H = D = 8           # per-frame 3-D volume
K = 3                   # conv kernel size (stride 1, pad 1)
K3 = K ** 3             # 27
K3_PAD = 32             # im2col feature dim padded 27 -> 32 lanes
WHD = W * H * D         # 512
D_CONV = 32             # backbone feature dim == LSTM input size
R_HIDDEN = 32           # LSTM hidden size (r_layers=1, r_bi=False -> r_out = r_hidden)
NUM_CLASSES = 8
CLS_IN = R_HIDDEN * N_FRAMES          # 256
CLS_HID = CLS_IN // 4                 # 64
BN = BS * N_FRAMES                    # 16
M_TOTAL = BN * WHD                    # 8192 im2col rows

# conv/GAP grid chunking: 2 chunks -> chunk i+1 DMA overlaps chunk i MXU work,
# and each chunk covers exactly 8 samples (sublane-aligned scratch store).
N_CHUNKS = 2
ROWS_PER_CHUNK = M_TOTAL // N_CHUNKS            # 4096
SAMPLES_PER_CHUNK = BN // N_CHUNKS              # 8

# packed-parameter row offsets
#   conv_pk (37, 32):  wc[0:32] | bc[32] | h0[33:35] | c0[35:37]
BC_ROW = D_CONV
H0_ROW = D_CONV + 1
C0_ROW = D_CONV + 1 + BS
#   lstm_pk (65, 128): wih[0:32] | whh[32:64] | b[64]
WHH_ROW = D_CONV
BL_ROW = D_CONV + R_HIDDEN
#   cls_pk (329, 64):  w1[0:256] | b1[256] | zero-pad[257:264] | w2[264:328] | b2[328]
B1_ROW = CLS_IN
W2_ROW = CLS_IN + 8
B2_ROW = W2_ROW + CLS_HID
CLS_PK_ROWS = B2_ROW + 1


# --------------------------------- fused kernel ------------------------------
def _fused_kernel(p_ref, conv_ref, lstm_ref, cls_ref, o_ref, emb_sc):
    step = pl.program_id(0)

    # --- conv chunk: bf16 MXU matmul (f32 accumulate) + bias + ReLU + partial GAP
    wc = conv_ref[0:D_CONV, :].astype(jnp.bfloat16)             # (32, 32) bf16
    bc = conv_ref[BC_ROW:BC_ROW + 1, :]                          # (1, 32) f32
    y = jnp.dot(p_ref[...], wc, preferred_element_type=jnp.float32) + bc
    y = jnp.maximum(y, 0.0)                                      # (4096, 32)
    emb_part = jnp.mean(y.reshape(SAMPLES_PER_CHUNK, WHD, D_CONV), axis=1)   # (8, 32)
    base = pl.multiple_of(step * SAMPLES_PER_CHUNK, SAMPLES_PER_CHUNK)
    emb_sc[pl.ds(base, SAMPLES_PER_CHUNK), :] = emb_part         # rows [8i, 8i+8)

    # --- last chunk: LSTM recurrence + 2-layer classifier (dropout = identity)
    @pl.when(step == pl.num_programs(0) - 1)
    def _():
        wih = lstm_ref[0:D_CONV, :]                              # (32, 128)
        whh = lstm_ref[WHH_ROW:WHH_ROW + R_HIDDEN, :]            # (32, 128)
        b_l = lstm_ref[BL_ROW:BL_ROW + 1, :]                     # (1, 128)
        h = conv_ref[H0_ROW:H0_ROW + BS, :]                      # (2, 32)
        c = conv_ref[C0_ROW:C0_ROW + BS, :]                      # (2, 32)

        # emb rows are time-major: s = t*BS + b
        emb = emb_sc[...]                                        # (16, 32)
        gates_x = jnp.dot(emb, wih,
                          preferred_element_type=jnp.float32) + b_l   # (16, 128)

        hs = []
        for t in range(N_FRAMES):                                # unrolled at trace time
            # contiguous 2-sublane slice per step (time-major slab)
            g = gates_x[BS * t:BS * (t + 1), :] + jnp.dot(
                h, whh, preferred_element_type=jnp.float32)      # (2, 128)
            i_g = jax.nn.sigmoid(g[:, 0 * R_HIDDEN:1 * R_HIDDEN])
            f_g = jax.nn.sigmoid(g[:, 1 * R_HIDDEN:2 * R_HIDDEN])
            g_g = jnp.tanh(g[:, 2 * R_HIDDEN:3 * R_HIDDEN])
            o_g = jax.nn.sigmoid(g[:, 3 * R_HIDDEN:4 * R_HIDDEN])
            c = f_g * c + i_g * g_g
            h = o_g * jnp.tanh(c)
            hs.append(h)
        flat = jnp.concatenate(hs, axis=-1)                      # (2, 256) in vregs

        w1 = cls_ref[0:CLS_IN, :]                                # (256, 64)
        b1 = cls_ref[B1_ROW:B1_ROW + 1, :]                       # (1, 64)
        w2 = cls_ref[W2_ROW:W2_ROW + CLS_HID, :]                 # (64, 64) zero-padded cols
        b2 = cls_ref[B2_ROW:B2_ROW + 1, :]                       # (1, 64) zero-padded cols
        hid = jnp.dot(flat, w1, preferred_element_type=jnp.float32) + b1
        out = jnp.dot(hid, w2, preferred_element_type=jnp.float32) + b2   # (2, 64)
        o_ref[...] = out[:, :NUM_CLASSES].astype(o_ref.dtype)


# --------------------------------- wrappers -----------------------------------
def fused_forward(patches, conv_pk, lstm_pk, cls_pk):
    return pl.pallas_call(
        _fused_kernel,
        out_shape=jax.ShapeDtypeStruct((BS, NUM_CLASSES), jnp.float32),
        grid=(N_CHUNKS,),
        in_specs=[
            pl.BlockSpec((ROWS_PER_CHUNK, K3_PAD), lambda i: (i, 0)),
            pl.BlockSpec(conv_pk.shape, lambda i: (0, 0)),
            pl.BlockSpec(lstm_pk.shape, lambda i: (0, 0)),
            pl.BlockSpec(cls_pk.shape, lambda i: (0, 0)),
        ],
        out_specs=pl.BlockSpec((BS, NUM_CLASSES), lambda i: (0, 0)),
        scratch_shapes=[pltpu.VMEM((BN, D_CONV), jnp.float32)],
        compiler_params=pltpu.CompilerParams(dimension_semantics=("arbitrary",)),
    )(patches, conv_pk, lstm_pk, cls_pk)


def _extract_patches_3d(x, k=K, pad_to=K3_PAD):
    """Plain-JAX glue: im2col for a 3x3x3 stencil, stride 1, pad 1.  x: (S, W, H, D)."""
    s, w, h, d = x.shape
    xp = jnp.pad(x, ((0, 0), (1, 1), (1, 1), (1, 1)))
    pats = []
    for dz in range(k):
        for dy in range(k):
            for dx in range(k):
                pats.append(xp[:, dz:dz + w, dy:dy + h, dx:dx + d])
    p = jnp.stack(pats, axis=-1).reshape(s, w * h * d, k ** 3)
    if pad_to > k ** 3:
        p = jnp.pad(p, ((0, 0), (0, 0), (0, pad_to - k ** 3)))      # 27 -> 32 lanes
    return p


def forward(x, packed):
    bs, n, w, h, d = x.shape
    # time-major sample ordering: sample s = t*bs + b
    xs = jnp.transpose(x, (1, 0, 2, 3, 4)).reshape(bs * n, w, h, d)
    patches = _extract_patches_3d(xs).reshape(bs * n * w * h * d, K3_PAD)
    patches = patches.astype(jnp.bfloat16)          # halves HBM traffic + MXU passes
    return fused_forward(patches, packed["conv_pk"], packed["lstm_pk"], packed["cls_pk"])


# ------------------------------- parameter init --------------------------------
def init_params(key):
    ks = jax.random.split(key, 12)

    def u(k, shape, fan_in):
        bound = 1.0 / (fan_in ** 0.5)
        return jax.random.uniform(k, shape, jnp.float32, -bound, bound)

    return dict(
        wc=u(ks[0], (K3, D_CONV), K3),                    # conv3d 1->D_CONV, k=3 (flat)
        bc=u(ks[1], (1, D_CONV), K3),
        wih=u(ks[2], (D_CONV, 4 * R_HIDDEN), R_HIDDEN),   # LSTM weight_ih^T
        whh=u(ks[3], (R_HIDDEN, 4 * R_HIDDEN), R_HIDDEN),  # LSTM weight_hh^T
        b_lstm=(u(ks[4], (1, 4 * R_HIDDEN), R_HIDDEN)      # b_ih + b_hh summed
                + u(ks[5], (1, 4 * R_HIDDEN), R_HIDDEN)),
        w1=u(ks[6], (CLS_IN, CLS_HID), CLS_IN),
        b1=u(ks[7], (1, CLS_HID), CLS_IN),
        w2=u(ks[8], (CLS_HID, NUM_CLASSES), CLS_HID),
        b2=u(ks[9], (1, NUM_CLASSES), CLS_HID),
        h0=jax.random.normal(ks[10], (BS, R_HIDDEN), jnp.float32),   # init_hidden (randn)
        c0=jax.random.normal(ks[11], (BS, R_HIDDEN), jnp.float32),
    )


def pack_params(p):
    """One-time packing (outside the jitted forward): 11 tensors -> 3 kernel inputs."""
    wc_pad = jnp.pad(p["wc"], ((0, K3_PAD - K3), (0, 0)))               # 27 -> 32 rows
    conv_pk = jnp.concatenate([wc_pad, p["bc"], p["h0"], p["c0"]], axis=0)   # (37, 32)
    lstm_pk = jnp.concatenate([p["wih"], p["whh"], p["b_lstm"]], axis=0)     # (65, 128)
    w2p = jnp.pad(p["w2"], ((0, 0), (0, CLS_HID - NUM_CLASSES)))
    b2p = jnp.pad(p["b2"], ((0, 0), (0, CLS_HID - NUM_CLASSES)))
    pad_rows = jnp.zeros((W2_ROW - (B1_ROW + 1), CLS_HID), jnp.float32)
    cls_pk = jnp.concatenate([p["w1"], p["b1"], pad_rows, w2p, b2p], axis=0)  # (329, 64)
    assert cls_pk.shape == (CLS_PK_ROWS, CLS_HID), cls_pk.shape
    return dict(conv_pk=conv_pk, lstm_pk=lstm_pk, cls_pk=cls_pk)


# -------------------- independent pure-JAX reference (conv3d) -------------------
def reference_forward(x, p, conv_dtype=jnp.float32):
    bs, n, w, h, d = x.shape
    xin = x.reshape(bs * n, 1, w, h, d).astype(conv_dtype)
    wc3d = p["wc"].reshape(K, K, K, 1, D_CONV).astype(conv_dtype)
    y = jax.lax.conv_general_dilated(
        xin, wc3d, window_strides=(1, 1, 1),
        padding=((1, 1), (1, 1), (1, 1)),
        dimension_numbers=("NCDHW", "DHWIO", "NCDHW"),
        preferred_element_type=jnp.float32)                      # (bn, 32, 8, 8, 8)
    y = jnp.maximum(y + p["bc"].reshape(1, D_CONV, 1, 1, 1), 0.0)
    emb = y.mean(axis=(2, 3, 4))                                  # (bn, 32), bn = b*n + t
    xseq = emb.reshape(bs, n, D_CONV)
    hh, cc = p["h0"], p["c0"]
    hs = []
    for t in range(n):
        g = xseq[:, t] @ p["wih"] + hh @ p["whh"] + p["b_lstm"]
        i = jax.nn.sigmoid(g[:, :R_HIDDEN])
        f = jax.nn.sigmoid(g[:, R_HIDDEN:2 * R_HIDDEN])
        gg = jnp.tanh(g[:, 2 * R_HIDDEN:3 * R_HIDDEN])
        o = jax.nn.sigmoid(g[:, 3 * R_HIDDEN:])
        cc = f * cc + i * gg
        hh = o * jnp.tanh(cc)
        hs.append(hh)
    flat = jnp.stack(hs, axis=1).reshape(bs, -1)
    return (flat @ p["w1"] + p["b1"]) @ p["w2"] + p["b2"]


# ------------------------------------ main --------------------------------------
if __name__ == "__main__":
    x = jax.random.normal(jax.random.PRNGKey(0), (BS, N_FRAMES, W, H, D), jnp.float32)
    params = init_params(jax.random.PRNGKey(42))
    packed = pack_params(params)

    out = jax.jit(forward)(x, packed)
    out = jax.block_until_ready(out)
    assert out.shape == (BS, NUM_CLASSES), out.shape

    # Independent reference via lax.conv_general_dilated (NOT the kernel's im2col).
    # bf16-matched conv inputs -> tight check that catches gate-order/layout/packing
    # bugs (those give errors >> 1e-1).
    ref_bf = jax.jit(lambda xx, pp: reference_forward(xx, pp, jnp.bfloat16))(x, params)
    err_bf = float(jnp.max(jnp.abs(out - ref_bf)))
    assert err_bf < 1e-2, f"mismatch vs bf16-conv reference: {err_bf}"

    # Full-f32 conv reference: loose sanity bound on the bf16 conv-input rounding.
    ref_f32 = jax.jit(lambda xx, pp: reference_forward(xx, pp, jnp.float32))(x, params)
    err_f32 = float(jnp.max(jnp.abs(out - ref_f32)))
    assert err_f32 < 5e-2, f"mismatch vs f32 reference: {err_f32}"

    print("KERNEL_OK")
</pallas_src>

<mosaic_0001>
module attributes {stable_mosaic.version = 11 : i64} {
  func.func @_fused_kernel(%arg0: i32, %arg1: memref<4096x32xbf16, #tpu.memory_space<vmem>>, %arg2: memref<37x32xf32, #tpu.memory_space<vmem>>, %arg3: memref<65x128xf32, #tpu.memory_space<vmem>>, %arg4: memref<329x64xf32, #tpu.memory_space<vmem>>, %arg5: memref<2x8xf32, #tpu.memory_space<vmem>>, %arg6: memref<16x32xf32, #tpu.memory_space<vmem>>) attributes {dimension_semantics = [#tpu.dimension_semantics<arbitrary>], iteration_bounds = array<i64: 2>, scalar_prefetch = 0 : i64, scratch_operands = 1 : i64, tpu.core_type = #tpu.core_type<tc>, window_params = [{transform_indices = @transform_0, window_bounds = array<i64: 4096, 32>}, {pipeline_mode = #tpu.pipeline_mode<synchronous>, transform_indices = @transform_1, window_bounds = array<i64: 37, 32>}, {pipeline_mode = #tpu.pipeline_mode<synchronous>, transform_indices = @transform_2, window_bounds = array<i64: 65, 128>}, {pipeline_mode = #tpu.pipeline_mode<synchronous>, transform_indices = @transform_3, window_bounds = array<i64: 329, 64>}, {pipeline_mode = #tpu.pipeline_mode<synchronous>, transform_indices = @transform_4, window_bounds = array<i64: 2, 8>}]} {
    %c0 = arith.constant 0 : index
    %c0_0 = arith.constant 0 : index
    %0 = vector.load %arg2[%c0, %c0_0] : memref<37x32xf32, #tpu.memory_space<vmem>>, vector<32x32xf32>
    %1 = arith.truncf %0 : vector<32x32xf32> to vector<32x32xbf16>
    %c32 = arith.constant 32 : index
    %c0_1 = arith.constant 0 : index
    %2 = vector.load %arg2[%c32, %c0_1] : memref<37x32xf32, #tpu.memory_space<vmem>>, vector<1x32xf32>
    %c0_2 = arith.constant 0 : index
    %c0_3 = arith.constant 0 : index
    %3 = vector.load %arg1[%c0_2, %c0_3] : memref<4096x32xbf16, #tpu.memory_space<vmem>>, vector<4096x32xbf16>
    %cst = arith.constant dense<0.000000e+00> : vector<4096x32xf32>
    %4 = tpu.matmul %3, %1, %cst {dimension_numbers = #tpu.dot_dimension_numbers<[1], [0], [0], [1], [0, 0, 1, 1], [], []>} : vector<4096x32xbf16>, vector<32x32xbf16>, vector<4096x32xf32> -> vector<4096x32xf32>
    %5 = vector.broadcast %2 : vector<1x32xf32> to vector<4096x32xf32>
    %6 = arith.addf %4, %5 : vector<4096x32xf32>
    %cst_4 = arith.constant 0.000000e+00 : f32
    %7 = vector.broadcast %cst_4 : f32 to vector<4096x32xf32>
    %8 = arith.maximumf %6, %7 : vector<4096x32xf32>
    %9 = vector.shape_cast %8 : vector<4096x32xf32> to vector<8x512x32xf32>
    %cst_5 = arith.constant dense<0.000000e+00> : vector<8x32xf32>
    %10 = vector.multi_reduction <add>, %9, %cst_5 [1] : vector<8x512x32xf32> to vector<8x32xf32>
    %cst_6 = arith.constant 5.120000e+02 : f32
    %11 = vector.broadcast %cst_6 : f32 to vector<8x32xf32>
    %12 = arith.divf %10, %11 : vector<8x32xf32>
    %c8_i32 = arith.constant 8 : i32
    %13 = arith.muli %arg0, %c8_i32 : i32
    %14 = tpu.assume_multiple %13, 8 : i32
    %15 = arith.index_cast %14 : i32 to index
    %c0_7 = arith.constant 0 : index
    %16 = vector.load %arg6[%15, %c0_7] : memref<16x32xf32, #tpu.memory_space<vmem>>, vector<8x32xf32>
    tpu.vector_store %arg6[%15, %c0_7], %12 {strides = array<i32>} : memref<16x32xf32, #tpu.memory_space<vmem>>, vector<8x32xf32>,
    %c1_i32 = arith.constant 1 : i32
    %17 = arith.cmpi eq, %arg0, %c1_i32 : i32
    %18 = arith.extui %17 : i1 to i32
    %c0_i32 = arith.constant 0 : i32
    %19 = arith.cmpi ne, %18, %c0_i32 : i32
    scf.if %19 {
      %c0_8 = arith.constant 0 : index
      %c0_9 = arith.constant 0 : index
      %20 = vector.load %arg3[%c0_8, %c0_9] : memref<65x128xf32, #tpu.memory_space<vmem>>, vector<32x128xf32>
      %c32_10 = arith.constant 32 : index
      %c0_11 = arith.constant 0 : index
      %21 = vector.load %arg3[%c32_10, %c0_11] : memref<65x128xf32, #tpu.memory_space<vmem>>, vector<32x128xf32>
      %c64 = arith.constant 64 : index
      %c0_12 = arith.constant 0 : index
      %22 = vector.load %arg3[%c64, %c0_12] : memref<65x128xf32, #tpu.memory_space<vmem>>, vector<1x128xf32>
      %c33 = arith.constant 33 : index
      %c0_13 = arith.constant 0 : index
      %23 = vector.load %arg2[%c33, %c0_13] : memref<37x32xf32, #tpu.memory_space<vmem>>, vector<2x32xf32>
      %c35 = arith.constant 35 : index
      %c0_14 = arith.constant 0 : index
      %24 = vector.load %arg2[%c35, %c0_14] : memref<37x32xf32, #tpu.memory_space<vmem>>, vector<2x32xf32>
      %c0_15 = arith.constant 0 : index
      %c0_16 = arith.constant 0 : index
      %25 = vector.load %arg6[%c0_15, %c0_16] : memref<16x32xf32, #tpu.memory_space<vmem>>, vector<16x32xf32>
      %cst_17 = arith.constant dense<0.000000e+00> : vector<16x128xf32>
      %26 = tpu.matmul %25, %20, %cst_17 {dimension_numbers = #tpu.dot_dimension_numbers<[1], [0], [0], [1], [0, 0, 1, 1], [], []>} : vector<16x32xf32>, vector<32x128xf32>, vector<16x128xf32> -> vector<16x128xf32>
      %27 = vector.broadcast %22 : vector<1x128xf32> to vector<16x128xf32>
      %28 = arith.addf %26, %27 : vector<16x128xf32>
      %29 = vector.extract_strided_slice %28 {offsets = [0, 0], sizes = [2, 128], strides = [1, 1]} : vector<16x128xf32> to vector<2x128xf32>
      %cst_18 = arith.constant dense<0.000000e+00> : vector<2x128xf32>
      %30 = tpu.matmul %23, %21, %cst_18 {dimension_numbers = #tpu.dot_dimension_numbers<[1], [0], [0], [1], [0, 0, 1, 1], [], []>} : vector<2x32xf32>, vector<32x128xf32>, vector<2x128xf32> -> vector<2x128xf32>
      %31 = arith.addf %29, %30 : vector<2x128xf32>
      %32 = vector.extract_strided_slice %31 {offsets = [0, 0], sizes = [2, 32], strides = [1, 1]} : vector<2x128xf32> to vector<2x32xf32>
      %33 = arith.negf %32 : vector<2x32xf32>
      %34 = math.exp %33 : vector<2x32xf32>
      %cst_19 = arith.constant 1.000000e+00 : f32
      %35 = vector.broadcast %cst_19 : f32 to vector<2x32xf32>
      %36 = arith.addf %35, %34 : vector<2x32xf32>
      %37 = arith.divf %35, %36 : vector<2x32xf32>
      %38 = vector.extract_strided_slice %31 {offsets = [0, 32], sizes = [2, 32], strides = [1, 1]} : vector<2x128xf32> to vector<2x32xf32>
      %39 = arith.negf %38 : vector<2x32xf32>
      %40 = math.exp %39 : vector<2x32xf32>
      %cst_20 = arith.constant 1.000000e+00 : f32
      %41 = vector.broadcast %cst_20 : f32 to vector<2x32xf32>
      %42 = arith.addf %41, %40 : vector<2x32xf32>
      %43 = arith.divf %41, %42 : vector<2x32xf32>
      %44 = vector.extract_strided_slice %31 {offsets = [0, 64], sizes = [2, 32], strides = [1, 1]} : vector<2x128xf32> to vector<2x32xf32>
      %45 = math.tanh %44 : vector<2x32xf32>
      %46 = vector.extract_strided_slice %31 {offsets = [0, 96], sizes = [2, 32], strides = [1, 1]} : vector<2x128xf32> to vector<2x32xf32>
      %47 = arith.negf %46 : vector<2x32xf32>
      %48 = math.exp %47 : vector<2x32xf32>
      %cst_21 = arith.constant 1.000000e+00 : f32
      %49 = vector.broadcast %cst_21 : f32 to vector<2x32xf32>
      %50 = arith.addf %49, %48 : vector<2x32xf32>
      %51 = arith.divf %49, %50 : vector<2x32xf32>
      %52 = arith.mulf %43, %24 : vector<2x32xf32>
      %53 = arith.mulf %37, %45 : vector<2x32xf32>
      %54 = arith.addf %52, %53 : vector<2x32xf32>
      %55 = math.tanh %54 : vector<2x32xf32>
      %56 = arith.mulf %51, %55 : vector<2x32xf32>
      %57 = vector.extract_strided_slice %28 {offsets = [2, 0], sizes = [2, 128], strides = [1, 1]} : vector<16x128xf32> to vector<2x128xf32>
      %cst_22 = arith.constant dense<0.000000e+00> : vector<2x128xf32>
      %58 = tpu.matmul %56, %21, %cst_22 {dimension_numbers = #tpu.dot_dimension_numbers<[1], [0], [0], [1], [0, 0, 1, 1], [], []>} : vector<2x32xf32>, vector<32x128xf32>, vector<2x128xf32> -> vector<2x128xf32>
      %59 = arith.addf %57, %58 : vector<2x128xf32>
      %60 = vector.extract_strided_slice %59 {offsets = [0, 0], sizes = [2, 32], strides = [1, 1]} : vector<2x128xf32> to vector<2x32xf32>
      %61 = arith.negf %60 : vector<2x32xf32>
      %62 = math.exp %61 : vector<2x32xf32>
      %cst_23 = arith.constant 1.000000e+00 : f32
      %63 = vector.broadcast %cst_23 : f32 to vector<2x32xf32>
      %64 = arith.addf %63, %62 : vector<2x32xf32>
      %65 = arith.divf %63, %64 : vector<2x32xf32>
      %66 = vector.extract_strided_slice %59 {offsets = [0, 32], sizes = [2, 32], strides = [1, 1]} : vector<2x128xf32> to vector<2x32xf32>
      %67 = arith.negf %66 : vector<2x32xf32>
      %68 = math.exp %67 : vector<2x32xf32>
      %cst_24 = arith.constant 1.000000e+00 : f32
      %69 = vector.broadcast %cst_24 : f32 to vector<2x32xf32>
      %70 = arith.addf %69, %68 : vector<2x32xf32>
      %71 = arith.divf %69, %70 : vector<2x32xf32>
      %72 = vector.extract_strided_slice %59 {offsets = [0, 64], sizes = [2, 32], strides = [1, 1]} : vector<2x128xf32> to vector<2x32xf32>
      %73 = math.tanh %72 : vector<2x32xf32>
      %74 = vector.extract_strided_slice %59 {offsets = [0, 96], sizes = [2, 32], strides = [1, 1]} : vector<2x128xf32> to vector<2x32xf32>
      %75 = arith.negf %74 : vector<2x32xf32>
      %76 = math.exp %75 : vector<2x32xf32>
      %cst_25 = arith.constant 1.000000e+00 : f32
      %77 = vector.broadcast %cst_25 : f32 to vector<2x32xf32>
      %78 = arith.addf %77, %76 : vector<2x32xf32>
      %79 = arith.divf %77, %78 : vector<2x32xf32>
      %80 = arith.mulf %71, %54 : vector<2x32xf32>
      %81 = arith.mulf %65, %73 : vector<2x32xf32>
      %82 = arith.addf %80, %81 : vector<2x32xf32>
      %83 = math.tanh %82 : vector<2x32xf32>
      %84 = arith.mulf %79, %83 : vector<2x32xf32>
      %85 = vector.extract_strided_slice %28 {offsets = [4, 0], sizes = [2, 128], strides = [1, 1]} : vector<16x128xf32> to vector<2x128xf32>
      %cst_26 = arith.constant dense<0.000000e+00> : vector<2x128xf32>
      %86 = tpu.matmul %84, %21, %cst_26 {dimension_numbers = #tpu.dot_dimension_numbers<[1], [0], [0], [1], [0, 0, 1, 1], [], []>} : vector<2x32xf32>, vector<32x128xf32>, vector<2x128xf32> -> vector<2x128xf32>
      %87 = arith.addf %85, %86 : vector<2x128xf32>
      %88 = vector.extract_strided_slice %87 {offsets = [0, 0], sizes = [2, 32], strides = [1, 1]} : vector<2x128xf32> to vector<2x32xf32>
      %89 = arith.negf %88 : vector<2x32xf32>
      %90 = math.exp %89 : vector<2x32xf32>
      %cst_27 = arith.constant 1.000000e+00 : f32
      %91 = vector.broadcast %cst_27 : f32 to vector<2x32xf32>
      %92 = arith.addf %91, %90 : vector<2x32xf32>
      %93 = arith.divf %91, %92 : vector<2x32xf32>
      %94 = vector.extract_strided_slice %87 {offsets = [0, 32], sizes = [2, 32], strides = [1, 1]} : vector<2x128xf32> to vector<2x32xf32>
      %95 = arith.negf %94 : vector<2x32xf32>
      %96 = math.exp %95 : vector<2x32xf32>
      %cst_28 = arith.constant 1.000000e+00 : f32
      %97 = vector.broadcast %cst_28 : f32 to vector<2x32xf32>
      %98 = arith.addf %97, %96 : vector<2x32xf32>
      %99 = arith.divf %97, %98 : vector<2x32xf32>
      %100 = vector.extract_strided_slice %87 {offsets = [0, 64], sizes = [2, 32], strides = [1, 1]} : vector<2x128xf32> to vector<2x32xf32>
      %101 = math.tanh %100 : vector<2x32xf32>
      %102 = vector.extract_strided_slice %87 {offsets = [0, 96], sizes = [2, 32], strides = [1, 1]} : vector<2x128xf32> to vector<2x32xf32>
      %103 = arith.negf %102 : vector<2x32xf32>
      %104 = math.exp %103 : vector<2x32xf32>
      %cst_29 = arith.constant 1.000000e+00 : f32
      %105 = vector.broadcast %cst_29 : f32 to vector<2x32xf32>
      %106 = arith.addf %105, %104 : vector<2x32xf32>
      %107 = arith.divf %105, %106 : vector<2x32xf32>
      %108 = arith.mulf %99, %82 : vector<2x32xf32>
      %109 = arith.mulf %93, %101 : vector<2x32xf32>
      %110 = arith.addf %108, %109 : vector<2x32xf32>
      %111 = math.tanh %110 : vector<2x32xf32>
      %112 = arith.mulf %107, %111 : vector<2x32xf32>
      %113 = vector.extract_strided_slice %28 {offsets = [6, 0], sizes = [2, 128], strides = [1, 1]} : vector<16x128xf32> to vector<2x128xf32>
      %cst_30 = arith.constant dense<0.000000e+00> : vector<2x128xf32>
      %114 = tpu.matmul %112, %21, %cst_30 {dimension_numbers = #tpu.dot_dimension_numbers<[1], [0], [0], [1], [0, 0, 1, 1], [], []>} : vector<2x32xf32>, vector<32x128xf32>, vector<2x128xf32> -> vector<2x128xf32>
      %115 = arith.addf %113, %114 : vector<2x128xf32>
      %116 = vector.extract_strided_slice %115 {offsets = [0, 0], sizes = [2, 32], strides = [1, 1]} : vector<2x128xf32> to vector<2x32xf32>
      %117 = arith.negf %116 : vector<2x32xf32>
      %118 = math.exp %117 : vector<2x32xf32>
      %cst_31 = arith.constant 1.000000e+00 : f32
      %119 = vector.broadcast %cst_31 : f32 to vector<2x32xf32>
      %120 = arith.addf %119, %118 : vector<2x32xf32>
      %121 = arith.divf %119, %120 : vector<2x32xf32>
      %122 = vector.extract_strided_slice %115 {offsets = [0, 32], sizes = [2, 32], strides = [1, 1]} : vector<2x128xf32> to vector<2x32xf32>
      %123 = arith.negf %122 : vector<2x32xf32>
      %124 = math.exp %123 : vector<2x32xf32>
      %cst_32 = arith.constant 1.000000e+00 : f32
      %125 = vector.broadcast %cst_32 : f32 to vector<2x32xf32>
      %126 = arith.addf %125, %124 : vector<2x32xf32>
      %127 = arith.divf %125, %126 : vector<2x32xf32>
      %128 = vector.extract_strided_slice %115 {offsets = [0, 64], sizes = [2, 32], strides = [1, 1]} : vector<2x128xf32> to vector<2x32xf32>
      %129 = math.tanh %128 : vector<2x32xf32>
      %130 = vector.extract_strided_slice %115 {offsets = [0, 96], sizes = [2, 32], strides = [1, 1]} : vector<2x128xf32> to vector<2x32xf32>
      %131 = arith.negf %130 : vector<2x32xf32>
      %132 = math.exp %131 : vector<2x32xf32>
      %cst_33 = arith.constant 1.000000e+00 : f32
      %133 = vector.broadcast %cst_33 : f32 to vector<2x32xf32>
      %134 = arith.addf %133, %132 : vector<2x32xf32>
      %135 = arith.divf %133, %134 : vector<2x32xf32>
      %136 = arith.mulf %127, %110 : vector<2x32xf32>
      %137 = arith.mulf %121, %129 : vector<2x32xf32>
      %138 = arith.addf %136, %137 : vector<2x32xf32>
      %139 = math.tanh %138 : vector<2x32xf32>
      %140 = arith.mulf %135, %139 : vector<2x32xf32>
      %141 = vector.extract_strided_slice %28 {offsets = [8, 0], sizes = [2, 128], strides = [1, 1]} : vector<16x128xf32> to vector<2x128xf32>
      %cst_34 = arith.constant dense<0.000000e+00> : vector<2x128xf32>
      %142 = tpu.matmul %140, %21, %cst_34 {dimension_numbers = #tpu.dot_dimension_numbers<[1], [0], [0], [1], [0, 0, 1, 1], [], []>} : vector<2x32xf32>, vector<32x128xf32>, vector<2x128xf32> -> vector<2x128xf32>
      %143 = arith.addf %141, %142 : vector<2x128xf32>
      %144 = vector.extract_strided_slice %143 {offsets = [0, 0], sizes = [2, 32], strides = [1, 1]} : vector<2x128xf32> to vector<2x32xf32>
      %145 = arith.negf %144 : vector<2x32xf32>
      %146 = math.exp %145 : vector<2x32xf32>
      %cst_35 = arith.constant 1.000000e+00 : f32
      %147 = vector.broadcast %cst_35 : f32 to vector<2x32xf32>
      %148 = arith.addf %147, %146 : vector<2x32xf32>
      %149 = arith.divf %147, %148 : vector<2x32xf32>
      %150 = vector.extract_strided_slice %143 {offsets = [0, 32], sizes = [2, 32], strides = [1, 1]} : vector<2x128xf32> to vector<2x32xf32>
      %151 = arith.negf %150 : vector<2x32xf32>
      %152 = math.exp %151 : vector<2x32xf32>
      %cst_36 = arith.constant 1.000000e+00 : f32
      %153 = vector.broadcast %cst_36 : f32 to vector<2x32xf32>
      %154 = arith.addf %153, %152 : vector<2x32xf32>
      %155 = arith.divf %153, %154 : vector<2x32xf32>
      %156 = vector.extract_strided_slice %143 {offsets = [0, 64], sizes = [2, 32], strides = [1, 1]} : vector<2x128xf32> to vector<2x32xf32>
      %157 = math.tanh %156 : vector<2x32xf32>
      %158 = vector.extract_strided_slice %143 {offsets = [0, 96], sizes = [2, 32], strides = [1, 1]} : vector<2x128xf32> to vector<2x32xf32>
      %159 = arith.negf %158 : vector<2x32xf32>
      %160 = math.exp %159 : vector<2x32xf32>
      %cst_37 = arith.constant 1.000000e+00 : f32
      %161 = vector.broadcast %cst_37 : f32 to vector<2x32xf32>
      %162 = arith.addf %161, %160 : vector<2x32xf32>
      %163 = arith.divf %161, %162 : vector<2x32xf32>
      %164 = arith.mulf %155, %138 : vector<2x32xf32>
      %165 = arith.mulf %149, %157 : vector<2x32xf32>
      %166 = arith.addf %164, %165 : vector<2x32xf32>
      %167 = math.tanh %166 : vector<2x32xf32>
      %168 = arith.mulf %163, %167 : vector<2x32xf32>
      %169 = vector.extract_strided_slice %28 {offsets = [10, 0], sizes = [2, 128], strides = [1, 1]} : vector<16x128xf32> to vector<2x128xf32>
      %cst_38 = arith.constant dense<0.000000e+00> : vector<2x128xf32>
      %170 = tpu.matmul %168, %21, %cst_38 {dimension_numbers = #tpu.dot_dimension_numbers<[1], [0], [0], [1], [0, 0, 1, 1], [], []>} : vector<2x32xf32>, vector<32x128xf32>, vector<2x128xf32> -> vector<2x128xf32>
      %171 = arith.addf %169, %170 : vector<2x128xf32>
      %172 = vector.extract_strided_slice %171 {offsets = [0, 0], sizes = [2, 32], strides = [1, 1]} : vector<2x128xf32> to vector<2x32xf32>
      %173 = arith.negf %172 : vector<2x32xf32>
      %174 = math.exp %173 : vector<2x32xf32>
      %cst_39 = arith.constant 1.000000e+00 : f32
      %175 = vector.broadcast %cst_39 : f32 to vector<2x32xf32>
      %176 = arith.addf %175, %174 : vector<2x32xf32>
      %177 = arith.divf %175, %176 : vector<2x32xf32>
      %178 = vector.extract_strided_slice %171 {offsets = [0, 32], sizes = [2, 32], strides = [1, 1]} : vector<2x128xf32> to vector<2x32xf32>
      %179 = arith.negf %178 : vector<2x32xf32>
      %180 = math.exp %179 : vector<2x32xf32>
      %cst_40 = arith.constant 1.000000e+00 : f32
      %181 = vector.broadcast %cst_40 : f32 to vector<2x32xf32>
      %182 = arith.addf %181, %180 : vector<2x32xf32>
      %183 = arith.divf %181, %182 : vector<2x32xf32>
      %184 = vector.extract_strided_slice %171 {offsets = [0, 64], sizes = [2, 32], strides = [1, 1]} : vector<2x128xf32> to vector<2x32xf32>
      %185 = math.tanh %184 : vector<2x32xf32>
      %186 = vector.extract_strided_slice %171 {offsets = [0, 96], sizes = [2, 32], strides = [1, 1]} : vector<2x128xf32> to vector<2x32xf32>
      %187 = arith.negf %186 : vector<2x32xf32>
      %188 = math.exp %187 : vector<2x32xf32>
      %cst_41 = arith.constant 1.000000e+00 : f32
      %189 = vector.broadcast %cst_41 : f32 to vector<2x32xf32>
      %190 = arith.addf %189, %188 : vector<2x32xf32>
      %191 = arith.divf %189, %190 : vector<2x32xf32>
      %192 = arith.mulf %183, %166 : vector<2x32xf32>
      %193 = arith.mulf %177, %185 : vector<2x32xf32>
      %194 = arith.addf %192, %193 : vector<2x32xf32>
      %195 = math.tanh %194 : vector<2x32xf32>
      %196 = arith.mulf %191, %195 : vector<2x32xf32>
      %197 = vector.extract_strided_slice %28 {offsets = [12, 0], sizes = [2, 128], strides = [1, 1]} : vector<16x128xf32> to vector<2x128xf32>
      %cst_42 = arith.constant dense<0.000000e+00> : vector<2x128xf32>
      %198 = tpu.matmul %196, %21, %cst_42 {dimension_numbers = #tpu.dot_dimension_numbers<[1], [0], [0], [1], [0, 0, 1, 1], [], []>} : vector<2x32xf32>, vector<32x128xf32>, vector<2x128xf32> -> vector<2x128xf32>
      %199 = arith.addf %197, %198 : vector<2x128xf32>
      %200 = vector.extract_strided_slice %199 {offsets = [0, 0], sizes = [2, 32], strides = [1, 1]} : vector<2x128xf32> to vector<2x32xf32>
      %201 = arith.negf %200 : vector<2x32xf32>
      %202 = math.exp %201 : vector<2x32xf32>
      %cst_43 = arith.constant 1.000000e+00 : f32
      %203 = vector.broadcast %cst_43 : f32 to vector<2x32xf32>
      %204 = arith.addf %203, %202 : vector<2x32xf32>
      %205 = arith.divf %203, %204 : vector<2x32xf32>
      %206 = vector.extract_strided_slice %199 {offsets = [0, 32], sizes = [2, 32], strides = [1, 1]} : vector<2x128xf32> to vector<2x32xf32>
      %207 = arith.negf %206 : vector<2x32xf32>
      %208 = math.exp %207 : vector<2x32xf32>
      %cst_44 = arith.constant 1.000000e+00 : f32
      %209 = vector.broadcast %cst_44 : f32 to vector<2x32xf32>
      %210 = arith.addf %209, %208 : vector<2x32xf32>
      %211 = arith.divf %209, %210 : vector<2x32xf32>
      %212 = vector.extract_strided_slice %199 {offsets = [0, 64], sizes = [2, 32], strides = [1, 1]} : vector<2x128xf32> to vector<2x32xf32>
      %213 = math.tanh %212 : vector<2x32xf32>
      %214 = vector.extract_strided_slice %199 {offsets = [0, 96], sizes = [2, 32], strides = [1, 1]} : vector<2x128xf32> to vector<2x32xf32>
      %215 = arith.negf %214 : vector<2x32xf32>
      %216 = math.exp %215 : vector<2x32xf32>
      %cst_45 = arith.constant 1.000000e+00 : f32
      %217 = vector.broadcast %cst_45 : f32 to vector<2x32xf32>
      %218 = arith.addf %217, %216 : vector<2x32xf32>
      %219 = arith.divf %217, %218 : vector<2x32xf32>
      %220 = arith.mulf %211, %194 : vector<2x32xf32>
      %221 = arith.mulf %205, %213 : vector<2x32xf32>
      %222 = arith.addf %220, %221 : vector<2x32xf32>
      %223 = math.tanh %222 : vector<2x32xf32>
      %224 = arith.mulf %219, %223 : vector<2x32xf32>
      %225 = vector.extract_strided_slice %28 {offsets = [14, 0], sizes = [2, 128], strides = [1, 1]} : vector<16x128xf32> to vector<2x128xf32>
      %cst_46 = arith.constant dense<0.000000e+00> : vector<2x128xf32>
      %226 = tpu.matmul %224, %21, %cst_46 {dimension_numbers = #tpu.dot_dimension_numbers<[1], [0], [0], [1], [0, 0, 1, 1], [], []>} : vector<2x32xf32>, vector<32x128xf32>, vector<2x128xf32> -> vector<2x128xf32>
      %227 = arith.addf %225, %226 : vector<2x128xf32>
      %228 = vector.extract_strided_slice %227 {offsets = [0, 0], sizes = [2, 32], strides = [1, 1]} : vector<2x128xf32> to vector<2x32xf32>
      %229 = arith.negf %228 : vector<2x32xf32>
      %230 = math.exp %229 : vector<2x32xf32>
      %cst_47 = arith.constant 1.000000e+00 : f32
      %231 = vector.broadcast %cst_47 : f32 to vector<2x32xf32>
      %232 = arith.addf %231, %230 : vector<2x32xf32>
      %233 = arith.divf %231, %232 : vector<2x32xf32>
      %234 = vector.extract_strided_slice %227 {offsets = [0, 32], sizes = [2, 32], strides = [1, 1]} : vector<2x128xf32> to vector<2x32xf32>
      %235 = arith.negf %234 : vector<2x32xf32>
      %236 = math.exp %235 : vector<2x32xf32>
      %cst_48 = arith.constant 1.000000e+00 : f32
      %237 = vector.broadcast %cst_48 : f32 to vector<2x32xf32>
      %238 = arith.addf %237, %236 : vector<2x32xf32>
      %239 = arith.divf %237, %238 : vector<2x32xf32>
      %240 = vector.extract_strided_slice %227 {offsets = [0, 64], sizes = [2, 32], strides = [1, 1]} : vector<2x128xf32> to vector<2x32xf32>
      %241 = math.tanh %240 : vector<2x32xf32>
      %242 = vector.extract_strided_slice %227 {offsets = [0, 96], sizes = [2, 32], strides = [1, 1]} : vector<2x128xf32> to vector<2x32xf32>
      %243 = arith.negf %242 : vector<2x32xf32>
      %244 = math.exp %243 : vector<2x32xf32>
      %cst_49 = arith.constant 1.000000e+00 : f32
      %245 = vector.broadcast %cst_49 : f32 to vector<2x32xf32>
      %246 = arith.addf %245, %244 : vector<2x32xf32>
      %247 = arith.divf %245, %246 : vector<2x32xf32>
      %248 = arith.mulf %239, %222 : vector<2x32xf32>
      %249 = arith.mulf %233, %241 : vector<2x32xf32>
      %250 = arith.addf %248, %249 : vector<2x32xf32>
      %251 = math.tanh %250 : vector<2x32xf32>
      %252 = arith.mulf %247, %251 : vector<2x32xf32>
      %253 = tpu.concatenate %56, %84, %112, %140, %168, %196, %224, %252 in 1 : vector<2x32xf32>, vector<2x32xf32>, vector<2x32xf32>, vector<2x32xf32>, vector<2x32xf32>, vector<2x32xf32>, vector<2x32xf32>, vector<2x32xf32> -> vector<2x256xf32>
      %c0_50 = arith.constant 0 : index
      %c0_51 = arith.constant 0 : index
      %254 = vector.load %arg4[%c0_50, %c0_51] : memref<329x64xf32, #tpu.memory_space<vmem>>, vector<256x64xf32>
      %c256 = arith.constant 256 : index
      %c0_52 = arith.constant 0 : index
      %255 = vector.load %arg4[%c256, %c0_52] : memref<329x64xf32, #tpu.memory_space<vmem>>, vector<1x64xf32>
      %c264 = arith.constant 264 : index
      %c0_53 = arith.constant 0 : index
      %256 = vector.load %arg4[%c264, %c0_53] : memref<329x64xf32, #tpu.memory_space<vmem>>, vector<64x64xf32>
      %c328 = arith.constant 328 : index
      %c0_54 = arith.constant 0 : index
      %257 = vector.load %arg4[%c328, %c0_54] : memref<329x64xf32, #tpu.memory_space<vmem>>, vector<1x64xf32>
      %cst_55 = arith.constant dense<0.000000e+00> : vector<2x64xf32>
      %258 = tpu.matmul %253, %254, %cst_55 {dimension_numbers = #tpu.dot_dimension_numbers<[1], [0], [0], [1], [0, 0, 1, 1], [], []>} : vector<2x256xf32>, vector<256x64xf32>, vector<2x64xf32> -> vector<2x64xf32>
      %259 = vector.broadcast %255 : vector<1x64xf32> to vector<2x64xf32>
      %260 = arith.addf %258, %259 : vector<2x64xf32>
      %cst_56 = arith.constant dense<0.000000e+00> : vector<2x64xf32>
      %261 = tpu.matmul %260, %256, %cst_56 {dimension_numbers = #tpu.dot_dimension_numbers<[1], [0], [0], [1], [0, 0, 1, 1], [], []>} : vector<2x64xf32>, vector<64x64xf32>, vector<2x64xf32> -> vector<2x64xf32>
      %262 = vector.broadcast %257 : vector<1x64xf32> to vector<2x64xf32>
      %263 = arith.addf %261, %262 : vector<2x64xf32>
      %264 = vector.extract_strided_slice %263 {offsets = [0, 0], sizes = [2, 8], strides = [1, 1]} : vector<2x64xf32> to vector<2x8xf32>
      %c0_57 = arith.constant 0 : index
      %c0_58 = arith.constant 0 : index
      %265 = vector.load %arg5[%c0_57, %c0_58] : memref<2x8xf32, #tpu.memory_space<vmem>>, vector<2x8xf32>
      tpu.vector_store %arg5[%c0_57, %c0_58], %264 {strides = array<i32>} : memref<2x8xf32, #tpu.memory_space<vmem>>, vector<2x8xf32>,
    } else {
    }
    return
  }
  func.func @transform_0(%arg0: i32) -> (i32, i32) {
    %c0_i32 = arith.constant 0 : i32
    %c0_i32_0 = arith.constant 0 : i32
    return %arg0, %c0_i32 : i32, i32
  }
  func.func @transform_1(%arg0: i32) -> (i32, i32) {
    %c0_i32 = arith.constant 0 : i32
    %c0_i32_0 = arith.constant 0 : i32
    %c0_i32_1 = arith.constant 0 : i32
    return %c0_i32, %c0_i32_0 : i32, i32
  }
  func.func @transform_2(%arg0: i32) -> (i32, i32) {
    %c0_i32 = arith.constant 0 : i32
    %c0_i32_0 = arith.constant 0 : i32
    %c0_i32_1 = arith.constant 0 : i32
    return %c0_i32, %c0_i32_0 : i32, i32
  }
  func.func @transform_3(%arg0: i32) -> (i32, i32) {
    %c0_i32 = arith.constant 0 : i32
    %c0_i32_0 = arith.constant 0 : i32
    %c0_i32_1 = arith.constant 0 : i32
    return %c0_i32, %c0_i32_0 : i32, i32
  }
  func.func @transform_4(%arg0: i32) -> (i32, i32) {
    %c0_i32 = arith.constant 0 : i32
    %c0_i32_0 = arith.constant 0 : i32
    %c0_i32_1 = arith.constant 0 : i32
    return %c0_i32, %c0_i32_0 : i32, i32
  }
}

</mosaic_0001>

<bundles_post_ra>
// kernel: forward.1
= control target key start
LH: loop header
LB: loop body
LE: loop exit
PB: predicated region body
PF: predicated region fallthrough
CT: control target
= control target key end

     0   :  { %9 = vsyncpa [#allocation4], 0  ;;  %s8191_s15 = smov 0   ;;  %s10198_s0 = inlined_call_operand.vmem [shape: bf16[8192,32], index: 0, kind: input, shape index: {}]   ;;  %s10199_s1 = inlined_call_operand.vmem [shape: f32[37,32], index: 1, kind: input, shape index: {}]   ;;  %s10200_s2 = inlined_call_operand.vmem [shape: f32[65,128], index: 2, kind: input, shape index: {}]   ;;  %s10201_s3 = inlined_call_operand.vmem [shape: f32[329,64], index: 3, kind: input, shape index: {}]   ;;  %s10202_s4 = inlined_call_operand.hbm [shape: f32[2,8], index: 4, kind: output, shape index: {}]  }
   0x1 LB: > { %s8197_s16 = sadd.s32 4294967295, %s8159_s15   ;;  %p6447_p0 = scmp.ge.s32.totalorder %s8159_s15, 1  ;;  %s8159_s15 = sphi %s8191_s15, %s15_s15  }
   0x2   : > { %p159_p1 = scmp.lt.s32.totalorder %s8159_s15, 3 }
   0x4   : > { %p160_p2 = pnand %p6447_p0, %p159_p1 }
   0x5   : > { %s6448_s23 = sshll.u32 (!%p160_p2), %s8197_s16, 9  ;;  %s7730_s18 = sshll.u32 (!%p160_p2), %s8197_s16, 3 }
   0x6   : > { %163 = sbr.rel (%p160_p2) target bundleno = 6019 (0x1783), region = 36  ;;  %p181_p3 = scmp.lt.s32.totalorder (!%p160_p2), %s6448_s23, 1023 }
   0x7   : > { %s5660_s19 = scalar_lea.vmem (!%p160_p2), [#allocation2], %s7730_s18  ;;  %p7731_p4 = scmp.ne.s32.totalorder (!%p160_p2), %s8197_s16, 1 }
   0xb   : > { %v189_v0 = vld [vmem:[%s10199_s1 + $0x10] sm:$0xff]  ;;  %v190_v1 = vld [vmem:[%s10199_s1 + $0x18] sm:$0xff]  ;;  %v187_v2 = vld [vmem:[%s10199_s1] sm:$0xff]  ;;  %s10204_s23 = smov (!%p181_p3, %s6448_s23), 1023  ;;  %vm1987_vm0 = vcmask 261120   ;;  %vm5645_vm2 = vcmask 1041409  }
   0xc   : > { %v192_v3 = vpack.c.bf16 %v190_v1, %v189_v0  ;;  %v188_v4 = vld [vmem:[%s10199_s1 + $0x8] sm:$0xff]  ;;  %s6449_s26 = sshll.u32 %s10204_s23, 2  ;;  %v8290_v44 = vld [vmem:[%s10199_s1 + $0x20] ss:$0 sm:$0xff]  ;;  %vm5647_vm3 = vcmask 1042434   ;;  %vm5649_vm4 = vcmask 1043459  }
   0xd   : > { %v191_v5 = vpack.c.bf16 %v188_v4, %v187_v2  ;;  %s8217_s29 = scalar_lea.vmem %s10198_s0, %s6449_s26  ;;  %vm5651_vm5 = vcmask 1044484   ;;  %vm5653_vm6 = vcmask 1045509   ;;  %vm5655_vm7 = vcmask 1046534   ;;  %s8162_s14 = smov (!%p7731_p4), 64  }
   0xe   : > { %2762 = vmatpush.bf16.msra.mxu0 %v192_v3  ;;  %8011 = vmatpush.bf16.msra.mxu1 %v192_v3  ;;  %v7755_v6 = vld [vmem:[%s8217_s29] sm:$0xff]  ;;  %v7756_v10 = vld [vmem:[%s8217_s29 + $0x8] sm:$0xff]  ;;  %v7757_v14 = vld [vmem:[%s8217_s29 + $0x10] sm:$0xff]  ;;  %vm5657_vm8 = vcmask 1047559   ;;  %s8164_s17 = smov (!%p7731_p4), 96  }
   0xf   : > { %8012 = vmatpush.bf16.msra.mxu2 %v192_v3  ;;  %8013 = vmatpush.bf16.msra.mxu3 %v192_v3  ;;  %v7819_v7 = vld [vmem:[%s8217_s29 + $0x200] sm:$0xff]  ;;  %v7820_v11 = vld [vmem:[%s8217_s29 + $0x208] sm:$0xff]  ;;  %v7821_v15 = vld [vmem:[%s8217_s29 + $0x210] sm:$0xff] }
  0x10   : > { %v7883_v8 = vld [vmem:[%s8217_s29 + $0x400] sm:$0xff]  ;;  %v7884_v12 = vld [vmem:[%s8217_s29 + $0x408] sm:$0xff]  ;;  %v7885_v16 = vld [vmem:[%s8217_s29 + $0x410] sm:$0xff] }
  0x11   : > { %v7947_v9 = vld [vmem:[%s8217_s29 + $0x600] sm:$0xff]  ;;  %v7948_v13 = vld [vmem:[%s8217_s29 + $0x608] sm:$0xff]  ;;  %v7949_v17 = vld [vmem:[%s8217_s29 + $0x610] sm:$0xff] }
  0x12   : > { %2763 = vmatpush.bf16.msra.mxu0 %v191_v5  ;;  %8014 = vmatpush.bf16.msra.mxu1 %v191_v5  ;;  %v7758_v18 = vld [vmem:[%s8217_s29 + $0x18] sm:$0xff]  ;;  %v7759_v22 = vld [vmem:[%s8217_s29 + $0x20] sm:$0xff]  ;;  %v7760_v26 = vld [vmem:[%s8217_s29 + $0x28] sm:$0xff] }
  0x13   : > { %8015 = vmatpush.bf16.msra.mxu2 %v191_v5  ;;  %8016 = vmatpush.bf16.msra.mxu3 %v191_v5  ;;  %v7822_v19 = vld [vmem:[%s8217_s29 + $0x218] sm:$0xff]  ;;  %v7823_v23 = vld [vmem:[%s8217_s29 + $0x220] sm:$0xff]  ;;  %v7824_v27 = vld [vmem:[%s8217_s29 + $0x228] sm:$0xff] }
  0x14   : > { %v7886_v20 = vld [vmem:[%s8217_s29 + $0x418] sm:$0xff]  ;;  %v7887_v24 = vld [vmem:[%s8217_s29 + $0x420] sm:$0xff]  ;;  %v7888_v28 = vld [vmem:[%s8217_s29 + $0x428] sm:$0xff] }
  0x15   : > { %7474 = vmatmul.msk.bf16.vlgmr.msra.gmra.mxu0 %vm1987_vm0, %v7755_v6  ;;  %7538 = vmatmul.msk.bf16.vlgmr.msra.gmra.mxu1 %vm1987_vm0, %v7819_v7  ;;  %v7950_v21 = vld [vmem:[%s8217_s29 + $0x618] sm:$0xff]  ;;  %v7951_v25 = vld [vmem:[%s8217_s29 + $0x620] sm:$0xff]  ;;  %v7952_v29 = vld [vmem:[%s8217_s29 + $0x628] sm:$0xff] }
  0x16   : > { %7602 = vmatmul.msk.bf16.vlgmr.msra.gmra.mxu2 %vm1987_vm0, %v7883_v8  ;;  %7666 = vmatmul.msk.bf16.vlgmr.msra.gmra.mxu3 %vm1987_vm0, %v7947_v9  ;;  %v7761_v30 = vld [vmem:[%s8217_s29 + $0x30] sm:$0xff]  ;;  %v7762_v34 = vld [vmem:[%s8217_s29 + $0x38] sm:$0xff]  ;;  %v7763_v38 = vld [vmem:[%s8217_s29 + $0x40] sm:$0xff] }
  0x17   : > { %v7825_v31 = vld [vmem:[%s8217_s29 + $0x230] sm:$0xff]  ;;  %v7826_v35 = vld [vmem:[%s8217_s29 + $0x238] sm:$0xff]  ;;  %v7827_v39 = vld [vmem:[%s8217_s29 + $0x240] sm:$0xff] }
  0x18   : > { %v7889_v32 = vld [vmem:[%s8217_s29 + $0x430] sm:$0xff]  ;;  %v7890_v36 = vld [vmem:[%s8217_s29 + $0x438] sm:$0xff]  ;;  %v7891_v42 = vld [vmem:[%s8217_s29 + $0x440] sm:$0xff] }
  0x19   : > { %v7953_v33 = vld [vmem:[%s8217_s29 + $0x630] sm:$0xff]  ;;  %v7954_v37 = vld [vmem:[%s8217_s29 + $0x638] sm:$0xff]  ;;  %v7955_v43 = vld [vmem:[%s8217_s29 + $0x640] sm:$0xff] }
  0x1a   : > { %v7764_v3 = vld [vmem:[%s8217_s29 + $0x48] sm:$0xff] }
  0x1b   : > { %v7828_v4 = vld [vmem:[%s8217_s29 + $0x248] sm:$0xff] }
  0x25   : > { %7475 = vmatmul.msk.bf16.gmra.mxu0 %vm1987_vm0, %v7756_v10  ;;  %7539 = vmatmul.msk.bf16.gmra.mxu1 %vm1987_vm0, %v7820_v11  ;;  %v7892_v11 = vld [vmem:[%s8217_s29 + $0x448] sm:$0xff] }
  0x26   : > { %7603 = vmatmul.msk.bf16.gmra.mxu2 %vm1987_vm0, %v7884_v12  ;;  %7667 = vmatmul.msk.bf16.gmra.mxu3 %vm1987_vm0, %v7948_v13  ;;  %v7956_v12 = vld [vmem:[%s8217_s29 + $0x648] sm:$0xff] }
  0x35   : > { %7476 = vmatmul.msk.bf16.gmra.mxu0 %vm1987_vm0, %v7757_v14  ;;  %7540 = vmatmul.msk.bf16.gmra.mxu1 %vm1987_vm0, %v7821_v15 }
  0x36   : > { %7604 = vmatmul.msk.bf16.gmra.mxu2 %vm1987_vm0, %v7885_v16  ;;  %7668 = vmatmul.msk.bf16.gmra.mxu3 %vm1987_vm0, %v7949_v17 }
  0x45   : > { %7477 = vmatmul.msk.bf16.gmra.mxu0 %vm1987_vm0, %v7758_v18  ;;  %7541 = vmatmul.msk.bf16.gmra.mxu1 %vm1987_vm0, %v7822_v19 }
  0x46   : > { %7605 = vmatmul.msk.bf16.gmra.mxu2 %vm1987_vm0, %v7886_v20  ;;  %7669 = vmatmul.msk.bf16.gmra.mxu3 %vm1987_vm0, %v7950_v21 }
  0x55   : > { %7478 = vmatmul.msk.bf16.gmra.mxu0 %vm1987_vm0, %v7759_v22  ;;  %7542 = vmatmul.msk.bf16.gmra.mxu1 %vm1987_vm0, %v7823_v23 }
  0x56   : > { %7606 = vmatmul.msk.bf16.gmra.mxu2 %vm1987_vm0, %v7887_v24  ;;  %7670 = vmatmul.msk.bf16.gmra.mxu3 %vm1987_vm0, %v7951_v25 }
  0x65   : > { %7479 = vmatmul.msk.bf16.gmra.mxu0 %vm1987_vm0, %v7760_v26  ;;  %7543 = vmatmul.msk.bf16.gmra.mxu1 %vm1987_vm0, %v7824_v27 }
  0x66   : > { %7607 = vmatmul.msk.bf16.gmra.mxu2 %vm1987_vm0, %v7888_v28  ;;  %7671 = vmatmul.msk.bf16.gmra.mxu3 %vm1987_vm0, %v7952_v29 }
  0x75   : > { %7480 = vmatmul.msk.bf16.gmra.mxu0 %vm1987_vm0, %v7761_v30  ;;  %7544 = vmatmul.msk.bf16.gmra.mxu1 %vm1987_vm0, %v7825_v31 }
  0x76   : > { %7608 = vmatmul.msk.bf16.gmra.mxu2 %vm1987_vm0, %v7889_v32  ;;  %7672 = vmatmul.msk.bf16.gmra.mxu3 %vm1987_vm0, %v7953_v33 }
  0x85   : > { %7481 = vmatmul.msk.bf16.gmra.mxu0 %vm1987_vm0, %v7762_v34  ;;  %7545 = vmatmul.msk.bf16.gmra.mxu1 %vm1987_vm0, %v7826_v35 }
  0x86   : > { %7609 = vmatmul.msk.bf16.gmra.mxu2 %vm1987_vm0, %v7890_v36  ;;  %7673 = vmatmul.msk.bf16.gmra.mxu3 %vm1987_vm0, %v7954_v37 }
  0x92   : > { %v2765_v40 = vpop.f32.mrf.mxu0  ;;  %v3085_v41 = vpop.f32.mrf.mxu1 }
  0x93   : > { %v2766_v45 = vadd.f32 %v8290_v44, %v2765_v40  ;;  %v3086_v46 = vadd.f32 %v8290_v44, %v3085_v41 }
  0x95   : > { %7482 = vmatmul.msk.bf16.gmra.mxu0 %vm1987_vm0, %v7763_v38  ;;  %7546 = vmatmul.msk.bf16.gmra.mxu1 %vm1987_vm0, %v7827_v39  ;;  %v4045_v51 = vmax.f32 %v2766_v45, 0.0  ;;  %v4173_v52 = vmax.f32 %v3086_v46, 0.0 }
  0x96   : > { %7610 = vmatmul.msk.bf16.gmra.mxu2 %vm1987_vm0, %v7891_v42  ;;  %7674 = vmatmul.msk.bf16.gmra.mxu3 %vm1987_vm0, %v7955_v43 }
  0x97   : > { %v4557_v59 = vsel %vm1987_vm0, %v4045_v51, 0.0  ;;  %v4823_v60 = vsel %vm1987_vm0, %v4173_v52, 0.0  ;;  %v7765_v52 = vld [vmem:[%s8217_s29 + $0x50] sm:$0xff] }
  0x99   : > { %v3405_v47 = vpop.f32.mrf.mxu2  ;;  %v3725_v48 = vpop.f32.mrf.mxu3 }
  0x9a   : > { %v2767_v49 = vpop.f32.mrf.mxu0  ;;  %v3087_v50 = vpop.f32.mrf.mxu1  ;;  %v3406_v57 = vadd.f32 %v8290_v44, %v3405_v47  ;;  %v3726_v58 = vadd.f32 %v8290_v44, %v3725_v48 }
  0x9b   : > { %v2768_v53 = vadd.f32 %v8290_v44, %v2767_v49  ;;  %v3088_v54 = vadd.f32 %v8290_v44, %v3087_v50 }
  0x9c   : > { %v4301_v5 = vmax.f32 %v3406_v57, 0.0  ;;  %v4429_v6 = vmax.f32 %v3726_v58, 0.0  ;;  %v7893_v58 = vld [vmem:[%s8217_s29 + $0x450] sm:$0xff] }
  0x9d   : > { %v4046_v55 = vmax.f32 %v2768_v53, 0.0  ;;  %v4174_v56 = vmax.f32 %v3088_v54, 0.0  ;;  %v7829_v53 = vld [vmem:[%s8217_s29 + $0x250] sm:$0xff] }
  0x9e   : > { %v5089_v19 = vsel %vm1987_vm0, %v4301_v5, 0.0  ;;  %v5355_v20 = vsel %vm1987_vm0, %v4429_v6, 0.0 }
  0x9f   : > { %v4558_v61 = vsel %vm1987_vm0, %v4046_v55, 0.0  ;;  %v4824_v62 = vsel %vm1987_vm0, %v4174_v56, 0.0 }
  0xa0   : > { %v4559_v63 = vadd.f32 %v4558_v61, %v4557_v59  ;;  %v4825_v0 = vadd.f32 %v4824_v62, %v4823_v60  ;;  %v7957_v59 = vld [vmem:[%s8217_s29 + $0x650] sm:$0xff] }
  0xa1   : > { %v3407_v1 = vpop.f32.mrf.mxu2  ;;  %v3727_v2 = vpop.f32.mrf.mxu3 }
  0xa2   : > { %v3408_v7 = vadd.f32 %v8290_v44, %v3407_v1  ;;  %v3728_v8 = vadd.f32 %v8290_v44, %v3727_v2  ;;  %v2770_v9 = vpop.f32.mrf.mxu0  ;;  %v3090_v10 = vpop.f32.mrf.mxu1 }
  0xa3   : > { %v2771_v13 = vadd.f32 %v8290_v44, %v2770_v9  ;;  %v3091_v14 = vadd.f32 %v8290_v44, %v3090_v10 }
  0xa4   : > { %v4302_v15 = vmax.f32 %v3408_v7, 0.0  ;;  %v4430_v16 = vmax.f32 %v3728_v8, 0.0 }
  0xa5   : > { %v4047_v17 = vmax.f32 %v2771_v13, 0.0  ;;  %v4175_v18 = vmax.f32 %v3091_v14, 0.0  ;;  %7483 = vmatmul.msk.bf16.gmra.mxu0 %vm1987_vm0, %v7764_v3  ;;  %7547 = vmatmul.msk.bf16.gmra.mxu1 %vm1987_vm0, %v7828_v4 }
  0xa6   : > { %v5090_v21 = vsel %vm1987_vm0, %v4302_v15, 0.0  ;;  %v5356_v22 = vsel %vm1987_vm0, %v4430_v16, 0.0  ;;  %7611 = vmatmul.msk.bf16.gmra.mxu2 %vm1987_vm0, %v7892_v11  ;;  %7675 = vmatmul.msk.bf16.gmra.mxu3 %vm1987_vm0, %v7956_v12 }
  0xa7   : > { %v5091_v23 = vadd.f32 %v5090_v21, %v5089_v19  ;;  %v5357_v24 = vadd.f32 %v5356_v22, %v5355_v20  ;;  %v4560_v25 = vsel %vm1987_vm0, %v4047_v17, 0.0  ;;  %v4826_v26 = vsel %vm1987_vm0, %v4175_v18, 0.0 }
  0xa8   : > { %v4561_v27 = vadd.f32 %v4560_v25, %v4559_v63  ;;  %v4827_v28 = vadd.f32 %v4826_v26, %v4825_v0 }
  0xa9   : > { %v3410_v29 = vpop.f32.mrf.mxu2  ;;  %v3730_v30 = vpop.f32.mrf.mxu3 }
  0xaa   : > { %v3411_v31 = vadd.f32 %v8290_v44, %v3410_v29  ;;  %v3731_v32 = vadd.f32 %v8290_v44, %v3730_v30  ;;  %v2772_v33 = vpop.f32.mrf.mxu0  ;;  %v3092_v34 = vpop.f32.mrf.mxu1 }
  0xab   : > { %v2773_v35 = vadd.f32 %v8290_v44, %v2772_v33  ;;  %v3093_v36 = vadd.f32 %v8290_v44, %v3092_v34  ;;  %v7830_v33 = vld [vmem:[%s8217_s29 + $0x258] sm:$0xff] }
  0xac   : > { %v4303_v37 = vmax.f32 %v3411_v31, 0.0  ;;  %v4431_v38 = vmax.f32 %v3731_v32, 0.0  ;;  %v7766_v32 = vld [vmem:[%s8217_s29 + $0x58] sm:$0xff] }
  0xad   : > { %v4048_v39 = vmax.f32 %v2773_v35, 0.0  ;;  %v4176_v40 = vmax.f32 %v3093_v36, 0.0 }
  0xae   : > { %v5092_v41 = vsel %vm1987_vm0, %v4303_v37, 0.0  ;;  %v5358_v42 = vsel %vm1987_vm0, %v4431_v38, 0.0  ;;  %v7894_v38 = vld [vmem:[%s8217_s29 + $0x458] sm:$0xff] }
  0xaf   : > { %v5093_v43 = vadd.f32 %v5092_v41, %v5091_v23  ;;  %v5359_v45 = vadd.f32 %v5358_v42, %v5357_v24  ;;  %v4562_v46 = vsel %vm1987_vm0, %v4048_v39, 0.0  ;;  %v4828_v47 = vsel %vm1987_vm0, %v4176_v40, 0.0  ;;  %v7958_v39 = vld [vmem:[%s8217_s29 + $0x658] sm:$0xff] }
  0xb0   : > { %v4563_v48 = vadd.f32 %v4562_v46, %v4561_v27  ;;  %v4829_v49 = vadd.f32 %v4828_v47, %v4827_v28 }
  0xb1   : > { %v3412_v50 = vpop.f32.mrf.mxu2  ;;  %v3732_v51 = vpop.f32.mrf.mxu3 }
  0xb2   : > { %v3413_v54 = vadd.f32 %v8290_v44, %v3412_v50  ;;  %v3733_v55 = vadd.f32 %v8290_v44, %v3732_v51  ;;  %v2775_v56 = vpop.f32.mrf.mxu0  ;;  %v3095_v57 = vpop.f32.mrf.mxu1 }
  0xb3   : > { %v2776_v60 = vadd.f32 %v8290_v44, %v2775_v56  ;;  %v3096_v61 = vadd.f32 %v8290_v44, %v3095_v57 }
  0xb4   : > { %v4304_v62 = vmax.f32 %v3413_v54, 0.0  ;;  %v4432_v63 = vmax.f32 %v3733_v55, 0.0 }
  0xb5   : > { %v4049_v0 = vmax.f32 %v2776_v60, 0.0  ;;  %v4177_v1 = vmax.f32 %v3096_v61, 0.0  ;;  %7484 = vmatmul.msk.bf16.gmra.mxu0 %vm1987_vm0, %v7765_v52  ;;  %7548 = vmatmul.msk.bf16.gmra.mxu1 %vm1987_vm0, %v7829_v53 }
  0xb6   : > { %v5094_v2 = vsel %vm1987_vm0, %v4304_v62, 0.0  ;;  %v5360_v3 = vsel %vm1987_vm0, %v4432_v63, 0.0  ;;  %7612 = vmatmul.msk.bf16.gmra.mxu2 %vm1987_vm0, %v7893_v58  ;;  %7676 = vmatmul.msk.bf16.gmra.mxu3 %vm1987_vm0, %v7957_v59 }
  0xb7   : > { %v5095_v4 = vadd.f32 %v5094_v2, %v5093_v43  ;;  %v5361_v5 = vadd.f32 %v5360_v3, %v5359_v45  ;;  %v4564_v6 = vsel %vm1987_vm0, %v4049_v0, 0.0  ;;  %v4830_v7 = vsel %vm1987_vm0, %v4177_v1, 0.0 }
  0xb8   : > { %v4565_v8 = vadd.f32 %v4564_v6, %v4563_v48  ;;  %v4831_v9 = vadd.f32 %v4830_v7, %v4829_v49 }
  0xb9   : > { %v3415_v10 = vpop.f32.mrf.mxu2  ;;  %v3735_v11 = vpop.f32.mrf.mxu3 }
  0xba   : > { %v3416_v12 = vadd.f32 %v8290_v44, %v3415_v10  ;;  %v3736_v13 = vadd.f32 %v8290_v44, %v3735_v11  ;;  %v2777_v14 = vpop.f32.mrf.mxu0  ;;  %v3097_v15 = vpop.f32.mrf.mxu1 }
  0xbb   : > { %v2778_v16 = vadd.f32 %v8290_v44, %v2777_v14  ;;  %v3098_v17 = vadd.f32 %v8290_v44, %v3097_v15  ;;  %v7831_v14 = vld [vmem:[%s8217_s29 + $0x260] sm:$0xff] }
  0xbc   : > { %v4305_v18 = vmax.f32 %v3416_v12, 0.0  ;;  %v4433_v19 = vmax.f32 %v3736_v13, 0.0  ;;  %v7767_v13 = vld [vmem:[%s8217_s29 + $0x60] sm:$0xff] }
  0xbd   : > { %v4050_v20 = vmax.f32 %v2778_v16, 0.0  ;;  %v4178_v21 = vmax.f32 %v3098_v17, 0.0 }
  0xbe   : > { %v5096_v22 = vsel %vm1987_vm0, %v4305_v18, 0.0  ;;  %v5362_v23 = vsel %vm1987_vm0, %v4433_v19, 0.0  ;;  %v7895_v19 = vld [vmem:[%s8217_s29 + $0x460] sm:$0xff] }
  0xbf   : > { %v5097_v24 = vadd.f32 %v5096_v22, %v5095_v4  ;;  %v5363_v25 = vadd.f32 %v5362_v23, %v5361_v5  ;;  %v4566_v26 = vsel %vm1987_vm0, %v4050_v20, 0.0  ;;  %v4832_v27 = vsel %vm1987_vm0, %v4178_v21, 0.0  ;;  %v7959_v20 = vld [vmem:[%s8217_s29 + $0x660] sm:$0xff] }
  0xc0   : > { %v4567_v28 = vadd.f32 %v4566_v26, %v4565_v8  ;;  %v4833_v29 = vadd.f32 %v4832_v27, %v4831_v9 }
  0xc1   : > { %v3417_v30 = vpop.f32.mrf.mxu2  ;;  %v3737_v31 = vpop.f32.mrf.mxu3 }
  0xc2   : > { %v3418_v34 = vadd.f32 %v8290_v44, %v3417_v30  ;;  %v3738_v35 = vadd.f32 %v8290_v44, %v3737_v31  ;;  %v2780_v36 = vpop.f32.mrf.mxu0  ;;  %v3100_v37 = vpop.f32.mrf.mxu1 }
  0xc3   : > { %v2781_v40 = vadd.f32 %v8290_v44, %v2780_v36  ;;  %v3101_v41 = vadd.f32 %v8290_v44, %v3100_v37 }
  0xc4   : > { %v4306_v42 = vmax.f32 %v3418_v34, 0.0  ;;  %v4434_v43 = vmax.f32 %v3738_v35, 0.0 }
  0xc5   : > { %v4051_v45 = vmax.f32 %v2781_v40, 0.0  ;;  %v4179_v46 = vmax.f32 %v3101_v41, 0.0  ;;  %7485 = vmatmul.msk.bf16.gmra.mxu0 %vm1987_vm0, %v7766_v32  ;;  %7549 = vmatmul.msk.bf16.gmra.mxu1 %vm1987_vm0, %v7830_v33 }
  0xc6   : > { %v5098_v47 = vsel %vm1987_vm0, %v4306_v42, 0.0  ;;  %v5364_v48 = vsel %vm1987_vm0, %v4434_v43, 0.0  ;;  %7613 = vmatmul.msk.bf16.gmra.mxu2 %vm1987_vm0, %v7894_v38  ;;  %7677 = vmatmul.msk.bf16.gmra.mxu3 %vm1987_vm0, %v7958_v39 }
  0xc7   : > { %v5099_v49 = vadd.f32 %v5098_v47, %v5097_v24  ;;  %v5365_v50 = vadd.f32 %v5364_v48, %v5363_v25  ;;  %v4568_v51 = vsel %vm1987_vm0, %v4051_v45, 0.0  ;;  %v4834_v52 = vsel %vm1987_vm0, %v4179_v46, 0.0 }
  0xc8   : > { %v4569_v53 = vadd.f32 %v4568_v51, %v4567_v28  ;;  %v4835_v54 = vadd.f32 %v4834_v52, %v4833_v29 }
  0xc9   : > { %v3420_v55 = vpop.f32.mrf.mxu2  ;;  %v3740_v56 = vpop.f32.mrf.mxu3 }
  0xca   : > { %v3421_v57 = vadd.f32 %v8290_v44, %v3420_v55  ;;  %v3741_v58 = vadd.f32 %v8290_v44, %v3740_v56  ;;  %v2782_v59 = vpop.f32.mrf.mxu0  ;;  %v3102_v60 = vpop.f32.mrf.mxu1 }
  0xcb   : > { %v2783_v61 = vadd.f32 %v8290_v44, %v2782_v59  ;;  %v3103_v62 = vadd.f32 %v8290_v44, %v3102_v60  ;;  %v7832_v59 = vld [vmem:[%s8217_s29 + $0x268] sm:$0xff] }
  0xcc   : > { %v4307_v63 = vmax.f32 %v3421_v57, 0.0  ;;  %v4435_v0 = vmax.f32 %v3741_v58, 0.0  ;;  %v7768_v58 = vld [vmem:[%s8217_s29 + $0x68] sm:$0xff] }
  0xcd   : > { %v4052_v1 = vmax.f32 %v2783_v61, 0.0  ;;  %v4180_v2 = vmax.f32 %v3103_v62, 0.0 }
  0xce   : > { %v5100_v3 = vsel %vm1987_vm0, %v4307_v63, 0.0  ;;  %v5366_v4 = vsel %vm1987_vm0, %v4435_v0, 0.0  ;;  %v7896_v0 = vld [vmem:[%s8217_s29 + $0x468] sm:$0xff] }
  0xcf   : > { %v5101_v5 = vadd.f32 %v5100_v3, %v5099_v49  ;;  %v5367_v6 = vadd.f32 %v5366_v4, %v5365_v50  ;;  %v4570_v7 = vsel %vm1987_vm0, %v4052_v1, 0.0  ;;  %v4836_v8 = vsel %vm1987_vm0, %v4180_v2, 0.0  ;;  %v7960_v1 = vld [vmem:[%s8217_s29 + $0x668] sm:$0xff] }
  0xd0   : > { %v4571_v9 = vadd.f32 %v4570_v7, %v4569_v53  ;;  %v4837_v10 = vadd.f32 %v4836_v8, %v4835_v54 }
  0xd1   : > { %v3422_v11 = vpop.f32.mrf.mxu2  ;;  %v3742_v12 = vpop.f32.mrf.mxu3 }
  0xd2   : > { %v3423_v15 = vadd.f32 %v8290_v44, %v3422_v11  ;;  %v3743_v16 = vadd.f32 %v8290_v44, %v3742_v12  ;;  %v2785_v17 = vpop.f32.mrf.mxu0  ;;  %v3105_v18 = vpop.f32.mrf.mxu1 }
  0xd3   : > { %v2786_v21 = vadd.f32 %v8290_v44, %v2785_v17  ;;  %v3106_v22 = vadd.f32 %v8290_v44, %v3105_v18 }
  0xd4   : > { %v4308_v23 = vmax.f32 %v3423_v15, 0.0  ;;  %v4436_v24 = vmax.f32 %v3743_v16, 0.0 }
  0xd5   : > { %v4053_v25 = vmax.f32 %v2786_v21, 0.0  ;;  %v4181_v26 = vmax.f32 %v3106_v22, 0.0  ;;  %7486 = vmatmul.msk.bf16.gmra.mxu0 %vm1987_vm0, %v7767_v13  ;;  %7550 = vmatmul.msk.bf16.gmra.mxu1 %vm1987_vm0, %v7831_v14 }
  0xd6   : > { %v5102_v27 = vsel %vm1987_vm0, %v4308_v23, 0.0  ;;  %v5368_v28 = vsel %vm1987_vm0, %v4436_v24, 0.0  ;;  %7614 = vmatmul.msk.bf16.gmra.mxu2 %vm1987_vm0, %v7895_v19  ;;  %7678 = vmatmul.msk.bf16.gmra.mxu3 %vm1987_vm0, %v7959_v20 }
  0xd7   : > { %v5103_v29 = vadd.f32 %v5102_v27, %v5101_v5  ;;  %v5369_v30 = vadd.f32 %v5368_v28, %v5367_v6  ;;  %v4572_v31 = vsel %vm1987_vm0, %v4053_v25, 0.0  ;;  %v4838_v32 = vsel %vm1987_vm0, %v4181_v26, 0.0 }
  0xd8   : > { %v4573_v33 = vadd.f32 %v4572_v31, %v4571_v9  ;;  %v4839_v34 = vadd.f32 %v4838_v32, %v4837_v10 }
  0xd9   : > { %v3425_v35 = vpop.f32.mrf.mxu2  ;;  %v3745_v36 = vpop.f32.mrf.mxu3 }
  0xda   : > { %v3426_v37 = vadd.f32 %v8290_v44, %v3425_v35  ;;  %v3746_v38 = vadd.f32 %v8290_v44, %v3745_v36  ;;  %v2787_v39 = vpop.f32.mrf.mxu0  ;;  %v3107_v40 = vpop.f32.mrf.mxu1 }
  0xdb   : > { %v2788_v41 = vadd.f32 %v8290_v44, %v2787_v39  ;;  %v3108_v42 = vadd.f32 %v8290_v44, %v3107_v40  ;;  %v7833_v39 = vld [vmem:[%s8217_s29 + $0x270] sm:$0xff] }
  0xdc   : > { %v4309_v43 = vmax.f32 %v3426_v37, 0.0  ;;  %v4437_v45 = vmax.f32 %v3746_v38, 0.0  ;;  %v7769_v38 = vld [vmem:[%s8217_s29 + $0x70] sm:$0xff] }
  0xdd   : > { %v4054_v46 = vmax.f32 %v2788_v41, 0.0  ;;  %v4182_v47 = vmax.f32 %v3108_v42, 0.0 }
  0xde   : > { %v5104_v48 = vsel %vm1987_vm0, %v4309_v43, 0.0  ;;  %v5370_v49 = vsel %vm1987_vm0, %v4437_v45, 0.0  ;;  %v7897_v45 = vld [vmem:[%s8217_s29 + $0x470] sm:$0xff] }
  0xdf   : > { %v5105_v50 = vadd.f32 %v5104_v48, %v5103_v29  ;;  %v5371_v51 = vadd.f32 %v5370_v49, %v5369_v30  ;;  %v4574_v52 = vsel %vm1987_vm0, %v4054_v46, 0.0  ;;  %v4840_v53 = vsel %vm1987_vm0, %v4182_v47, 0.0  ;;  %v7961_v46 = vld [vmem:[%s8217_s29 + $0x670] sm:$0xff] }
  0xe0   : > { %v4575_v54 = vadd.f32 %v4574_v52, %v4573_v33  ;;  %v4841_v55 = vadd.f32 %v4840_v53, %v4839_v34 }
  0xe1   : > { %v3427_v56 = vpop.f32.mrf.mxu2  ;;  %v3747_v57 = vpop.f32.mrf.mxu3 }
  0xe2   : > { %v3428_v60 = vadd.f32 %v8290_v44, %v3427_v56  ;;  %v3748_v61 = vadd.f32 %v8290_v44, %v3747_v57  ;;  %v2790_v62 = vpop.f32.mrf.mxu0  ;;  %v3110_v63 = vpop.f32.mrf.mxu1 }
  0xe3   : > { %v2791_v2 = vadd.f32 %v8290_v44, %v2790_v62  ;;  %v3111_v3 = vadd.f32 %v8290_v44, %v3110_v63 }
  0xe4   : > { %v4310_v4 = vmax.f32 %v3428_v60, 0.0  ;;  %v4438_v5 = vmax.f32 %v3748_v61, 0.0 }
  0xe5   : > { %v4055_v6 = vmax.f32 %v2791_v2, 0.0  ;;  %v4183_v7 = vmax.f32 %v3111_v3, 0.0  ;;  %7487 = vmatmul.msk.bf16.gmra.mxu0 %vm1987_vm0, %v7768_v58  ;;  %7551 = vmatmul.msk.bf16.gmra.mxu1 %vm1987_vm0, %v7832_v59 }
  0xe6   : > { %v5106_v8 = vsel %vm1987_vm0, %v4310_v4, 0.0  ;;  %v5372_v9 = vsel %vm1987_vm0, %v4438_v5, 0.0  ;;  %7615 = vmatmul.msk.bf16.gmra.mxu2 %vm1987_vm0, %v7896_v0  ;;  %7679 = vmatmul.msk.bf16.gmra.mxu3 %vm1987_vm0, %v7960_v1 }
  0xe7   : > { %v5107_v10 = vadd.f32 %v5106_v8, %v5105_v50  ;;  %v5373_v11 = vadd.f32 %v5372_v9, %v5371_v51  ;;  %v4576_v12 = vsel %vm1987_vm0, %v4055_v6, 0.0  ;;  %v4842_v13 = vsel %vm1987_vm0, %v4183_v7, 0.0 }
  0xe8   : > { %v4577_v14 = vadd.f32 %v4576_v12, %v4575_v54  ;;  %v4843_v15 = vadd.f32 %v4842_v13, %v4841_v55 }
  0xe9   : > { %v3430_v16 = vpop.f32.mrf.mxu2  ;;  %v3750_v17 = vpop.f32.mrf.mxu3 }
  0xea   : > { %v3431_v18 = vadd.f32 %v8290_v44, %v3430_v16  ;;  %v3751_v19 = vadd.f32 %v8290_v44, %v3750_v17  ;;  %v2792_v20 = vpop.f32.mrf.mxu0  ;;  %v3112_v21 = vpop.f32.mrf.mxu1 }
  0xeb   : > { %v2793_v22 = vadd.f32 %v8290_v44, %v2792_v20  ;;  %v3113_v23 = vadd.f32 %v8290_v44, %v3112_v21  ;;  %v7834_v20 = vld [vmem:[%s8217_s29 + $0x278] sm:$0xff] }
  0xec   : > { %v4311_v24 = vmax.f32 %v3431_v18, 0.0  ;;  %v4439_v25 = vmax.f32 %v3751_v19, 0.0  ;;  %v7770_v19 = vld [vmem:[%s8217_s29 + $0x78] sm:$0xff] }
  0xed   : > { %v4056_v26 = vmax.f32 %v2793_v22, 0.0  ;;  %v4184_v27 = vmax.f32 %v3113_v23, 0.0 }
  0xee   : > { %v5108_v28 = vsel %vm1987_vm0, %v4311_v24, 0.0  ;;  %v5374_v29 = vsel %vm1987_vm0, %v4439_v25, 0.0  ;;  %v7898_v25 = vld [vmem:[%s8217_s29 + $0x478] sm:$0xff] }
  0xef   : > { %v5109_v30 = vadd.f32 %v5108_v28, %v5107_v10  ;;  %v5375_v31 = vadd.f32 %v5374_v29, %v5373_v11  ;;  %v4578_v32 = vsel %vm1987_vm0, %v4056_v26, 0.0  ;;  %v4844_v33 = vsel %vm1987_vm0, %v4184_v27, 0.0  ;;  %v7962_v26 = vld [vmem:[%s8217_s29 + $0x678] sm:$0xff] }
  0xf0   : > { %v4579_v34 = vadd.f32 %v4578_v32, %v4577_v14  ;;  %v4845_v35 = vadd.f32 %v4844_v33, %v4843_v15 }
  0xf1   : > { %v3432_v36 = vpop.f32.mrf.mxu2  ;;  %v3752_v37 = vpop.f32.mrf.mxu3 }
  0xf2   : > { %v3433_v40 = vadd.f32 %v8290_v44, %v3432_v36  ;;  %v3753_v41 = vadd.f32 %v8290_v44, %v3752_v37  ;;  %v2795_v42 = vpop.f32.mrf.mxu0  ;;  %v3115_v43 = vpop.f32.mrf.mxu1 }
  0xf3   : > { %v2796_v47 = vadd.f32 %v8290_v44, %v2795_v42  ;;  %v3116_v48 = vadd.f32 %v8290_v44, %v3115_v43 }
  0xf4   : > { %v4312_v49 = vmax.f32 %v3433_v40, 0.0  ;;  %v4440_v50 = vmax.f32 %v3753_v41, 0.0 }
  0xf5   : > { %v4057_v51 = vmax.f32 %v2796_v47, 0.0  ;;  %v4185_v52 = vmax.f32 %v3116_v48, 0.0  ;;  %7488 = vmatmul.msk.bf16.gmra.mxu0 %vm1987_vm0, %v7769_v38  ;;  %7552 = vmatmul.msk.bf16.gmra.mxu1 %vm1987_vm0, %v7833_v39 }
  0xf6   : > { %v5110_v53 = vsel %vm1987_vm0, %v4312_v49, 0.0  ;;  %v5376_v54 = vsel %vm1987_vm0, %v4440_v50, 0.0  ;;  %7616 = vmatmul.msk.bf16.gmra.mxu2 %vm1987_vm0, %v7897_v45  ;;  %7680 = vmatmul.msk.bf16.gmra.mxu3 %vm1987_vm0, %v7961_v46 }
  0xf7   : > { %v5111_v55 = vadd.f32 %v5110_v53, %v5109_v30  ;;  %v5377_v56 = vadd.f32 %v5376_v54, %v5375_v31  ;;  %v4580_v57 = vsel %vm1987_vm0, %v4057_v51, 0.0  ;;  %v4846_v58 = vsel %vm1987_vm0, %v4185_v52, 0.0 }
  0xf8   : > { %v4581_v59 = vadd.f32 %v4580_v57, %v4579_v34  ;;  %v4847_v60 = vadd.f32 %v4846_v58, %v4845_v35 }
  0xf9   : > { %v3435_v61 = vpop.f32.mrf.mxu2  ;;  %v3755_v62 = vpop.f32.mrf.mxu3 }
  0xfa   : > { %v3436_v63 = vadd.f32 %v8290_v44, %v3435_v61  ;;  %v3756_v0 = vadd.f32 %v8290_v44, %v3755_v62  ;;  %v2797_v1 = vpop.f32.mrf.mxu0  ;;  %v3117_v2 = vpop.f32.mrf.mxu1 }
  0xfb   : > { %v2798_v3 = vadd.f32 %v8290_v44, %v2797_v1  ;;  %v3118_v4 = vadd.f32 %v8290_v44, %v3117_v2  ;;  %v7835_v1 = vld [vmem:[%s8217_s29 + $0x280] sm:$0xff] }
  0xfc   : > { %v4313_v5 = vmax.f32 %v3436_v63, 0.0  ;;  %v4441_v6 = vmax.f32 %v3756_v0, 0.0  ;;  %v7771_v0 = vld [vmem:[%s8217_s29 + $0x80] sm:$0xff] }
  0xfd   : > { %v4058_v7 = vmax.f32 %v2798_v3, 0.0  ;;  %v4186_v8 = vmax.f32 %v3118_v4, 0.0 }
  0xfe   : > { %v5112_v9 = vsel %vm1987_vm0, %v4313_v5, 0.0  ;;  %v5378_v10 = vsel %vm1987_vm0, %v4441_v6, 0.0  ;;  %v7899_v6 = vld [vmem:[%s8217_s29 + $0x480] sm:$0xff] }
  0xff   : > { %v5113_v11 = vadd.f32 %v5112_v9, %v5111_v55  ;;  %v5379_v12 = vadd.f32 %v5378_v10, %v5377_v56  ;;  %v4582_v13 = vsel %vm1987_vm0, %v4058_v7, 0.0  ;;  %v4848_v14 = vsel %vm1987_vm0, %v4186_v8, 0.0  ;;  %v7963_v7 = vld [vmem:[%s8217_s29 + $0x680] sm:$0xff] }
 0x100   : > { %v4583_v15 = vadd.f32 %v4582_v13, %v4581_v59  ;;  %v4849_v16 = vadd.f32 %v4848_v14, %v4847_v60 }
 0x101   : > { %v3437_v17 = vpop.f32.mrf.mxu2  ;;  %v3757_v18 = vpop.f32.mrf.mxu3 }
 0x102   : > { %v3438_v21 = vadd.f32 %v8290_v44, %v3437_v17  ;;  %v3758_v22 = vadd.f32 %v8290_v44, %v3757_v18  ;;  %v2800_v23 = vpop.f32.mrf.mxu0  ;;  %v3120_v24 = vpop.f32.mrf.mxu1 }
 0x103   : > { %v2801_v27 = vadd.f32 %v8290_v44, %v2800_v23  ;;  %v3121_v28 = vadd.f32 %v8290_v44, %v3120_v24 }
 0x104   : > { %v4314_v29 = vmax.f32 %v3438_v21, 0.0  ;;  %v4442_v30 = vmax.f32 %v3758_v22, 0.0 }
 0x105   : > { %v4059_v31 = vmax.f32 %v2801_v27, 0.0  ;;  %v4187_v32 = vmax.f32 %v3121_v28, 0.0  ;;  %7489 = vmatmul.msk.bf16.gmra.mxu0 %vm1987_vm0, %v7770_v19  ;;  %7553 = vmatmul.msk.bf16.gmra.mxu1 %vm1987_vm0, %v7834_v20 }
 0x106   : > { %v5114_v33 = vsel %vm1987_vm0, %v4314_v29, 0.0  ;;  %v5380_v34 = vsel %vm1987_vm0, %v4442_v30, 0.0  ;;  %7617 = vmatmul.msk.bf16.gmra.mxu2 %vm1987_vm0, %v7898_v25  ;;  %7681 = vmatmul.msk.bf16.gmra.mxu3 %vm1987_vm0, %v7962_v26 }
 0x107   : > { %v5115_v35 = vadd.f32 %v5114_v33, %v5113_v11  ;;  %v5381_v36 = vadd.f32 %v5380_v34, %v5379_v12  ;;  %v4584_v37 = vsel %vm1987_vm0, %v4059_v31, 0.0  ;;  %v4850_v38 = vsel %vm1987_vm0, %v4187_v32, 0.0 }
 0x108   : > { %v4585_v39 = vadd.f32 %v4584_v37, %v4583_v15  ;;  %v4851_v40 = vadd.f32 %v4850_v38, %v4849_v16 }
 0x109   : > { %v3440_v41 = vpop.f32.mrf.mxu2  ;;  %v3760_v42 = vpop.f32.mrf.mxu3 }
 0x10a   : > { %v3441_v43 = vadd.f32 %v8290_v44, %v3440_v41  ;;  %v3761_v45 = vadd.f32 %v8290_v44, %v3760_v42  ;;  %v2802_v46 = vpop.f32.mrf.mxu0  ;;  %v3122_v47 = vpop.f32.mrf.mxu1 }
 0x10b   : > { %v2803_v48 = vadd.f32 %v8290_v44, %v2802_v46  ;;  %v3123_v49 = vadd.f32 %v8290_v44, %v3122_v47  ;;  %v7836_v46 = vld [vmem:[%s8217_s29 + $0x288] sm:$0xff] }
 0x10c   : > { %v4315_v50 = vmax.f32 %v3441_v43, 0.0  ;;  %v4443_v51 = vmax.f32 %v3761_v45, 0.0  ;;  %v7772_v45 = vld [vmem:[%s8217_s29 + $0x88] sm:$0xff] }
 0x10d   : > { %v4060_v52 = vmax.f32 %v2803_v48, 0.0  ;;  %v4188_v53 = vmax.f32 %v3123_v49, 0.0 }
 0x10e   : > { %v5116_v54 = vsel %vm1987_vm0, %v4315_v50, 0.0  ;;  %v5382_v55 = vsel %vm1987_vm0, %v4443_v51, 0.0  ;;  %v7900_v51 = vld [vmem:[%s8217_s29 + $0x488] sm:$0xff] }
 0x10f   : > { %v5117_v56 = vadd.f32 %v5116_v54, %v5115_v35  ;;  %v5383_v57 = vadd.f32 %v5382_v55, %v5381_v36  ;;  %v4586_v58 = vsel %vm1987_vm0, %v4060_v52, 0.0  ;;  %v4852_v59 = vsel %vm1987_vm0, %v4188_v53, 0.0  ;;  %v7964_v52 = vld [vmem:[%s8217_s29 + $0x688] sm:$0xff] }
 0x110   : > { %v4587_v60 = vadd.f32 %v4586_v58, %v4585_v39  ;;  %v4853_v61 = vadd.f32 %v4852_v59, %v4851_v40 }
 0x111   : > { %v3442_v62 = vpop.f32.mrf.mxu2  ;;  %v3762_v63 = vpop.f32.mrf.mxu3 }
 0x112   : > { %v3443_v2 = vadd.f32 %v8290_v44, %v3442_v62  ;;  %v3763_v3 = vadd.f32 %v8290_v44, %v3762_v63  ;;  %v2805_v4 = vpop.f32.mrf.mxu0  ;;  %v3125_v5 = vpop.f32.mrf.mxu1 }
 0x113   : > { %v2806_v8 = vadd.f32 %v8290_v44, %v2805_v4  ;;  %v3126_v9 = vadd.f32 %v8290_v44, %v3125_v5 }
 0x114   : > { %v4316_v10 = vmax.f32 %v3443_v2, 0.0  ;;  %v4444_v11 = vmax.f32 %v3763_v3, 0.0 }
 0x115   : > { %v4061_v12 = vmax.f32 %v2806_v8, 0.0  ;;  %v4189_v13 = vmax.f32 %v3126_v9, 0.0  ;;  %7490 = vmatmul.msk.bf16.gmra.mxu0 %vm1987_vm0, %v7771_v0  ;;  %7554 = vmatmul.msk.bf16.gmra.mxu1 %vm1987_vm0, %v7835_v1 }
 0x116   : > { %v5118_v14 = vsel %vm1987_vm0, %v4316_v10, 0.0  ;;  %v5384_v15 = vsel %vm1987_vm0, %v4444_v11, 0.0  ;;  %7618 = vmatmul.msk.bf16.gmra.mxu2 %vm1987_vm0, %v7899_v6  ;;  %7682 = vmatmul.msk.bf16.gmra.mxu3 %vm1987_vm0, %v7963_v7 }
 0x117   : > { %v5119_v16 = vadd.f32 %v5118_v14, %v5117_v56  ;;  %v5385_v17 = vadd.f32 %v5384_v15, %v5383_v57  ;;  %v4588_v18 = vsel %vm1987_vm0, %v4061_v12, 0.0  ;;  %v4854_v19 = vsel %vm1987_vm0, %v4189_v13, 0.0 }
 0x118   : > { %v4589_v20 = vadd.f32 %v4588_v18, %v4587_v60  ;;  %v4855_v21 = vadd.f32 %v4854_v19, %v4853_v61 }
 0x119   : > { %v3445_v22 = vpop.f32.mrf.mxu2  ;;  %v3765_v23 = vpop.f32.mrf.mxu3 }
 0x11a   : > { %v3446_v24 = vadd.f32 %v8290_v44, %v3445_v22  ;;  %v3766_v25 = vadd.f32 %v8290_v44, %v3765_v23  ;;  %v2807_v26 = vpop.f32.mrf.mxu0  ;;  %v3127_v27 = vpop.f32.mrf.mxu1 }
 0x11b   : > { %v2808_v28 = vadd.f32 %v8290_v44, %v2807_v26  ;;  %v3128_v29 = vadd.f32 %v8290_v44, %v3127_v27  ;;  %v7837_v26 = vld [vmem:[%s8217_s29 + $0x290] sm:$0xff] }
 0x11c   : > { %v4317_v30 = vmax.f32 %v3446_v24, 0.0  ;;  %v4445_v31 = vmax.f32 %v3766_v25, 0.0  ;;  %v7773_v25 = vld [vmem:[%s8217_s29 + $0x90] sm:$0xff] }
 0x11d   : > { %v4062_v32 = vmax.f32 %v2808_v28, 0.0  ;;  %v4190_v33 = vmax.f32 %v3128_v29, 0.0 }
 0x11e   : > { %v5120_v34 = vsel %vm1987_vm0, %v4317_v30, 0.0  ;;  %v5386_v35 = vsel %vm1987_vm0, %v4445_v31, 0.0  ;;  %v7901_v31 = vld [vmem:[%s8217_s29 + $0x490] sm:$0xff] }
 0x11f   : > { %v5121_v36 = vadd.f32 %v5120_v34, %v5119_v16  ;;  %v5387_v37 = vadd.f32 %v5386_v35, %v5385_v17  ;;  %v4590_v38 = vsel %vm1987_vm0, %v4062_v32, 0.0  ;;  %v4856_v39 = vsel %vm1987_vm0, %v4190_v33, 0.0  ;;  %v7965_v32 = vld [vmem:[%s8217_s29 + $0x690] sm:$0xff] }
 0x120   : > { %v4591_v40 = vadd.f32 %v4590_v38, %v4589_v20  ;;  %v4857_v41 = vadd.f32 %v4856_v39, %v4855_v21 }
 0x121   : > { %v3447_v42 = vpop.f32.mrf.mxu2  ;;  %v3767_v43 = vpop.f32.mrf.mxu3 }
 0x122   : > { %v3448_v47 = vadd.f32 %v8290_v44, %v3447_v42  ;;  %v3768_v48 = vadd.f32 %v8290_v44, %v3767_v43  ;;  %v2810_v49 = vpop.f32.mrf.mxu0  ;;  %v3130_v50 = vpop.f32.mrf.mxu1 }
 0x123   : > { %v2811_v53 = vadd.f32 %v8290_v44, %v2810_v49  ;;  %v3131_v54 = vadd.f32 %v8290_v44, %v3130_v50 }
 0x124   : > { %v4318_v55 = vmax.f32 %v3448_v47, 0.0  ;;  %v4446_v56 = vmax.f32 %v3768_v48, 0.0 }
 0x125   : > { %v4063_v57 = vmax.f32 %v2811_v53, 0.0  ;;  %v4191_v58 = vmax.f32 %v3131_v54, 0.0  ;;  %7491 = vmatmul.msk.bf16.gmra.mxu0 %vm1987_vm0, %v7772_v45  ;;  %7555 = vmatmul.msk.bf16.gmra.mxu1 %vm1987_vm0, %v7836_v46 }
 0x126   : > { %v5122_v59 = vsel %vm1987_vm0, %v4318_v55, 0.0  ;;  %v5388_v60 = vsel %vm1987_vm0, %v4446_v56, 0.0  ;;  %7619 = vmatmul.msk.bf16.gmra.mxu2 %vm1987_vm0, %v7900_v51  ;;  %7683 = vmatmul.msk.bf16.gmra.mxu3 %vm1987_vm0, %v7964_v52 }
 0x127   : > { %v5123_v61 = vadd.f32 %v5122_v59, %v5121_v36  ;;  %v5389_v62 = vadd.f32 %v5388_v60, %v5387_v37  ;;  %v4592_v63 = vsel %vm1987_vm0, %v4063_v57, 0.0  ;;  %v4858_v0 = vsel %vm1987_vm0, %v4191_v58, 0.0 }
 0x128   : > { %v4593_v1 = vadd.f32 %v4592_v63, %v4591_v40  ;;  %v4859_v2 = vadd.f32 %v4858_v0, %v4857_v41 }
 0x129   : > { %v3450_v3 = vpop.f32.mrf.mxu2  ;;  %v3770_v4 = vpop.f32.mrf.mxu3 }
 0x12a   : > { %v3451_v5 = vadd.f32 %v8290_v44, %v3450_v3  ;;  %v3771_v6 = vadd.f32 %v8290_v44, %v3770_v4  ;;  %v2812_v7 = vpop.f32.mrf.mxu0  ;;  %v3132_v8 = vpop.f32.mrf.mxu1 }
 0x12b   : > { %v2813_v9 = vadd.f32 %v8290_v44, %v2812_v7  ;;  %v3133_v10 = vadd.f32 %v8290_v44, %v3132_v8  ;;  %v8553_v7 = vld [vmem:[%s10199_s1 + $0x20] ss:$0 sm:$0xff] }
 0x12c   : > { %v4319_v11 = vmax.f32 %v3451_v5, 0.0  ;;  %v4447_v12 = vmax.f32 %v3771_v6, 0.0  ;;  %v7774_v5 = vld [vmem:[%s8217_s29 + $0x98] sm:$0xff] }
 0x12d   : > { %v4064_v13 = vmax.f32 %v2813_v9, 0.0  ;;  %v4192_v14 = vmax.f32 %v3133_v10, 0.0  ;;  %v7838_v6 = vld [vmem:[%s8217_s29 + $0x298] sm:$0xff] }
 0x12e   : > { %v5124_v15 = vsel %vm1987_vm0, %v4319_v11, 0.0  ;;  %v5390_v16 = vsel %vm1987_vm0, %v4447_v12, 0.0  ;;  %v7902_v12 = vld [vmem:[%s8217_s29 + $0x498] sm:$0xff] }
 0x12f   : > { %v5125_v17 = vadd.f32 %v5124_v15, %v5123_v61  ;;  %v5391_v18 = vadd.f32 %v5390_v16, %v5389_v62  ;;  %v4594_v19 = vsel %vm1987_vm0, %v4064_v13, 0.0  ;;  %v4860_v20 = vsel %vm1987_vm0, %v4192_v14, 0.0  ;;  %v7966_v13 = vld [vmem:[%s8217_s29 + $0x698] sm:$0xff] }
 0x130   : > { %v4595_v21 = vadd.f32 %v4594_v19, %v4593_v1  ;;  %v4861_v22 = vadd.f32 %v4860_v20, %v4859_v2 }
 0x131   : > { %v3452_v23 = vpop.f32.mrf.mxu2  ;;  %v3772_v24 = vpop.f32.mrf.mxu3 }
 0x132   : > { %v3453_v27 = vadd.f32 %v8290_v44, %v3452_v23  ;;  %v3773_v28 = vadd.f32 %v8290_v44, %v3772_v24  ;;  %v2815_v29 = vpop.f32.mrf.mxu0  ;;  %v3135_v30 = vpop.f32.mrf.mxu1 }
 0x133   : > { %v2816_v33 = vadd.f32 %v8290_v44, %v2815_v29  ;;  %v3136_v34 = vadd.f32 %v8290_v44, %v3135_v30 }
 0x134   : > { %v4320_v35 = vmax.f32 %v3453_v27, 0.0  ;;  %v4448_v36 = vmax.f32 %v3773_v28, 0.0 }
 0x135   : > { %v4065_v37 = vmax.f32 %v2816_v33, 0.0  ;;  %v4193_v38 = vmax.f32 %v3136_v34, 0.0  ;;  %7492 = vmatmul.msk.bf16.gmra.mxu0 %vm1987_vm0, %v7773_v25  ;;  %7556 = vmatmul.msk.bf16.gmra.mxu1 %vm1987_vm0, %v7837_v26 }
 0x136   : > { %v5126_v39 = vsel %vm1987_vm0, %v4320_v35, 0.0  ;;  %v5392_v40 = vsel %vm1987_vm0, %v4448_v36, 0.0  ;;  %7620 = vmatmul.msk.bf16.gmra.mxu2 %vm1987_vm0, %v7901_v31  ;;  %7684 = vmatmul.msk.bf16.gmra.mxu3 %vm1987_vm0, %v7965_v32 }
 0x137   : > { %v5127_v41 = vadd.f32 %v5126_v39, %v5125_v17  ;;  %v5393_v42 = vadd.f32 %v5392_v40, %v5391_v18  ;;  %v4596_v43 = vsel %vm1987_vm0, %v4065_v37, 0.0  ;;  %v4862_v45 = vsel %vm1987_vm0, %v4193_v38, 0.0 }
 0x138   : > { %v4597_v46 = vadd.f32 %v4596_v43, %v4595_v21  ;;  %v4863_v47 = vadd.f32 %v4862_v45, %v4861_v22 }
 0x139   : > { %v3455_v48 = vpop.f32.mrf.mxu2  ;;  %v3775_v49 = vpop.f32.mrf.mxu3 }
 0x13a   : > { %v3456_v50 = vadd.f32 %v8290_v44, %v3455_v48  ;;  %v3776_v51 = vadd.f32 %v8290_v44, %v3775_v49  ;;  %v2817_v52 = vpop.f32.mrf.mxu0  ;;  %v3137_v53 = vpop.f32.mrf.mxu1 }
 0x13b   : > { %v2818_v54 = vadd.f32 %v8290_v44, %v2817_v52  ;;  %v3138_v55 = vadd.f32 %v8290_v44, %v3137_v53  ;;  %v7839_v52 = vld [vmem:[%s8217_s29 + $0x2a0] sm:$0xff] }
 0x13c   : > { %v4321_v56 = vmax.f32 %v3456_v50, 0.0  ;;  %v4449_v57 = vmax.f32 %v3776_v51, 0.0  ;;  %v7775_v51 = vld [vmem:[%s8217_s29 + $0xa0] sm:$0xff] }
 0x13d   : > { %v4066_v58 = vmax.f32 %v2818_v54, 0.0  ;;  %v4194_v59 = vmax.f32 %v3138_v55, 0.0 }
 0x13e   : > { %v5128_v60 = vsel %vm1987_vm0, %v4321_v56, 0.0  ;;  %v5394_v61 = vsel %vm1987_vm0, %v4449_v57, 0.0  ;;  %v7903_v57 = vld [vmem:[%s8217_s29 + $0x4a0] sm:$0xff] }
 0x13f   : > { %v5129_v62 = vadd.f32 %v5128_v60, %v5127_v41  ;;  %v5395_v63 = vadd.f32 %v5394_v61, %v5393_v42  ;;  %v4598_v0 = vsel %vm1987_vm0, %v4066_v58, 0.0  ;;  %v4864_v1 = vsel %vm1987_vm0, %v4194_v59, 0.0  ;;  %v7967_v58 = vld [vmem:[%s8217_s29 + $0x6a0] sm:$0xff] }
 0x140   : > { %v4599_v2 = vadd.f32 %v4598_v0, %v4597_v46  ;;  %v4865_v3 = vadd.f32 %v4864_v1, %v4863_v47 }
 0x141   : > { %v3457_v44 = vpop.f32.mrf.mxu2  ;;  %v3777_v4 = vpop.f32.mrf.mxu3 }
 0x142   : > { %v3458_v8 = vadd.f32 %v8553_v7, %v3457_v44  ;;  %v3778_v9 = vadd.f32 %v8553_v7, %v3777_v4  ;;  %v2820_v10 = vpop.f32.mrf.mxu0  ;;  %v3140_v11 = vpop.f32.mrf.mxu1 }
 0x143   : > { %v2821_v14 = vadd.f32 %v8553_v7, %v2820_v10  ;;  %v3141_v15 = vadd.f32 %v8553_v7, %v3140_v11 }
 0x144   : > { %v4322_v16 = vmax.f32 %v3458_v8, 0.0  ;;  %v4450_v17 = vmax.f32 %v3778_v9, 0.0 }
 0x145   : > { %v4067_v18 = vmax.f32 %v2821_v14, 0.0  ;;  %v4195_v19 = vmax.f32 %v3141_v15, 0.0  ;;  %7493 = vmatmul.msk.bf16.gmra.mxu0 %vm1987_vm0, %v7774_v5  ;;  %7557 = vmatmul.msk.bf16.gmra.mxu1 %vm1987_vm0, %v7838_v6 }
 0x146   : > { %v5130_v20 = vsel %vm1987_vm0, %v4322_v16, 0.0  ;;  %v5396_v21 = vsel %vm1987_vm0, %v4450_v17, 0.0  ;;  %7621 = vmatmul.msk.bf16.gmra.mxu2 %vm1987_vm0, %v7902_v12  ;;  %7685 = vmatmul.msk.bf16.gmra.mxu3 %vm1987_vm0, %v7966_v13 }
 0x147   : > { %v5131_v22 = vadd.f32 %v5130_v20, %v5129_v62  ;;  %v5397_v23 = vadd.f32 %v5396_v21, %v5395_v63  ;;  %v4600_v24 = vsel %vm1987_vm0, %v4067_v18, 0.0  ;;  %v4866_v25 = vsel %vm1987_vm0, %v4195_v19, 0.0 }
 0x148   : > { %v4601_v26 = vadd.f32 %v4600_v24, %v4599_v2  ;;  %v4867_v27 = vadd.f32 %v4866_v25, %v4865_v3 }
 0x149   : > { %v3460_v28 = vpop.f32.mrf.mxu2  ;;  %v3780_v29 = vpop.f32.mrf.mxu3 }
 0x14a   : > { %v3461_v30 = vadd.f32 %v8553_v7, %v3460_v28  ;;  %v3781_v31 = vadd.f32 %v8553_v7, %v3780_v29  ;;  %v2822_v32 = vpop.f32.mrf.mxu0  ;;  %v3142_v33 = vpop.f32.mrf.mxu1 }
 0x14b   : > { %v2823_v34 = vadd.f32 %v8553_v7, %v2822_v32  ;;  %v3143_v35 = vadd.f32 %v8553_v7, %v3142_v33  ;;  %v7840_v32 = vld [vmem:[%s8217_s29 + $0x2a8] sm:$0xff] }
 0x14c   : > { %v4323_v36 = vmax.f32 %v3461_v30, 0.0  ;;  %v4451_v37 = vmax.f32 %v3781_v31, 0.0  ;;  %v7776_v31 = vld [vmem:[%s8217_s29 + $0xa8] sm:$0xff] }
 0x14d   : > { %v4068_v38 = vmax.f32 %v2823_v34, 0.0  ;;  %v4196_v39 = vmax.f32 %v3143_v35, 0.0 }
 0x14e   : > { %v5132_v40 = vsel %vm1987_vm0, %v4323_v36, 0.0  ;;  %v5398_v41 = vsel %vm1987_vm0, %v4451_v37, 0.0  ;;  %v7904_v37 = vld [vmem:[%s8217_s29 + $0x4a8] sm:$0xff] }
 0x14f   : > { %v5133_v42 = vadd.f32 %v5132_v40, %v5131_v22  ;;  %v5399_v43 = vadd.f32 %v5398_v41, %v5397_v23  ;;  %v4602_v45 = vsel %vm1987_vm0, %v4068_v38, 0.0  ;;  %v4868_v46 = vsel %vm1987_vm0, %v4196_v39, 0.0  ;;  %v7968_v38 = vld [vmem:[%s8217_s29 + $0x6a8] sm:$0xff] }
 0x150   : > { %v4603_v47 = vadd.f32 %v4602_v45, %v4601_v26  ;;  %v4869_v48 = vadd.f32 %v4868_v46, %v4867_v27 }
 0x151   : > { %v3462_v49 = vpop.f32.mrf.mxu2  ;;  %v3782_v50 = vpop.f32.mrf.mxu3 }
 0x152   : > { %v3463_v53 = vadd.f32 %v8553_v7, %v3462_v49  ;;  %v3783_v54 = vadd.f32 %v8553_v7, %v3782_v50  ;;  %v2825_v55 = vpop.f32.mrf.mxu0  ;;  %v3145_v56 = vpop.f32.mrf.mxu1 }
 0x153   : > { %v2826_v59 = vadd.f32 %v8553_v7, %v2825_v55  ;;  %v3146_v60 = vadd.f32 %v8553_v7, %v3145_v56 }
 0x154   : > { %v4324_v61 = vmax.f32 %v3463_v53, 0.0  ;;  %v4452_v62 = vmax.f32 %v3783_v54, 0.0 }
 0x155   : > { %v4069_v63 = vmax.f32 %v2826_v59, 0.0  ;;  %v4197_v0 = vmax.f32 %v3146_v60, 0.0  ;;  %7494 = vmatmul.msk.bf16.gmra.mxu0 %vm1987_vm0, %v7775_v51  ;;  %7558 = vmatmul.msk.bf16.gmra.mxu1 %vm1987_vm0, %v7839_v52 }
 0x156   : > { %v5134_v1 = vsel %vm1987_vm0, %v4324_v61, 0.0  ;;  %v5400_v2 = vsel %vm1987_vm0, %v4452_v62, 0.0  ;;  %7622 = vmatmul.msk.bf16.gmra.mxu2 %vm1987_vm0, %v7903_v57  ;;  %7686 = vmatmul.msk.bf16.gmra.mxu3 %vm1987_vm0, %v7967_v58 }
 0x157   : > { %v5135_v3 = vadd.f32 %v5134_v1, %v5133_v42  ;;  %v5401_v44 = vadd.f32 %v5400_v2, %v5399_v43  ;;  %v4604_v4 = vsel %vm1987_vm0, %v4069_v63, 0.0  ;;  %v4870_v5 = vsel %vm1987_vm0, %v4197_v0, 0.0 }
 0x158   : > { %v4605_v6 = vadd.f32 %v4604_v4, %v4603_v47  ;;  %v4871_v8 = vadd.f32 %v4870_v5, %v4869_v48 }
 0x159   : > { %v3465_v9 = vpop.f32.mrf.mxu2  ;;  %v3785_v10 = vpop.f32.mrf.mxu3 }
 0x15a   : > { %v3466_v11 = vadd.f32 %v8553_v7, %v3465_v9  ;;  %v3786_v12 = vadd.f32 %v8553_v7, %v3785_v10  ;;  %v2827_v13 = vpop.f32.mrf.mxu0  ;;  %v3147_v14 = vpop.f32.mrf.mxu1 }
 0x15b   : > { %v2828_v15 = vadd.f32 %v8553_v7, %v2827_v13  ;;  %v3148_v16 = vadd.f32 %v8553_v7, %v3147_v14  ;;  %v7841_v13 = vld [vmem:[%s8217_s29 + $0x2b0] sm:$0xff] }
 0x15c   : > { %v4325_v17 = vmax.f32 %v3466_v11, 0.0  ;;  %v4453_v18 = vmax.f32 %v3786_v12, 0.0  ;;  %v7777_v12 = vld [vmem:[%s8217_s29 + $0xb0] sm:$0xff] }
 0x15d   : > { %v4070_v19 = vmax.f32 %v2828_v15, 0.0  ;;  %v4198_v20 = vmax.f32 %v3148_v16, 0.0 }
 0x15e   : > { %v5136_v21 = vsel %vm1987_vm0, %v4325_v17, 0.0  ;;  %v5402_v22 = vsel %vm1987_vm0, %v4453_v18, 0.0  ;;  %v7905_v18 = vld [vmem:[%s8217_s29 + $0x4b0] sm:$0xff] }
 0x15f   : > { %v5137_v23 = vadd.f32 %v5136_v21, %v5135_v3  ;;  %v5403_v24 = vadd.f32 %v5402_v22, %v5401_v44  ;;  %v4606_v25 = vsel %vm1987_vm0, %v4070_v19, 0.0  ;;  %v4872_v26 = vsel %vm1987_vm0, %v4198_v20, 0.0  ;;  %v7969_v19 = vld [vmem:[%s8217_s29 + $0x6b0] sm:$0xff] }
 0x160   : > { %v4607_v27 = vadd.f32 %v4606_v25, %v4605_v6  ;;  %v4873_v28 = vadd.f32 %v4872_v26, %v4871_v8 }
 0x161   : > { %v3467_v29 = vpop.f32.mrf.mxu2  ;;  %v3787_v30 = vpop.f32.mrf.mxu3 }
 0x162   : > { %v3468_v33 = vadd.f32 %v8553_v7, %v3467_v29  ;;  %v3788_v34 = vadd.f32 %v8553_v7, %v3787_v30  ;;  %v2830_v35 = vpop.f32.mrf.mxu0  ;;  %v3150_v36 = vpop.f32.mrf.mxu1 }
 0x163   : > { %v2831_v39 = vadd.f32 %v8553_v7, %v2830_v35  ;;  %v3151_v40 = vadd.f32 %v8553_v7, %v3150_v36 }
 0x164   : > { %v4326_v41 = vmax.f32 %v3468_v33, 0.0  ;;  %v4454_v42 = vmax.f32 %v3788_v34, 0.0 }
 0x165   : > { %v4071_v43 = vmax.f32 %v2831_v39, 0.0  ;;  %v4199_v45 = vmax.f32 %v3151_v40, 0.0  ;;  %7495 = vmatmul.msk.bf16.gmra.mxu0 %vm1987_vm0, %v7776_v31  ;;  %7559 = vmatmul.msk.bf16.gmra.mxu1 %vm1987_vm0, %v7840_v32 }
 0x166   : > { %v5138_v46 = vsel %vm1987_vm0, %v4326_v41, 0.0  ;;  %v5404_v47 = vsel %vm1987_vm0, %v4454_v42, 0.0  ;;  %7623 = vmatmul.msk.bf16.gmra.mxu2 %vm1987_vm0, %v7904_v37  ;;  %7687 = vmatmul.msk.bf16.gmra.mxu3 %vm1987_vm0, %v7968_v38 }
 0x167   : > { %v5139_v48 = vadd.f32 %v5138_v46, %v5137_v23  ;;  %v5405_v49 = vadd.f32 %v5404_v47, %v5403_v24  ;;  %v4608_v50 = vsel %vm1987_vm0, %v4071_v43, 0.0  ;;  %v4874_v51 = vsel %vm1987_vm0, %v4199_v45, 0.0 }
 0x168   : > { %v4609_v52 = vadd.f32 %v4608_v50, %v4607_v27  ;;  %v4875_v53 = vadd.f32 %v4874_v51, %v4873_v28 }
 0x169   : > { %v3470_v54 = vpop.f32.mrf.mxu2  ;;  %v3790_v55 = vpop.f32.mrf.mxu3 }
 0x16a   : > { %v3471_v56 = vadd.f32 %v8553_v7, %v3470_v54  ;;  %v3791_v57 = vadd.f32 %v8553_v7, %v3790_v55  ;;  %v2832_v58 = vpop.f32.mrf.mxu0  ;;  %v3152_v59 = vpop.f32.mrf.mxu1 }
 0x16b   : > { %v2833_v60 = vadd.f32 %v8553_v7, %v2832_v58  ;;  %v3153_v61 = vadd.f32 %v8553_v7, %v3152_v59  ;;  %v7842_v58 = vld [vmem:[%s8217_s29 + $0x2b8] sm:$0xff] }
 0x16c   : > { %v4327_v62 = vmax.f32 %v3471_v56, 0.0  ;;  %v4455_v63 = vmax.f32 %v3791_v57, 0.0  ;;  %v7778_v57 = vld [vmem:[%s8217_s29 + $0xb8] sm:$0xff] }
 0x16d   : > { %v4072_v0 = vmax.f32 %v2833_v60, 0.0  ;;  %v4200_v1 = vmax.f32 %v3153_v61, 0.0 }
 0x16e   : > { %v5140_v2 = vsel %vm1987_vm0, %v4327_v62, 0.0  ;;  %v5406_v3 = vsel %vm1987_vm0, %v4455_v63, 0.0  ;;  %v7906_v63 = vld [vmem:[%s8217_s29 + $0x4b8] sm:$0xff] }
 0x16f   : > { %v5141_v44 = vadd.f32 %v5140_v2, %v5139_v48  ;;  %v5407_v4 = vadd.f32 %v5406_v3, %v5405_v49  ;;  %v4610_v5 = vsel %vm1987_vm0, %v4072_v0, 0.0  ;;  %v4876_v6 = vsel %vm1987_vm0, %v4200_v1, 0.0  ;;  %v7970_v0 = vld [vmem:[%s8217_s29 + $0x6b8] sm:$0xff] }
 0x170   : > { %v4611_v8 = vadd.f32 %v4610_v5, %v4609_v52  ;;  %v4877_v9 = vadd.f32 %v4876_v6, %v4875_v53 }
 0x171   : > { %v3472_v10 = vpop.f32.mrf.mxu2  ;;  %v3792_v11 = vpop.f32.mrf.mxu3 }
 0x172   : > { %v3473_v14 = vadd.f32 %v8553_v7, %v3472_v10  ;;  %v3793_v15 = vadd.f32 %v8553_v7, %v3792_v11  ;;  %v2835_v16 = vpop.f32.mrf.mxu0  ;;  %v3155_v17 = vpop.f32.mrf.mxu1 }
 0x173   : > { %v2836_v20 = vadd.f32 %v8553_v7, %v2835_v16  ;;  %v3156_v21 = vadd.f32 %v8553_v7, %v3155_v17 }
 0x174   : > { %v4328_v22 = vmax.f32 %v3473_v14, 0.0  ;;  %v4456_v23 = vmax.f32 %v3793_v15, 0.0 }
 0x175   : > { %v4073_v24 = vmax.f32 %v2836_v20, 0.0  ;;  %v4201_v25 = vmax.f32 %v3156_v21, 0.0  ;;  %7496 = vmatmul.msk.bf16.gmra.mxu0 %vm1987_vm0, %v7777_v12  ;;  %7560 = vmatmul.msk.bf16.gmra.mxu1 %vm1987_vm0, %v7841_v13 }
 0x176   : > { %v5142_v26 = vsel %vm1987_vm0, %v4328_v22, 0.0  ;;  %v5408_v27 = vsel %vm1987_vm0, %v4456_v23, 0.0  ;;  %7624 = vmatmul.msk.bf16.gmra.mxu2 %vm1987_vm0, %v7905_v18  ;;  %7688 = vmatmul.msk.bf16.gmra.mxu3 %vm1987_vm0, %v7969_v19 }
 0x177   : > { %v5143_v28 = vadd.f32 %v5142_v26, %v5141_v44  ;;  %v5409_v29 = vadd.f32 %v5408_v27, %v5407_v4  ;;  %v4612_v30 = vsel %vm1987_vm0, %v4073_v24, 0.0  ;;  %v4878_v31 = vsel %vm1987_vm0, %v4201_v25, 0.0 }
 0x178   : > { %v4613_v32 = vadd.f32 %v4612_v30, %v4611_v8  ;;  %v4879_v33 = vadd.f32 %v4878_v31, %v4877_v9 }
 0x179   : > { %v3475_v34 = vpop.f32.mrf.mxu2  ;;  %v3795_v35 = vpop.f32.mrf.mxu3 }
 0x17a   : > { %v3476_v36 = vadd.f32 %v8553_v7, %v3475_v34  ;;  %v3796_v37 = vadd.f32 %v8553_v7, %v3795_v35  ;;  %v2837_v38 = vpop.f32.mrf.mxu0  ;;  %v3157_v39 = vpop.f32.mrf.mxu1 }
 0x17b   : > { %v2838_v40 = vadd.f32 %v8553_v7, %v2837_v38  ;;  %v3158_v41 = vadd.f32 %v8553_v7, %v3157_v39  ;;  %v7843_v38 = vld [vmem:[%s8217_s29 + $0x2c0] sm:$0xff] }
 0x17c   : > { %v4329_v42 = vmax.f32 %v3476_v36, 0.0  ;;  %v4457_v43 = vmax.f32 %v3796_v37, 0.0  ;;  %v7779_v37 = vld [vmem:[%s8217_s29 + $0xc0] sm:$0xff] }
 0x17d   : > { %v4074_v45 = vmax.f32 %v2838_v40, 0.0  ;;  %v4202_v46 = vmax.f32 %v3158_v41, 0.0 }
 0x17e   : > { %v5144_v47 = vsel %vm1987_vm0, %v4329_v42, 0.0  ;;  %v5410_v48 = vsel %vm1987_vm0, %v4457_v43, 0.0  ;;  %v7907_v43 = vld [vmem:[%s8217_s29 + $0x4c0] sm:$0xff] }
 0x17f   : > { %v5145_v49 = vadd.f32 %v5144_v47, %v5143_v28  ;;  %v5411_v50 = vadd.f32 %v5410_v48, %v5409_v29  ;;  %v4614_v51 = vsel %vm1987_vm0, %v4074_v45, 0.0  ;;  %v4880_v52 = vsel %vm1987_vm0, %v4202_v46, 0.0  ;;  %v7971_v45 = vld [vmem:[%s8217_s29 + $0x6c0] sm:$0xff] }
 0x180   : > { %v4615_v53 = vadd.f32 %v4614_v51, %v4613_v32  ;;  %v4881_v54 = vadd.f32 %v4880_v52, %v4879_v33 }
 0x181   : > { %v3477_v55 = vpop.f32.mrf.mxu2  ;;  %v3797_v56 = vpop.f32.mrf.mxu3 }
 0x182   : > { %v3478_v59 = vadd.f32 %v8553_v7, %v3477_v55  ;;  %v3798_v60 = vadd.f32 %v8553_v7, %v3797_v56  ;;  %v2840_v61 = vpop.f32.mrf.mxu0  ;;  %v3160_v62 = vpop.f32.mrf.mxu1 }
 0x183   : > { %v2841_v1 = vadd.f32 %v8553_v7, %v2840_v61  ;;  %v3161_v2 = vadd.f32 %v8553_v7, %v3160_v62 }
 0x184   : > { %v4330_v3 = vmax.f32 %v3478_v59, 0.0  ;;  %v4458_v44 = vmax.f32 %v3798_v60, 0.0 }
 0x185   : > { %v4075_v4 = vmax.f32 %v2841_v1, 0.0  ;;  %v4203_v5 = vmax.f32 %v3161_v2, 0.0  ;;  %7497 = vmatmul.msk.bf16.gmra.mxu0 %vm1987_vm0, %v7778_v57  ;;  %7561 = vmatmul.msk.bf16.gmra.mxu1 %vm1987_vm0, %v7842_v58 }
 0x186   : > { %v5146_v6 = vsel %vm1987_vm0, %v4330_v3, 0.0  ;;  %v5412_v8 = vsel %vm1987_vm0, %v4458_v44, 0.0  ;;  %7625 = vmatmul.msk.bf16.gmra.mxu2 %vm1987_vm0, %v7906_v63  ;;  %7689 = vmatmul.msk.bf16.gmra.mxu3 %vm1987_vm0, %v7970_v0 }
 0x187   : > { %v5147_v9 = vadd.f32 %v5146_v6, %v5145_v49  ;;  %v5413_v10 = vadd.f32 %v5412_v8, %v5411_v50  ;;  %v4616_v11 = vsel %vm1987_vm0, %v4075_v4, 0.0  ;;  %v4882_v12 = vsel %vm1987_vm0, %v4203_v5, 0.0 }
 0x188   : > { %v4617_v13 = vadd.f32 %v4616_v11, %v4615_v53  ;;  %v4883_v14 = vadd.f32 %v4882_v12, %v4881_v54 }
 0x189   : > { %v3480_v15 = vpop.f32.mrf.mxu2  ;;  %v3800_v16 = vpop.f32.mrf.mxu3 }
 0x18a   : > { %v3481_v17 = vadd.f32 %v8553_v7, %v3480_v15  ;;  %v3801_v18 = vadd.f32 %v8553_v7, %v3800_v16  ;;  %v2842_v19 = vpop.f32.mrf.mxu0  ;;  %v3162_v20 = vpop.f32.mrf.mxu1 }
 0x18b   : > { %v2843_v21 = vadd.f32 %v8553_v7, %v2842_v19  ;;  %v3163_v22 = vadd.f32 %v8553_v7, %v3162_v20  ;;  %v7844_v19 = vld [vmem:[%s8217_s29 + $0x2c8] sm:$0xff] }
 0x18c   : > { %v4331_v23 = vmax.f32 %v3481_v17, 0.0  ;;  %v4459_v24 = vmax.f32 %v3801_v18, 0.0  ;;  %v7780_v18 = vld [vmem:[%s8217_s29 + $0xc8] sm:$0xff] }
 0x18d   : > { %v4076_v25 = vmax.f32 %v2843_v21, 0.0  ;;  %v4204_v26 = vmax.f32 %v3163_v22, 0.0 }
 0x18e   : > { %v5148_v27 = vsel %vm1987_vm0, %v4331_v23, 0.0  ;;  %v5414_v28 = vsel %vm1987_vm0, %v4459_v24, 0.0  ;;  %v7908_v24 = vld [vmem:[%s8217_s29 + $0x4c8] sm:$0xff] }
 0x18f   : > { %v5149_v29 = vadd.f32 %v5148_v27, %v5147_v9  ;;  %v5415_v30 = vadd.f32 %v5414_v28, %v5413_v10  ;;  %v4618_v31 = vsel %vm1987_vm0, %v4076_v25, 0.0  ;;  %v4884_v32 = vsel %vm1987_vm0, %v4204_v26, 0.0  ;;  %v7972_v25 = vld [vmem:[%s8217_s29 + $0x6c8] sm:$0xff] }
 0x190   : > { %v4619_v33 = vadd.f32 %v4618_v31, %v4617_v13  ;;  %v4885_v34 = vadd.f32 %v4884_v32, %v4883_v14 }
 0x191   : > { %v3482_v35 = vpop.f32.mrf.mxu2  ;;  %v3802_v36 = vpop.f32.mrf.mxu3 }
 0x192   : > { %v3483_v39 = vadd.f32 %v8553_v7, %v3482_v35  ;;  %v3803_v40 = vadd.f32 %v8553_v7, %v3802_v36  ;;  %v2845_v41 = vpop.f32.mrf.mxu0  ;;  %v3165_v42 = vpop.f32.mrf.mxu1 }
 0x193   : > { %v2846_v46 = vadd.f32 %v8553_v7, %v2845_v41  ;;  %v3166_v47 = vadd.f32 %v8553_v7, %v3165_v42 }
 0x194   : > { %v4332_v48 = vmax.f32 %v3483_v39, 0.0  ;;  %v4460_v49 = vmax.f32 %v3803_v40, 0.0 }
 0x195   : > { %v4077_v50 = vmax.f32 %v2846_v46, 0.0  ;;  %v4205_v51 = vmax.f32 %v3166_v47, 0.0  ;;  %7498 = vmatmul.msk.bf16.gmra.mxu0 %vm1987_vm0, %v7779_v37  ;;  %7562 = vmatmul.msk.bf16.gmra.mxu1 %vm1987_vm0, %v7843_v38 }
 0x196   : > { %v5150_v52 = vsel %vm1987_vm0, %v4332_v48, 0.0  ;;  %v5416_v53 = vsel %vm1987_vm0, %v4460_v49, 0.0  ;;  %7626 = vmatmul.msk.bf16.gmra.mxu2 %vm1987_vm0, %v7907_v43  ;;  %7690 = vmatmul.msk.bf16.gmra.mxu3 %vm1987_vm0, %v7971_v45 }
 0x197   : > { %v5151_v54 = vadd.f32 %v5150_v52, %v5149_v29  ;;  %v5417_v55 = vadd.f32 %v5416_v53, %v5415_v30  ;;  %v4620_v56 = vsel %vm1987_vm0, %v4077_v50, 0.0  ;;  %v4886_v57 = vsel %vm1987_vm0, %v4205_v51, 0.0 }
 0x198   : > { %v4621_v58 = vadd.f32 %v4620_v56, %v4619_v33  ;;  %v4887_v59 = vadd.f32 %v4886_v57, %v4885_v34 }
 0x199   : > { %v3485_v60 = vpop.f32.mrf.mxu2  ;;  %v3805_v61 = vpop.f32.mrf.mxu3 }
 0x19a   : > { %v3486_v62 = vadd.f32 %v8553_v7, %v3485_v60  ;;  %v3806_v63 = vadd.f32 %v8553_v7, %v3805_v61  ;;  %v2847_v0 = vpop.f32.mrf.mxu0  ;;  %v3167_v1 = vpop.f32.mrf.mxu1 }
 0x19b   : > { %v2848_v2 = vadd.f32 %v8553_v7, %v2847_v0  ;;  %v3168_v3 = vadd.f32 %v8553_v7, %v3167_v1  ;;  %v7845_v0 = vld [vmem:[%s8217_s29 + $0x2d0] sm:$0xff] }
 0x19c   : > { %v4333_v44 = vmax.f32 %v3486_v62, 0.0  ;;  %v4461_v4 = vmax.f32 %v3806_v63, 0.0  ;;  %v7781_v63 = vld [vmem:[%s8217_s29 + $0xd0] sm:$0xff] }
 0x19d   : > { %v4078_v5 = vmax.f32 %v2848_v2, 0.0  ;;  %v4206_v6 = vmax.f32 %v3168_v3, 0.0 }
 0x19e   : > { %v5152_v8 = vsel %vm1987_vm0, %v4333_v44, 0.0  ;;  %v5418_v9 = vsel %vm1987_vm0, %v4461_v4, 0.0  ;;  %v7909_v4 = vld [vmem:[%s8217_s29 + $0x4d0] sm:$0xff] }
 0x19f   : > { %v5153_v10 = vadd.f32 %v5152_v8, %v5151_v54  ;;  %v5419_v11 = vadd.f32 %v5418_v9, %v5417_v55  ;;  %v4622_v12 = vsel %vm1987_vm0, %v4078_v5, 0.0  ;;  %v4888_v13 = vsel %vm1987_vm0, %v4206_v6, 0.0  ;;  %v7973_v5 = vld [vmem:[%s8217_s29 + $0x6d0] sm:$0xff] }
 0x1a0   : > { %v4623_v14 = vadd.f32 %v4622_v12, %v4621_v58  ;;  %v4889_v15 = vadd.f32 %v4888_v13, %v4887_v59 }
 0x1a1   : > { %v3487_v16 = vpop.f32.mrf.mxu2  ;;  %v3807_v17 = vpop.f32.mrf.mxu3 }
 0x1a2   : > { %v3488_v20 = vadd.f32 %v8553_v7, %v3487_v16  ;;  %v3808_v21 = vadd.f32 %v8553_v7, %v3807_v17  ;;  %v2850_v22 = vpop.f32.mrf.mxu0  ;;  %v3170_v23 = vpop.f32.mrf.mxu1 }
 0x1a3   : > { %v2851_v26 = vadd.f32 %v8553_v7, %v2850_v22  ;;  %v3171_v27 = vadd.f32 %v8553_v7, %v3170_v23 }
 0x1a4   : > { %v4334_v28 = vmax.f32 %v3488_v20, 0.0  ;;  %v4462_v29 = vmax.f32 %v3808_v21, 0.0 }
 0x1a5   : > { %v4079_v30 = vmax.f32 %v2851_v26, 0.0  ;;  %v4207_v31 = vmax.f32 %v3171_v27, 0.0  ;;  %7499 = vmatmul.msk.bf16.gmra.mxu0 %vm1987_vm0, %v7780_v18  ;;  %7563 = vmatmul.msk.bf16.gmra.mxu1 %vm1987_vm0, %v7844_v19 }
 0x1a6   : > { %v5154_v32 = vsel %vm1987_vm0, %v4334_v28, 0.0  ;;  %v5420_v33 = vsel %vm1987_vm0, %v4462_v29, 0.0  ;;  %7627 = vmatmul.msk.bf16.gmra.mxu2 %vm1987_vm0, %v7908_v24  ;;  %7691 = vmatmul.msk.bf16.gmra.mxu3 %vm1987_vm0, %v7972_v25 }
 0x1a7   : > { %v5155_v34 = vadd.f32 %v5154_v32, %v5153_v10  ;;  %v5421_v35 = vadd.f32 %v5420_v33, %v5419_v11  ;;  %v4624_v36 = vsel %vm1987_vm0, %v4079_v30, 0.0  ;;  %v4890_v37 = vsel %vm1987_vm0, %v4207_v31, 0.0 }
 0x1a8   : > { %v4625_v38 = vadd.f32 %v4624_v36, %v4623_v14  ;;  %v4891_v39 = vadd.f32 %v4890_v37, %v4889_v15 }
 0x1a9   : > { %v3490_v40 = vpop.f32.mrf.mxu2  ;;  %v3810_v41 = vpop.f32.mrf.mxu3 }
 0x1aa   : > { %v3491_v42 = vadd.f32 %v8553_v7, %v3490_v40  ;;  %v3811_v43 = vadd.f32 %v8553_v7, %v3810_v41  ;;  %v2852_v45 = vpop.f32.mrf.mxu0  ;;  %v3172_v46 = vpop.f32.mrf.mxu1 }
 0x1ab   : > { %v2853_v47 = vadd.f32 %v8553_v7, %v2852_v45  ;;  %v3173_v48 = vadd.f32 %v8553_v7, %v3172_v46  ;;  %v7846_v45 = vld [vmem:[%s8217_s29 + $0x2d8] sm:$0xff] }
 0x1ac   : > { %v4335_v49 = vmax.f32 %v3491_v42, 0.0  ;;  %v4463_v50 = vmax.f32 %v3811_v43, 0.0  ;;  %v7782_v43 = vld [vmem:[%s8217_s29 + $0xd8] sm:$0xff] }
 0x1ad   : > { %v4080_v51 = vmax.f32 %v2853_v47, 0.0  ;;  %v4208_v52 = vmax.f32 %v3173_v48, 0.0 }
 0x1ae   : > { %v5156_v53 = vsel %vm1987_vm0, %v4335_v49, 0.0  ;;  %v5422_v54 = vsel %vm1987_vm0, %v4463_v50, 0.0  ;;  %v7910_v50 = vld [vmem:[%s8217_s29 + $0x4d8] sm:$0xff] }
 0x1af   : > { %v5157_v55 = vadd.f32 %v5156_v53, %v5155_v34  ;;  %v5423_v56 = vadd.f32 %v5422_v54, %v5421_v35  ;;  %v4626_v57 = vsel %vm1987_vm0, %v4080_v51, 0.0  ;;  %v4892_v58 = vsel %vm1987_vm0, %v4208_v52, 0.0  ;;  %v7974_v51 = vld [vmem:[%s8217_s29 + $0x6d8] sm:$0xff] }
 0x1b0   : > { %v4627_v59 = vadd.f32 %v4626_v57, %v4625_v38  ;;  %v4893_v60 = vadd.f32 %v4892_v58, %v4891_v39 }
 0x1b1   : > { %v3492_v61 = vpop.f32.mrf.mxu2  ;;  %v3812_v62 = vpop.f32.mrf.mxu3 }
 0x1b2   : > { %v3493_v1 = vadd.f32 %v8553_v7, %v3492_v61  ;;  %v3813_v2 = vadd.f32 %v8553_v7, %v3812_v62  ;;  %v2855_v3 = vpop.f32.mrf.mxu0  ;;  %v3175_v44 = vpop.f32.mrf.mxu1 }
 0x1b3   : > { %v2856_v6 = vadd.f32 %v8553_v7, %v2855_v3  ;;  %v3176_v8 = vadd.f32 %v8553_v7, %v3175_v44 }
 0x1b4   : > { %v4336_v9 = vmax.f32 %v3493_v1, 0.0  ;;  %v4464_v10 = vmax.f32 %v3813_v2, 0.0 }
 0x1b5   : > { %v4081_v11 = vmax.f32 %v2856_v6, 0.0  ;;  %v4209_v12 = vmax.f32 %v3176_v8, 0.0  ;;  %7500 = vmatmul.msk.bf16.gmra.mxu0 %vm1987_vm0, %v7781_v63  ;;  %7564 = vmatmul.msk.bf16.gmra.mxu1 %vm1987_vm0, %v7845_v0 }
 0x1b6   : > { %v5158_v13 = vsel %vm1987_vm0, %v4336_v9, 0.0  ;;  %v5424_v14 = vsel %vm1987_vm0, %v4464_v10, 0.0  ;;  %7628 = vmatmul.msk.bf16.gmra.mxu2 %vm1987_vm0, %v7909_v4  ;;  %7692 = vmatmul.msk.bf16.gmra.mxu3 %vm1987_vm0, %v7973_v5 }
 0x1b7   : > { %v5159_v15 = vadd.f32 %v5158_v13, %v5157_v55  ;;  %v5425_v16 = vadd.f32 %v5424_v14, %v5423_v56  ;;  %v4628_v17 = vsel %vm1987_vm0, %v4081_v11, 0.0  ;;  %v4894_v18 = vsel %vm1987_vm0, %v4209_v12, 0.0 }
 0x1b8   : > { %v4629_v19 = vadd.f32 %v4628_v17, %v4627_v59  ;;  %v4895_v20 = vadd.f32 %v4894_v18, %v4893_v60 }
 0x1b9   : > { %v3495_v21 = vpop.f32.mrf.mxu2  ;;  %v3815_v22 = vpop.f32.mrf.mxu3 }
 0x1ba   : > { %v3496_v23 = vadd.f32 %v8553_v7, %v3495_v21  ;;  %v3816_v24 = vadd.f32 %v8553_v7, %v3815_v22  ;;  %v2857_v25 = vpop.f32.mrf.mxu0  ;;  %v3177_v26 = vpop.f32.mrf.mxu1 }
 0x1bb   : > { %v2858_v27 = vadd.f32 %v8553_v7, %v2857_v25  ;;  %v3178_v28 = vadd.f32 %v8553_v7, %v3177_v26  ;;  %v7847_v25 = vld [vmem:[%s8217_s29 + $0x2e0] sm:$0xff] }
 0x1bc   : > { %v4337_v29 = vmax.f32 %v3496_v23, 0.0  ;;  %v4465_v30 = vmax.f32 %v3816_v24, 0.0  ;;  %v7783_v24 = vld [vmem:[%s8217_s29 + $0xe0] sm:$0xff] }
 0x1bd   : > { %v4082_v31 = vmax.f32 %v2858_v27, 0.0  ;;  %v4210_v32 = vmax.f32 %v3178_v28, 0.0 }
 0x1be   : > { %v5160_v33 = vsel %vm1987_vm0, %v4337_v29, 0.0  ;;  %v5426_v34 = vsel %vm1987_vm0, %v4465_v30, 0.0  ;;  %v7911_v30 = vld [vmem:[%s8217_s29 + $0x4e0] sm:$0xff] }
 0x1bf   : > { %v5161_v35 = vadd.f32 %v5160_v33, %v5159_v15  ;;  %v5427_v36 = vadd.f32 %v5426_v34, %v5425_v16  ;;  %v4630_v37 = vsel %vm1987_vm0, %v4082_v31, 0.0  ;;  %v4896_v38 = vsel %vm1987_vm0, %v4210_v32, 0.0  ;;  %v7975_v31 = vld [vmem:[%s8217_s29 + $0x6e0] sm:$0xff] }
 0x1c0   : > { %v4631_v39 = vadd.f32 %v4630_v37, %v4629_v19  ;;  %v4897_v40 = vadd.f32 %v4896_v38, %v4895_v20 }
 0x1c1   : > { %v3497_v41 = vpop.f32.mrf.mxu2  ;;  %v3817_v42 = vpop.f32.mrf.mxu3 }
 0x1c2   : > { %v3498_v46 = vadd.f32 %v8553_v7, %v3497_v41  ;;  %v3818_v47 = vadd.f32 %v8553_v7, %v3817_v42  ;;  %v2860_v48 = vpop.f32.mrf.mxu0  ;;  %v3180_v49 = vpop.f32.mrf.mxu1 }
 0x1c3   : > { %v2861_v52 = vadd.f32 %v8553_v7, %v2860_v48  ;;  %v3181_v53 = vadd.f32 %v8553_v7, %v3180_v49 }
 0x1c4   : > { %v4338_v54 = vmax.f32 %v3498_v46, 0.0  ;;  %v4466_v55 = vmax.f32 %v3818_v47, 0.0 }
 0x1c5   : > { %v4083_v56 = vmax.f32 %v2861_v52, 0.0  ;;  %v4211_v57 = vmax.f32 %v3181_v53, 0.0  ;;  %7501 = vmatmul.msk.bf16.gmra.mxu0 %vm1987_vm0, %v7782_v43  ;;  %7565 = vmatmul.msk.bf16.gmra.mxu1 %vm1987_vm0, %v7846_v45 }
 0x1c6   : > { %v5162_v58 = vsel %vm1987_vm0, %v4338_v54, 0.0  ;;  %v5428_v59 = vsel %vm1987_vm0, %v4466_v55, 0.0  ;;  %7629 = vmatmul.msk.bf16.gmra.mxu2 %vm1987_vm0, %v7910_v50  ;;  %7693 = vmatmul.msk.bf16.gmra.mxu3 %vm1987_vm0, %v7974_v51 }
 0x1c7   : > { %v5163_v60 = vadd.f32 %v5162_v58, %v5161_v35  ;;  %v5429_v61 = vadd.f32 %v5428_v59, %v5427_v36  ;;  %v4632_v62 = vsel %vm1987_vm0, %v4083_v56, 0.0  ;;  %v4898_v63 = vsel %vm1987_vm0, %v4211_v57, 0.0 }
 0x1c8   : > { %v4633_v0 = vadd.f32 %v4632_v62, %v4631_v39  ;;  %v4899_v1 = vadd.f32 %v4898_v63, %v4897_v40 }
 0x1c9   : > { %v3500_v2 = vpop.f32.mrf.mxu2  ;;  %v3820_v3 = vpop.f32.mrf.mxu3 }
 0x1ca   : > { %v3501_v44 = vadd.f32 %v8553_v7, %v3500_v2  ;;  %v3821_v4 = vadd.f32 %v8553_v7, %v3820_v3  ;;  %v2862_v5 = vpop.f32.mrf.mxu0  ;;  %v3182_v6 = vpop.f32.mrf.mxu1 }
 0x1cb   : > { %v2863_v8 = vadd.f32 %v8553_v7, %v2862_v5  ;;  %v3183_v9 = vadd.f32 %v8553_v7, %v3182_v6  ;;  %v7848_v5 = vld [vmem:[%s8217_s29 + $0x2e8] sm:$0xff] }
 0x1cc   : > { %v4339_v10 = vmax.f32 %v3501_v44, 0.0  ;;  %v4467_v11 = vmax.f32 %v3821_v4, 0.0  ;;  %v7784_v4 = vld [vmem:[%s8217_s29 + $0xe8] sm:$0xff] }
 0x1cd   : > { %v4084_v12 = vmax.f32 %v2863_v8, 0.0  ;;  %v4212_v13 = vmax.f32 %v3183_v9, 0.0 }
 0x1ce   : > { %v5164_v14 = vsel %vm1987_vm0, %v4339_v10, 0.0  ;;  %v5430_v15 = vsel %vm1987_vm0, %v4467_v11, 0.0  ;;  %v7912_v11 = vld [vmem:[%s8217_s29 + $0x4e8] sm:$0xff] }
 0x1cf   : > { %v5165_v16 = vadd.f32 %v5164_v14, %v5163_v60  ;;  %v5431_v17 = vadd.f32 %v5430_v15, %v5429_v61  ;;  %v4634_v18 = vsel %vm1987_vm0, %v4084_v12, 0.0  ;;  %v4900_v19 = vsel %vm1987_vm0, %v4212_v13, 0.0  ;;  %v7976_v12 = vld [vmem:[%s8217_s29 + $0x6e8] sm:$0xff] }
 0x1d0   : > { %v4635_v20 = vadd.f32 %v4634_v18, %v4633_v0  ;;  %v4901_v21 = vadd.f32 %v4900_v19, %v4899_v1 }
 0x1d1   : > { %v3502_v22 = vpop.f32.mrf.mxu2  ;;  %v3822_v23 = vpop.f32.mrf.mxu3 }
 0x1d2   : > { %v3503_v26 = vadd.f32 %v8553_v7, %v3502_v22  ;;  %v3823_v27 = vadd.f32 %v8553_v7, %v3822_v23  ;;  %v2865_v28 = vpop.f32.mrf.mxu0  ;;  %v3185_v29 = vpop.f32.mrf.mxu1 }
 0x1d3   : > { %v2866_v32 = vadd.f32 %v8553_v7, %v2865_v28  ;;  %v3186_v33 = vadd.f32 %v8553_v7, %v3185_v29 }
 0x1d4   : > { %v4340_v34 = vmax.f32 %v3503_v26, 0.0  ;;  %v4468_v35 = vmax.f32 %v3823_v27, 0.0 }
 0x1d5   : > { %v4085_v36 = vmax.f32 %v2866_v32, 0.0  ;;  %v4213_v37 = vmax.f32 %v3186_v33, 0.0  ;;  %7502 = vmatmul.msk.bf16.gmra.mxu0 %vm1987_vm0, %v7783_v24  ;;  %7566 = vmatmul.msk.bf16.gmra.mxu1 %vm1987_vm0, %v7847_v25 }
 0x1d6   : > { %v5166_v38 = vsel %vm1987_vm0, %v4340_v34, 0.0  ;;  %v5432_v39 = vsel %vm1987_vm0, %v4468_v35, 0.0  ;;  %7630 = vmatmul.msk.bf16.gmra.mxu2 %vm1987_vm0, %v7911_v30  ;;  %7694 = vmatmul.msk.bf16.gmra.mxu3 %vm1987_vm0, %v7975_v31 }
 0x1d7   : > { %v5167_v40 = vadd.f32 %v5166_v38, %v5165_v16  ;;  %v5433_v41 = vadd.f32 %v5432_v39, %v5431_v17  ;;  %v4636_v42 = vsel %vm1987_vm0, %v4085_v36, 0.0  ;;  %v4902_v43 = vsel %vm1987_vm0, %v4213_v37, 0.0 }
 0x1d8   : > { %v4637_v45 = vadd.f32 %v4636_v42, %v4635_v20  ;;  %v4903_v46 = vadd.f32 %v4902_v43, %v4901_v21 }
 0x1d9   : > { %v3505_v47 = vpop.f32.mrf.mxu2  ;;  %v3825_v48 = vpop.f32.mrf.mxu3 }
 0x1da   : > { %v3506_v49 = vadd.f32 %v8553_v7, %v3505_v47  ;;  %v3826_v50 = vadd.f32 %v8553_v7, %v3825_v48  ;;  %v2867_v51 = vpop.f32.mrf.mxu0  ;;  %v3187_v52 = vpop.f32.mrf.mxu1 }
 0x1db   : > { %v2868_v53 = vadd.f32 %v8553_v7, %v2867_v51  ;;  %v3188_v54 = vadd.f32 %v8553_v7, %v3187_v52  ;;  %v8822_v51 = vld [vmem:[%s10199_s1 + $0x20] ss:$0 sm:$0xff] }
 0x1dc   : > { %v4341_v55 = vmax.f32 %v3506_v49, 0.0  ;;  %v4469_v56 = vmax.f32 %v3826_v50, 0.0  ;;  %v7785_v49 = vld [vmem:[%s8217_s29 + $0xf0] sm:$0xff] }
 0x1dd   : > { %v4086_v57 = vmax.f32 %v2868_v53, 0.0  ;;  %v4214_v58 = vmax.f32 %v3188_v54, 0.0  ;;  %v7849_v50 = vld [vmem:[%s8217_s29 + $0x2f0] sm:$0xff] }
 0x1de   : > { %v5168_v59 = vsel %vm1987_vm0, %v4341_v55, 0.0  ;;  %v5434_v60 = vsel %vm1987_vm0, %v4469_v56, 0.0  ;;  %v7913_v56 = vld [vmem:[%s8217_s29 + $0x4f0] sm:$0xff] }
 0x1df   : > { %v5169_v61 = vadd.f32 %v5168_v59, %v5167_v40  ;;  %v5435_v62 = vadd.f32 %v5434_v60, %v5433_v41  ;;  %v4638_v63 = vsel %vm1987_vm0, %v4086_v57, 0.0  ;;  %v4904_v0 = vsel %vm1987_vm0, %v4214_v58, 0.0  ;;  %v7977_v57 = vld [vmem:[%s8217_s29 + $0x6f0] sm:$0xff] }
 0x1e0   : > { %v4639_v1 = vadd.f32 %v4638_v63, %v4637_v45  ;;  %v4905_v2 = vadd.f32 %v4904_v0, %v4903_v46 }
 0x1e1   : > { %v3507_v3 = vpop.f32.mrf.mxu2  ;;  %v3827_v44 = vpop.f32.mrf.mxu3 }
 0x1e2   : > { %v3508_v6 = vadd.f32 %v8553_v7, %v3507_v3  ;;  %v3828_v8 = vadd.f32 %v8553_v7, %v3827_v44  ;;  %v2870_v9 = vpop.f32.mrf.mxu0  ;;  %v3190_v10 = vpop.f32.mrf.mxu1 }
 0x1e3   : > { %v2871_v13 = vadd.f32 %v8553_v7, %v2870_v9  ;;  %v3191_v14 = vadd.f32 %v8553_v7, %v3190_v10 }
 0x1e4   : > { %v4342_v15 = vmax.f32 %v3508_v6, 0.0  ;;  %v4470_v16 = vmax.f32 %v3828_v8, 0.0 }
 0x1e5   : > { %v4087_v17 = vmax.f32 %v2871_v13, 0.0  ;;  %v4215_v18 = vmax.f32 %v3191_v14, 0.0  ;;  %7503 = vmatmul.msk.bf16.gmra.mxu0 %vm1987_vm0, %v7784_v4  ;;  %7567 = vmatmul.msk.bf16.gmra.mxu1 %vm1987_vm0, %v7848_v5 }
 0x1e6   : > { %v5170_v19 = vsel %vm1987_vm0, %v4342_v15, 0.0  ;;  %v5436_v20 = vsel %vm1987_vm0, %v4470_v16, 0.0  ;;  %7631 = vmatmul.msk.bf16.gmra.mxu2 %vm1987_vm0, %v7912_v11  ;;  %7695 = vmatmul.msk.bf16.gmra.mxu3 %vm1987_vm0, %v7976_v12 }
 0x1e7   : > { %v5171_v21 = vadd.f32 %v5170_v19, %v5169_v61  ;;  %v5437_v22 = vadd.f32 %v5436_v20, %v5435_v62  ;;  %v4640_v23 = vsel %vm1987_vm0, %v4087_v17, 0.0  ;;  %v4906_v24 = vsel %vm1987_vm0, %v4215_v18, 0.0 }
 0x1e8   : > { %v4641_v25 = vadd.f32 %v4640_v23, %v4639_v1  ;;  %v4907_v26 = vadd.f32 %v4906_v24, %v4905_v2 }
 0x1e9   : > { %v3510_v27 = vpop.f32.mrf.mxu2  ;;  %v3830_v28 = vpop.f32.mrf.mxu3 }
 0x1ea   : > { %v3511_v29 = vadd.f32 %v8553_v7, %v3510_v27  ;;  %v3831_v30 = vadd.f32 %v8553_v7, %v3830_v28  ;;  %v2872_v31 = vpop.f32.mrf.mxu0  ;;  %v3192_v32 = vpop.f32.mrf.mxu1 }
 0x1eb   : > { %v2873_v33 = vadd.f32 %v8553_v7, %v2872_v31  ;;  %v3193_v34 = vadd.f32 %v8553_v7, %v3192_v32  ;;  %v7850_v31 = vld [vmem:[%s8217_s29 + $0x2f8] sm:$0xff] }
 0x1ec   : > { %v4343_v35 = vmax.f32 %v3511_v29, 0.0  ;;  %v4471_v36 = vmax.f32 %v3831_v30, 0.0  ;;  %v7786_v30 = vld [vmem:[%s8217_s29 + $0xf8] sm:$0xff] }
 0x1ed   : > { %v4088_v37 = vmax.f32 %v2873_v33, 0.0  ;;  %v4216_v38 = vmax.f32 %v3193_v34, 0.0 }
 0x1ee   : > { %v5172_v39 = vsel %vm1987_vm0, %v4343_v35, 0.0  ;;  %v5438_v40 = vsel %vm1987_vm0, %v4471_v36, 0.0  ;;  %v7914_v36 = vld [vmem:[%s8217_s29 + $0x4f8] sm:$0xff] }
 0x1ef   : > { %v5173_v41 = vadd.f32 %v5172_v39, %v5171_v21  ;;  %v5439_v42 = vadd.f32 %v5438_v40, %v5437_v22  ;;  %v4642_v43 = vsel %vm1987_vm0, %v4088_v37, 0.0  ;;  %v4908_v45 = vsel %vm1987_vm0, %v4216_v38, 0.0  ;;  %v7978_v37 = vld [vmem:[%s8217_s29 + $0x6f8] sm:$0xff] }
 0x1f0   : > { %v4643_v46 = vadd.f32 %v4642_v43, %v4641_v25  ;;  %v4909_v47 = vadd.f32 %v4908_v45, %v4907_v26 }
 0x1f1   : > { %v3512_v7 = vpop.f32.mrf.mxu2  ;;  %v3832_v48 = vpop.f32.mrf.mxu3 }
 0x1f2   : > { %v3513_v52 = vadd.f32 %v8822_v51, %v3512_v7  ;;  %v3833_v53 = vadd.f32 %v8822_v51, %v3832_v48  ;;  %v2875_v54 = vpop.f32.mrf.mxu0  ;;  %v3195_v55 = vpop.f32.mrf.mxu1 }
 0x1f3   : > { %v2876_v58 = vadd.f32 %v8822_v51, %v2875_v54  ;;  %v3196_v59 = vadd.f32 %v8822_v51, %v3195_v55 }
 0x1f4   : > { %v4344_v60 = vmax.f32 %v3513_v52, 0.0  ;;  %v4472_v61 = vmax.f32 %v3833_v53, 0.0 }
 0x1f5   : > { %v4089_v62 = vmax.f32 %v2876_v58, 0.0  ;;  %v4217_v63 = vmax.f32 %v3196_v59, 0.0  ;;  %7504 = vmatmul.msk.bf16.gmra.mxu0 %vm1987_vm0, %v7785_v49  ;;  %7568 = vmatmul.msk.bf16.gmra.mxu1 %vm1987_vm0, %v7849_v50 }
 0x1f6   : > { %v5174_v0 = vsel %vm1987_vm0, %v4344_v60, 0.0  ;;  %v5440_v1 = vsel %vm1987_vm0, %v4472_v61, 0.0  ;;  %7632 = vmatmul.msk.bf16.gmra.mxu2 %vm1987_vm0, %v7913_v56  ;;  %7696 = vmatmul.msk.bf16.gmra.mxu3 %vm1987_vm0, %v7977_v57 }
 0x1f7   : > { %v5175_v2 = vadd.f32 %v5174_v0, %v5173_v41  ;;  %v5441_v3 = vadd.f32 %v5440_v1, %v5439_v42  ;;  %v4644_v44 = vsel %vm1987_vm0, %v4089_v62, 0.0  ;;  %v4910_v4 = vsel %vm1987_vm0, %v4217_v63, 0.0 }
 0x1f8   : > { %v4645_v5 = vadd.f32 %v4644_v44, %v4643_v46  ;;  %v4911_v6 = vadd.f32 %v4910_v4, %v4909_v47 }
 0x1f9   : > { %v3515_v8 = vpop.f32.mrf.mxu2  ;;  %v3835_v9 = vpop.f32.mrf.mxu3 }
 0x1fa   : > { %v3516_v10 = vadd.f32 %v8822_v51, %v3515_v8  ;;  %v3836_v11 = vadd.f32 %v8822_v51, %v3835_v9  ;;  %v2877_v12 = vpop.f32.mrf.mxu0  ;;  %v3197_v13 = vpop.f32.mrf.mxu1 }
 0x1fb   : > { %v2878_v14 = vadd.f32 %v8822_v51, %v2877_v12  ;;  %v3198_v15 = vadd.f32 %v8822_v51, %v3197_v13  ;;  %v7851_v12 = vld [vmem:[%s8217_s29 + $0x300] sm:$0xff] }
 0x1fc   : > { %v4345_v16 = vmax.f32 %v3516_v10, 0.0  ;;  %v4473_v17 = vmax.f32 %v3836_v11, 0.0  ;;  %v7787_v11 = vld [vmem:[%s8217_s29 + $0x100] sm:$0xff] }
 0x1fd   : > { %v4090_v18 = vmax.f32 %v2878_v14, 0.0  ;;  %v4218_v19 = vmax.f32 %v3198_v15, 0.0 }
 0x1fe   : > { %v5176_v20 = vsel %vm1987_vm0, %v4345_v16, 0.0  ;;  %v5442_v21 = vsel %vm1987_vm0, %v4473_v17, 0.0  ;;  %v7915_v17 = vld [vmem:[%s8217_s29 + $0x500] sm:$0xff] }
 0x1ff   : > { %v5177_v22 = vadd.f32 %v5176_v20, %v5175_v2  ;;  %v5443_v23 = vadd.f32 %v5442_v21, %v5441_v3  ;;  %v4646_v24 = vsel %vm1987_vm0, %v4090_v18, 0.0  ;;  %v4912_v25 = vsel %vm1987_vm0, %v4218_v19, 0.0  ;;  %v7979_v18 = vld [vmem:[%s8217_s29 + $0x700] sm:$0xff] }
 0x200   : > { %v4647_v26 = vadd.f32 %v4646_v24, %v4645_v5  ;;  %v4913_v27 = vadd.f32 %v4912_v25, %v4911_v6 }
 0x201   : > { %v3517_v28 = vpop.f32.mrf.mxu2  ;;  %v3837_v29 = vpop.f32.mrf.mxu3 }
 0x202   : > { %v3518_v32 = vadd.f32 %v8822_v51, %v3517_v28  ;;  %v3838_v33 = vadd.f32 %v8822_v51, %v3837_v29  ;;  %v2880_v34 = vpop.f32.mrf.mxu0  ;;  %v3200_v35 = vpop.f32.mrf.mxu1 }
 0x203   : > { %v2881_v38 = vadd.f32 %v8822_v51, %v2880_v34  ;;  %v3201_v39 = vadd.f32 %v8822_v51, %v3200_v35 }
 0x204   : > { %v4346_v40 = vmax.f32 %v3518_v32, 0.0  ;;  %v4474_v41 = vmax.f32 %v3838_v33, 0.0 }
 0x205   : > { %v4091_v42 = vmax.f32 %v2881_v38, 0.0  ;;  %v4219_v43 = vmax.f32 %v3201_v39, 0.0  ;;  %7505 = vmatmul.msk.bf16.gmra.mxu0 %vm1987_vm0, %v7786_v30  ;;  %7569 = vmatmul.msk.bf16.gmra.mxu1 %vm1987_vm0, %v7850_v31 }
 0x206   : > { %v5178_v45 = vsel %vm1987_vm0, %v4346_v40, 0.0  ;;  %v5444_v46 = vsel %vm1987_vm0, %v4474_v41, 0.0  ;;  %7633 = vmatmul.msk.bf16.gmra.mxu2 %vm1987_vm0, %v7914_v36  ;;  %7697 = vmatmul.msk.bf16.gmra.mxu3 %vm1987_vm0, %v7978_v37 }
 0x207   : > { %v5179_v47 = vadd.f32 %v5178_v45, %v5177_v22  ;;  %v5445_v7 = vadd.f32 %v5444_v46, %v5443_v23  ;;  %v4648_v48 = vsel %vm1987_vm0, %v4091_v42, 0.0  ;;  %v4914_v49 = vsel %vm1987_vm0, %v4219_v43, 0.0 }
 0x208   : > { %v4649_v50 = vadd.f32 %v4648_v48, %v4647_v26  ;;  %v4915_v52 = vadd.f32 %v4914_v49, %v4913_v27 }
 0x209   : > { %v3520_v53 = vpop.f32.mrf.mxu2  ;;  %v3840_v54 = vpop.f32.mrf.mxu3 }
 0x20a   : > { %v3521_v55 = vadd.f32 %v8822_v51, %v3520_v53  ;;  %v3841_v56 = vadd.f32 %v8822_v51, %v3840_v54  ;;  %v2882_v57 = vpop.f32.mrf.mxu0  ;;  %v3202_v58 = vpop.f32.mrf.mxu1 }
 0x20b   : > { %v2883_v59 = vadd.f32 %v8822_v51, %v2882_v57  ;;  %v3203_v60 = vadd.f32 %v8822_v51, %v3202_v58  ;;  %v7852_v57 = vld [vmem:[%s8217_s29 + $0x308] sm:$0xff] }
 0x20c   : > { %v4347_v61 = vmax.f32 %v3521_v55, 0.0  ;;  %v4475_v62 = vmax.f32 %v3841_v56, 0.0  ;;  %v7788_v56 = vld [vmem:[%s8217_s29 + $0x108] sm:$0xff] }
 0x20d   : > { %v4092_v63 = vmax.f32 %v2883_v59, 0.0  ;;  %v4220_v0 = vmax.f32 %v3203_v60, 0.0 }
 0x20e   : > { %v5180_v1 = vsel %vm1987_vm0, %v4347_v61, 0.0  ;;  %v5446_v2 = vsel %vm1987_vm0, %v4475_v62, 0.0  ;;  %v7916_v62 = vld [vmem:[%s8217_s29 + $0x508] sm:$0xff] }
 0x20f   : > { %v5181_v3 = vadd.f32 %v5180_v1, %v5179_v47  ;;  %v5447_v44 = vadd.f32 %v5446_v2, %v5445_v7  ;;  %v4650_v4 = vsel %vm1987_vm0, %v4092_v63, 0.0  ;;  %v4916_v5 = vsel %vm1987_vm0, %v4220_v0, 0.0  ;;  %v7980_v63 = vld [vmem:[%s8217_s29 + $0x708] sm:$0xff] }
 0x210   : > { %v4651_v6 = vadd.f32 %v4650_v4, %v4649_v50  ;;  %v4917_v8 = vadd.f32 %v4916_v5, %v4915_v52 }
 0x211   : > { %v3522_v9 = vpop.f32.mrf.mxu2  ;;  %v3842_v10 = vpop.f32.mrf.mxu3 }
 0x212   : > { %v3523_v13 = vadd.f32 %v8822_v51, %v3522_v9  ;;  %v3843_v14 = vadd.f32 %v8822_v51, %v3842_v10  ;;  %v2885_v15 = vpop.f32.mrf.mxu0  ;;  %v3205_v16 = vpop.f32.mrf.mxu1 }
 0x213   : > { %v2886_v19 = vadd.f32 %v8822_v51, %v2885_v15  ;;  %v3206_v20 = vadd.f32 %v8822_v51, %v3205_v16 }
 0x214   : > { %v4348_v21 = vmax.f32 %v3523_v13, 0.0  ;;  %v4476_v22 = vmax.f32 %v3843_v14, 0.0 }
 0x215   : > { %v4093_v23 = vmax.f32 %v2886_v19, 0.0  ;;  %v4221_v24 = vmax.f32 %v3206_v20, 0.0  ;;  %7506 = vmatmul.msk.bf16.gmra.mxu0 %vm1987_vm0, %v7787_v11  ;;  %7570 = vmatmul.msk.bf16.gmra.mxu1 %vm1987_vm0, %v7851_v12 }
 0x216   : > { %v5182_v25 = vsel %vm1987_vm0, %v4348_v21, 0.0  ;;  %v5448_v26 = vsel %vm1987_vm0, %v4476_v22, 0.0  ;;  %7634 = vmatmul.msk.bf16.gmra.mxu2 %vm1987_vm0, %v7915_v17  ;;  %7698 = vmatmul.msk.bf16.gmra.mxu3 %vm1987_vm0, %v7979_v18 }
 0x217   : > { %v5183_v27 = vadd.f32 %v5182_v25, %v5181_v3  ;;  %v5449_v28 = vadd.f32 %v5448_v26, %v5447_v44  ;;  %v4652_v29 = vsel %vm1987_vm0, %v4093_v23, 0.0  ;;  %v4918_v30 = vsel %vm1987_vm0, %v4221_v24, 0.0 }
 0x218   : > { %v4653_v31 = vadd.f32 %v4652_v29, %v4651_v6  ;;  %v4919_v32 = vadd.f32 %v4918_v30, %v4917_v8 }
 0x219   : > { %v3525_v33 = vpop.f32.mrf.mxu2  ;;  %v3845_v34 = vpop.f32.mrf.mxu3 }
 0x21a   : > { %v3526_v35 = vadd.f32 %v8822_v51, %v3525_v33  ;;  %v3846_v36 = vadd.f32 %v8822_v51, %v3845_v34  ;;  %v2887_v37 = vpop.f32.mrf.mxu0  ;;  %v3207_v38 = vpop.f32.mrf.mxu1 }
 0x21b   : > { %v2888_v39 = vadd.f32 %v8822_v51, %v2887_v37  ;;  %v3208_v40 = vadd.f32 %v8822_v51, %v3207_v38  ;;  %v7853_v37 = vld [vmem:[%s8217_s29 + $0x310] sm:$0xff] }
 0x21c   : > { %v4349_v41 = vmax.f32 %v3526_v35, 0.0  ;;  %v4477_v42 = vmax.f32 %v3846_v36, 0.0  ;;  %v7789_v36 = vld [vmem:[%s8217_s29 + $0x110] sm:$0xff] }
 0x21d   : > { %v4094_v43 = vmax.f32 %v2888_v39, 0.0  ;;  %v4222_v45 = vmax.f32 %v3208_v40, 0.0 }
 0x21e   : > { %v5184_v46 = vsel %vm1987_vm0, %v4349_v41, 0.0  ;;  %v5450_v47 = vsel %vm1987_vm0, %v4477_v42, 0.0  ;;  %v7917_v42 = vld [vmem:[%s8217_s29 + $0x510] sm:$0xff] }
 0x21f   : > { %v5185_v7 = vadd.f32 %v5184_v46, %v5183_v27  ;;  %v5451_v48 = vadd.f32 %v5450_v47, %v5449_v28  ;;  %v4654_v49 = vsel %vm1987_vm0, %v4094_v43, 0.0  ;;  %v4920_v50 = vsel %vm1987_vm0, %v4222_v45, 0.0  ;;  %v7981_v43 = vld [vmem:[%s8217_s29 + $0x710] sm:$0xff] }
 0x220   : > { %v4655_v52 = vadd.f32 %v4654_v49, %v4653_v31  ;;  %v4921_v53 = vadd.f32 %v4920_v50, %v4919_v32 }
 0x221   : > { %v3527_v54 = vpop.f32.mrf.mxu2  ;;  %v3847_v55 = vpop.f32.mrf.mxu3 }
 0x222   : > { %v3528_v58 = vadd.f32 %v8822_v51, %v3527_v54  ;;  %v3848_v59 = vadd.f32 %v8822_v51, %v3847_v55  ;;  %v2890_v60 = vpop.f32.mrf.mxu0  ;;  %v3210_v61 = vpop.f32.mrf.mxu1 }
 0x223   : > { %v2891_v0 = vadd.f32 %v8822_v51, %v2890_v60  ;;  %v3211_v1 = vadd.f32 %v8822_v51, %v3210_v61 }
 0x224   : > { %v4350_v2 = vmax.f32 %v3528_v58, 0.0  ;;  %v4478_v3 = vmax.f32 %v3848_v59, 0.0 }
 0x225   : > { %v4095_v44 = vmax.f32 %v2891_v0, 0.0  ;;  %v4223_v4 = vmax.f32 %v3211_v1, 0.0  ;;  %7507 = vmatmul.msk.bf16.gmra.mxu0 %vm1987_vm0, %v7788_v56  ;;  %7571 = vmatmul.msk.bf16.gmra.mxu1 %vm1987_vm0, %v7852_v57 }
 0x226   : > { %v5186_v5 = vsel %vm1987_vm0, %v4350_v2, 0.0  ;;  %v5452_v6 = vsel %vm1987_vm0, %v4478_v3, 0.0  ;;  %7635 = vmatmul.msk.bf16.gmra.mxu2 %vm1987_vm0, %v7916_v62  ;;  %7699 = vmatmul.msk.bf16.gmra.mxu3 %vm1987_vm0, %v7980_v63 }
 0x227   : > { %v5187_v8 = vadd.f32 %v5186_v5, %v5185_v7  ;;  %v5453_v9 = vadd.f32 %v5452_v6, %v5451_v48  ;;  %v4656_v10 = vsel %vm1987_vm0, %v4095_v44, 0.0  ;;  %v4922_v11 = vsel %vm1987_vm0, %v4223_v4, 0.0 }
 0x228   : > { %v4657_v12 = vadd.f32 %v4656_v10, %v4655_v52  ;;  %v4923_v13 = vadd.f32 %v4922_v11, %v4921_v53 }
 0x229   : > { %v3530_v14 = vpop.f32.mrf.mxu2  ;;  %v3850_v15 = vpop.f32.mrf.mxu3 }
 0x22a   : > { %v3531_v16 = vadd.f32 %v8822_v51, %v3530_v14  ;;  %v3851_v17 = vadd.f32 %v8822_v51, %v3850_v15  ;;  %v2892_v18 = vpop.f32.mrf.mxu0  ;;  %v3212_v19 = vpop.f32.mrf.mxu1 }
 0x22b   : > { %v2893_v20 = vadd.f32 %v8822_v51, %v2892_v18  ;;  %v3213_v21 = vadd.f32 %v8822_v51, %v3212_v19  ;;  %v7854_v18 = vld [vmem:[%s8217_s29 + $0x318] sm:$0xff] }
 0x22c   : > { %v4351_v22 = vmax.f32 %v3531_v16, 0.0  ;;  %v4479_v23 = vmax.f32 %v3851_v17, 0.0  ;;  %v7790_v17 = vld [vmem:[%s8217_s29 + $0x118] sm:$0xff] }
 0x22d   : > { %v4096_v24 = vmax.f32 %v2893_v20, 0.0  ;;  %v4224_v25 = vmax.f32 %v3213_v21, 0.0 }
 0x22e   : > { %v5188_v26 = vsel %vm1987_vm0, %v4351_v22, 0.0  ;;  %v5454_v27 = vsel %vm1987_vm0, %v4479_v23, 0.0  ;;  %v7918_v23 = vld [vmem:[%s8217_s29 + $0x518] sm:$0xff] }
 0x22f   : > { %v5189_v28 = vadd.f32 %v5188_v26, %v5187_v8  ;;  %v5455_v29 = vadd.f32 %v5454_v27, %v5453_v9  ;;  %v4658_v30 = vsel %vm1987_vm0, %v4096_v24, 0.0  ;;  %v4924_v31 = vsel %vm1987_vm0, %v4224_v25, 0.0  ;;  %v7982_v24 = vld [vmem:[%s8217_s29 + $0x718] sm:$0xff] }
 0x230   : > { %v4659_v32 = vadd.f32 %v4658_v30, %v4657_v12  ;;  %v4925_v33 = vadd.f32 %v4924_v31, %v4923_v13 }
 0x231   : > { %v3532_v34 = vpop.f32.mrf.mxu2  ;;  %v3852_v35 = vpop.f32.mrf.mxu3 }
 0x232   : > { %v3533_v38 = vadd.f32 %v8822_v51, %v3532_v34  ;;  %v3853_v39 = vadd.f32 %v8822_v51, %v3852_v35  ;;  %v2895_v40 = vpop.f32.mrf.mxu0  ;;  %v3215_v41 = vpop.f32.mrf.mxu1 }
 0x233   : > { %v2896_v45 = vadd.f32 %v8822_v51, %v2895_v40  ;;  %v3216_v46 = vadd.f32 %v8822_v51, %v3215_v41 }
 0x234   : > { %v4352_v47 = vmax.f32 %v3533_v38, 0.0  ;;  %v4480_v7 = vmax.f32 %v3853_v39, 0.0 }
 0x235   : > { %v4097_v48 = vmax.f32 %v2896_v45, 0.0  ;;  %v4225_v49 = vmax.f32 %v3216_v46, 0.0  ;;  %7508 = vmatmul.msk.bf16.gmra.mxu0 %vm1987_vm0, %v7789_v36  ;;  %7572 = vmatmul.msk.bf16.gmra.mxu1 %vm1987_vm0, %v7853_v37 }
 0x236   : > { %v5190_v50 = vsel %vm1987_vm0, %v4352_v47, 0.0  ;;  %v5456_v52 = vsel %vm1987_vm0, %v4480_v7, 0.0  ;;  %7636 = vmatmul.msk.bf16.gmra.mxu2 %vm1987_vm0, %v7917_v42  ;;  %7700 = vmatmul.msk.bf16.gmra.mxu3 %vm1987_vm0, %v7981_v43 }
 0x237   : > { %v5191_v53 = vadd.f32 %v5190_v50, %v5189_v28  ;;  %v5457_v54 = vadd.f32 %v5456_v52, %v5455_v29  ;;  %v4660_v55 = vsel %vm1987_vm0, %v4097_v48, 0.0  ;;  %v4926_v56 = vsel %vm1987_vm0, %v4225_v49, 0.0 }
 0x238   : > { %v4661_v57 = vadd.f32 %v4660_v55, %v4659_v32  ;;  %v4927_v58 = vadd.f32 %v4926_v56, %v4925_v33 }
 0x239   : > { %v3535_v59 = vpop.f32.mrf.mxu2  ;;  %v3855_v60 = vpop.f32.mrf.mxu3 }
 0x23a   : > { %v3536_v61 = vadd.f32 %v8822_v51, %v3535_v59  ;;  %v3856_v62 = vadd.f32 %v8822_v51, %v3855_v60  ;;  %v2897_v63 = vpop.f32.mrf.mxu0  ;;  %v3217_v0 = vpop.f32.mrf.mxu1 }
 0x23b   : > { %v2898_v1 = vadd.f32 %v8822_v51, %v2897_v63  ;;  %v3218_v2 = vadd.f32 %v8822_v51, %v3217_v0  ;;  %v7855_v63 = vld [vmem:[%s8217_s29 + $0x320] sm:$0xff] }
 0x23c   : > { %v4353_v3 = vmax.f32 %v3536_v61, 0.0  ;;  %v4481_v44 = vmax.f32 %v3856_v62, 0.0  ;;  %v7791_v62 = vld [vmem:[%s8217_s29 + $0x120] sm:$0xff] }
 0x23d   : > { %v4098_v4 = vmax.f32 %v2898_v1, 0.0  ;;  %v4226_v5 = vmax.f32 %v3218_v2, 0.0 }
 0x23e   : > { %v5192_v6 = vsel %vm1987_vm0, %v4353_v3, 0.0  ;;  %v5458_v8 = vsel %vm1987_vm0, %v4481_v44, 0.0  ;;  %v7919_v44 = vld [vmem:[%s8217_s29 + $0x520] sm:$0xff] }
 0x23f   : > { %v5193_v9 = vadd.f32 %v5192_v6, %v5191_v53  ;;  %v5459_v10 = vadd.f32 %v5458_v8, %v5457_v54  ;;  %v4662_v11 = vsel %vm1987_vm0, %v4098_v4, 0.0  ;;  %v4928_v12 = vsel %vm1987_vm0, %v4226_v5, 0.0  ;;  %v7983_v4 = vld [vmem:[%s8217_s29 + $0x720] sm:$0xff] }
 0x240   : > { %v4663_v13 = vadd.f32 %v4662_v11, %v4661_v57  ;;  %v4929_v14 = vadd.f32 %v4928_v12, %v4927_v58 }
 0x241   : > { %v3537_v15 = vpop.f32.mrf.mxu2  ;;  %v3857_v16 = vpop.f32.mrf.mxu3 }
 0x242   : > { %v3538_v19 = vadd.f32 %v8822_v51, %v3537_v15  ;;  %v3858_v20 = vadd.f32 %v8822_v51, %v3857_v16  ;;  %v2900_v21 = vpop.f32.mrf.mxu0  ;;  %v3220_v22 = vpop.f32.mrf.mxu1 }
 0x243   : > { %v2901_v25 = vadd.f32 %v8822_v51, %v2900_v21  ;;  %v3221_v26 = vadd.f32 %v8822_v51, %v3220_v22 }
 0x244   : > { %v4354_v27 = vmax.f32 %v3538_v19, 0.0  ;;  %v4482_v28 = vmax.f32 %v3858_v20, 0.0 }
 0x245   : > { %v4099_v29 = vmax.f32 %v2901_v25, 0.0  ;;  %v4227_v30 = vmax.f32 %v3221_v26, 0.0  ;;  %7509 = vmatmul.msk.bf16.gmra.mxu0 %vm1987_vm0, %v7790_v17  ;;  %7573 = vmatmul.msk.bf16.gmra.mxu1 %vm1987_vm0, %v7854_v18 }
 0x246   : > { %v5194_v31 = vsel %vm1987_vm0, %v4354_v27, 0.0  ;;  %v5460_v32 = vsel %vm1987_vm0, %v4482_v28, 0.0  ;;  %7637 = vmatmul.msk.bf16.gmra.mxu2 %vm1987_vm0, %v7918_v23  ;;  %7701 = vmatmul.msk.bf16.gmra.mxu3 %vm1987_vm0, %v7982_v24 }
 0x247   : > { %v5195_v33 = vadd.f32 %v5194_v31, %v5193_v9  ;;  %v5461_v34 = vadd.f32 %v5460_v32, %v5459_v10  ;;  %v4664_v35 = vsel %vm1987_vm0, %v4099_v29, 0.0  ;;  %v4930_v36 = vsel %vm1987_vm0, %v4227_v30, 0.0 }
 0x248   : > { %v4665_v37 = vadd.f32 %v4664_v35, %v4663_v13  ;;  %v4931_v38 = vadd.f32 %v4930_v36, %v4929_v14 }
 0x249   : > { %v3540_v39 = vpop.f32.mrf.mxu2  ;;  %v3860_v40 = vpop.f32.mrf.mxu3 }
 0x24a   : > { %v3541_v41 = vadd.f32 %v8822_v51, %v3540_v39  ;;  %v3861_v42 = vadd.f32 %v8822_v51, %v3860_v40  ;;  %v2902_v43 = vpop.f32.mrf.mxu0  ;;  %v3222_v45 = vpop.f32.mrf.mxu1 }
 0x24b   : > { %v2903_v46 = vadd.f32 %v8822_v51, %v2902_v43  ;;  %v3223_v47 = vadd.f32 %v8822_v51, %v3222_v45  ;;  %v7856_v43 = vld [vmem:[%s8217_s29 + $0x328] sm:$0xff] }
 0x24c   : > { %v4355_v7 = vmax.f32 %v3541_v41, 0.0  ;;  %v4483_v48 = vmax.f32 %v3861_v42, 0.0  ;;  %v7792_v42 = vld [vmem:[%s8217_s29 + $0x128] sm:$0xff] }
 0x24d   : > { %v4100_v49 = vmax.f32 %v2903_v46, 0.0  ;;  %v4228_v50 = vmax.f32 %v3223_v47, 0.0 }
 0x24e   : > { %v5196_v52 = vsel %vm1987_vm0, %v4355_v7, 0.0  ;;  %v5462_v53 = vsel %vm1987_vm0, %v4483_v48, 0.0  ;;  %v7920_v48 = vld [vmem:[%s8217_s29 + $0x528] sm:$0xff] }
 0x24f   : > { %v5197_v54 = vadd.f32 %v5196_v52, %v5195_v33  ;;  %v5463_v55 = vadd.f32 %v5462_v53, %v5461_v34  ;;  %v4666_v56 = vsel %vm1987_vm0, %v4100_v49, 0.0  ;;  %v4932_v57 = vsel %vm1987_vm0, %v4228_v50, 0.0  ;;  %v7984_v49 = vld [vmem:[%s8217_s29 + $0x728] sm:$0xff] }
 0x250   : > { %v4667_v58 = vadd.f32 %v4666_v56, %v4665_v37  ;;  %v4933_v59 = vadd.f32 %v4932_v57, %v4931_v38 }
 0x251   : > { %v3542_v60 = vpop.f32.mrf.mxu2  ;;  %v3862_v61 = vpop.f32.mrf.mxu3 }
 0x252   : > { %v3543_v0 = vadd.f32 %v8822_v51, %v3542_v60  ;;  %v3863_v1 = vadd.f32 %v8822_v51, %v3862_v61  ;;  %v2905_v2 = vpop.f32.mrf.mxu0  ;;  %v3225_v3 = vpop.f32.mrf.mxu1 }
 0x253   : > { %v2906_v5 = vadd.f32 %v8822_v51, %v2905_v2  ;;  %v3226_v6 = vadd.f32 %v8822_v51, %v3225_v3 }
 0x254   : > { %v4356_v8 = vmax.f32 %v3543_v0, 0.0  ;;  %v4484_v9 = vmax.f32 %v3863_v1, 0.0 }
 0x255   : > { %v4101_v10 = vmax.f32 %v2906_v5, 0.0  ;;  %v4229_v11 = vmax.f32 %v3226_v6, 0.0  ;;  %7510 = vmatmul.msk.bf16.gmra.mxu0 %vm1987_vm0, %v7791_v62  ;;  %7574 = vmatmul.msk.bf16.gmra.mxu1 %vm1987_vm0, %v7855_v63 }
 0x256   : > { %v5198_v12 = vsel %vm1987_vm0, %v4356_v8, 0.0  ;;  %v5464_v13 = vsel %vm1987_vm0, %v4484_v9, 0.0  ;;  %7638 = vmatmul.msk.bf16.gmra.mxu2 %vm1987_vm0, %v7919_v44  ;;  %7702 = vmatmul.msk.bf16.gmra.mxu3 %vm1987_vm0, %v7983_v4 }
 0x257   : > { %v5199_v14 = vadd.f32 %v5198_v12, %v5197_v54  ;;  %v5465_v15 = vadd.f32 %v5464_v13, %v5463_v55  ;;  %v4668_v16 = vsel %vm1987_vm0, %v4101_v10, 0.0  ;;  %v4934_v17 = vsel %vm1987_vm0, %v4229_v11, 0.0 }
 0x258   : > { %v4669_v18 = vadd.f32 %v4668_v16, %v4667_v58  ;;  %v4935_v19 = vadd.f32 %v4934_v17, %v4933_v59 }
 0x259   : > { %v3545_v20 = vpop.f32.mrf.mxu2  ;;  %v3865_v21 = vpop.f32.mrf.mxu3 }
 0x25a   : > { %v3546_v22 = vadd.f32 %v8822_v51, %v3545_v20  ;;  %v3866_v23 = vadd.f32 %v8822_v51, %v3865_v21  ;;  %v2907_v24 = vpop.f32.mrf.mxu0  ;;  %v3227_v25 = vpop.f32.mrf.mxu1 }
 0x25b   : > { %v2908_v26 = vadd.f32 %v8822_v51, %v2907_v24  ;;  %v3228_v27 = vadd.f32 %v8822_v51, %v3227_v25  ;;  %v7857_v24 = vld [vmem:[%s8217_s29 + $0x330] sm:$0xff] }
 0x25c   : > { %v4357_v28 = vmax.f32 %v3546_v22, 0.0  ;;  %v4485_v29 = vmax.f32 %v3866_v23, 0.0  ;;  %v7793_v23 = vld [vmem:[%s8217_s29 + $0x130] sm:$0xff] }
 0x25d   : > { %v4102_v30 = vmax.f32 %v2908_v26, 0.0  ;;  %v4230_v31 = vmax.f32 %v3228_v27, 0.0 }
 0x25e   : > { %v5200_v32 = vsel %vm1987_vm0, %v4357_v28, 0.0  ;;  %v5466_v33 = vsel %vm1987_vm0, %v4485_v29, 0.0  ;;  %v7921_v29 = vld [vmem:[%s8217_s29 + $0x530] sm:$0xff] }
 0x25f   : > { %v5201_v34 = vadd.f32 %v5200_v32, %v5199_v14  ;;  %v5467_v35 = vadd.f32 %v5466_v33, %v5465_v15  ;;  %v4670_v36 = vsel %vm1987_vm0, %v4102_v30, 0.0  ;;  %v4936_v37 = vsel %vm1987_vm0, %v4230_v31, 0.0  ;;  %v7985_v30 = vld [vmem:[%s8217_s29 + $0x730] sm:$0xff] }
 0x260   : > { %v4671_v38 = vadd.f32 %v4670_v36, %v4669_v18  ;;  %v4937_v39 = vadd.f32 %v4936_v37, %v4935_v19 }
 0x261   : > { %v3547_v40 = vpop.f32.mrf.mxu2  ;;  %v3867_v41 = vpop.f32.mrf.mxu3 }
 0x262   : > { %v3548_v45 = vadd.f32 %v8822_v51, %v3547_v40  ;;  %v3868_v46 = vadd.f32 %v8822_v51, %v3867_v41  ;;  %v2910_v47 = vpop.f32.mrf.mxu0  ;;  %v3230_v7 = vpop.f32.mrf.mxu1 }
 0x263   : > { %v2911_v50 = vadd.f32 %v8822_v51, %v2910_v47  ;;  %v3231_v52 = vadd.f32 %v8822_v51, %v3230_v7 }
 0x264   : > { %v4358_v53 = vmax.f32 %v3548_v45, 0.0  ;;  %v4486_v54 = vmax.f32 %v3868_v46, 0.0 }
 0x265   : > { %v4103_v55 = vmax.f32 %v2911_v50, 0.0  ;;  %v4231_v56 = vmax.f32 %v3231_v52, 0.0  ;;  %7511 = vmatmul.msk.bf16.gmra.mxu0 %vm1987_vm0, %v7792_v42  ;;  %7575 = vmatmul.msk.bf16.gmra.mxu1 %vm1987_vm0, %v7856_v43 }
 0x266   : > { %v5202_v57 = vsel %vm1987_vm0, %v4358_v53, 0.0  ;;  %v5468_v58 = vsel %vm1987_vm0, %v4486_v54, 0.0  ;;  %7639 = vmatmul.msk.bf16.gmra.mxu2 %vm1987_vm0, %v7920_v48  ;;  %7703 = vmatmul.msk.bf16.gmra.mxu3 %vm1987_vm0, %v7984_v49 }
 0x267   : > { %v5203_v59 = vadd.f32 %v5202_v57, %v5201_v34  ;;  %v5469_v60 = vadd.f32 %v5468_v58, %v5467_v35  ;;  %v4672_v61 = vsel %vm1987_vm0, %v4103_v55, 0.0  ;;  %v4938_v62 = vsel %vm1987_vm0, %v4231_v56, 0.0 }
 0x268   : > { %v4673_v63 = vadd.f32 %v4672_v61, %v4671_v38  ;;  %v4939_v0 = vadd.f32 %v4938_v62, %v4937_v39 }
 0x269   : > { %v3550_v1 = vpop.f32.mrf.mxu2  ;;  %v3870_v2 = vpop.f32.mrf.mxu3 }
 0x26a   : > { %v3551_v3 = vadd.f32 %v8822_v51, %v3550_v1  ;;  %v3871_v44 = vadd.f32 %v8822_v51, %v3870_v2  ;;  %v2912_v4 = vpop.f32.mrf.mxu0  ;;  %v3232_v5 = vpop.f32.mrf.mxu1 }
 0x26b   : > { %v2913_v6 = vadd.f32 %v8822_v51, %v2912_v4  ;;  %v3233_v8 = vadd.f32 %v8822_v51, %v3232_v5  ;;  %v7858_v4 = vld [vmem:[%s8217_s29 + $0x338] sm:$0xff] }
 0x26c   : > { %v4359_v9 = vmax.f32 %v3551_v3, 0.0  ;;  %v4487_v10 = vmax.f32 %v3871_v44, 0.0  ;;  %v7794_v44 = vld [vmem:[%s8217_s29 + $0x138] sm:$0xff] }
 0x26d   : > { %v4104_v11 = vmax.f32 %v2913_v6, 0.0  ;;  %v4232_v12 = vmax.f32 %v3233_v8, 0.0 }
 0x26e   : > { %v5204_v13 = vsel %vm1987_vm0, %v4359_v9, 0.0  ;;  %v5470_v14 = vsel %vm1987_vm0, %v4487_v10, 0.0  ;;  %v7922_v10 = vld [vmem:[%s8217_s29 + $0x538] sm:$0xff] }
 0x26f   : > { %v5205_v15 = vadd.f32 %v5204_v13, %v5203_v59  ;;  %v5471_v16 = vadd.f32 %v5470_v14, %v5469_v60  ;;  %v4674_v17 = vsel %vm1987_vm0, %v4104_v11, 0.0  ;;  %v4940_v18 = vsel %vm1987_vm0, %v4232_v12, 0.0  ;;  %v7986_v11 = vld [vmem:[%s8217_s29 + $0x738] sm:$0xff] }
 0x270   : > { %v4675_v19 = vadd.f32 %v4674_v17, %v4673_v63  ;;  %v4941_v20 = vadd.f32 %v4940_v18, %v4939_v0 }
 0x271   : > { %v3552_v21 = vpop.f32.mrf.mxu2  ;;  %v3872_v22 = vpop.f32.mrf.mxu3 }
 0x272   : > { %v3553_v25 = vadd.f32 %v8822_v51, %v3552_v21  ;;  %v3873_v26 = vadd.f32 %v8822_v51, %v3872_v22  ;;  %v2915_v27 = vpop.f32.mrf.mxu0  ;;  %v3235_v28 = vpop.f32.mrf.mxu1 }
 0x273   : > { %v2916_v31 = vadd.f32 %v8822_v51, %v2915_v27  ;;  %v3236_v32 = vadd.f32 %v8822_v51, %v3235_v28 }
 0x274   : > { %v4360_v33 = vmax.f32 %v3553_v25, 0.0  ;;  %v4488_v34 = vmax.f32 %v3873_v26, 0.0 }
 0x275   : > { %v4105_v35 = vmax.f32 %v2916_v31, 0.0  ;;  %v4233_v36 = vmax.f32 %v3236_v32, 0.0  ;;  %7512 = vmatmul.msk.bf16.gmra.mxu0 %vm1987_vm0, %v7793_v23  ;;  %7576 = vmatmul.msk.bf16.gmra.mxu1 %vm1987_vm0, %v7857_v24 }
 0x276   : > { %v5206_v37 = vsel %vm1987_vm0, %v4360_v33, 0.0  ;;  %v5472_v38 = vsel %vm1987_vm0, %v4488_v34, 0.0  ;;  %7640 = vmatmul.msk.bf16.gmra.mxu2 %vm1987_vm0, %v7921_v29  ;;  %7704 = vmatmul.msk.bf16.gmra.mxu3 %vm1987_vm0, %v7985_v30 }
 0x277   : > { %v5207_v39 = vadd.f32 %v5206_v37, %v5205_v15  ;;  %v5473_v40 = vadd.f32 %v5472_v38, %v5471_v16  ;;  %v4676_v41 = vsel %vm1987_vm0, %v4105_v35, 0.0  ;;  %v4942_v42 = vsel %vm1987_vm0, %v4233_v36, 0.0 }
 0x278   : > { %v4677_v43 = vadd.f32 %v4676_v41, %v4675_v19  ;;  %v4943_v45 = vadd.f32 %v4942_v42, %v4941_v20 }
 0x279   : > { %v3555_v46 = vpop.f32.mrf.mxu2  ;;  %v3875_v47 = vpop.f32.mrf.mxu3 }
 0x27a   : > { %v3556_v7 = vadd.f32 %v8822_v51, %v3555_v46  ;;  %v3876_v48 = vadd.f32 %v8822_v51, %v3875_v47  ;;  %v2917_v49 = vpop.f32.mrf.mxu0  ;;  %v3237_v50 = vpop.f32.mrf.mxu1 }
 0x27b   : > { %v2918_v52 = vadd.f32 %v8822_v51, %v2917_v49  ;;  %v3238_v53 = vadd.f32 %v8822_v51, %v3237_v50  ;;  %v7859_v49 = vld [vmem:[%s8217_s29 + $0x340] sm:$0xff] }
 0x27c   : > { %v4361_v54 = vmax.f32 %v3556_v7, 0.0  ;;  %v4489_v55 = vmax.f32 %v3876_v48, 0.0  ;;  %v7795_v48 = vld [vmem:[%s8217_s29 + $0x140] sm:$0xff] }
 0x27d   : > { %v4106_v56 = vmax.f32 %v2918_v52, 0.0  ;;  %v4234_v57 = vmax.f32 %v3238_v53, 0.0 }
 0x27e   : > { %v5208_v58 = vsel %vm1987_vm0, %v4361_v54, 0.0  ;;  %v5474_v59 = vsel %vm1987_vm0, %v4489_v55, 0.0  ;;  %v7923_v55 = vld [vmem:[%s8217_s29 + $0x540] sm:$0xff] }
 0x27f   : > { %v5209_v60 = vadd.f32 %v5208_v58, %v5207_v39  ;;  %v5475_v61 = vadd.f32 %v5474_v59, %v5473_v40  ;;  %v4678_v62 = vsel %vm1987_vm0, %v4106_v56, 0.0  ;;  %v4944_v63 = vsel %vm1987_vm0, %v4234_v57, 0.0  ;;  %v7987_v56 = vld [vmem:[%s8217_s29 + $0x740] sm:$0xff] }
 0x280   : > { %v4679_v0 = vadd.f32 %v4678_v62, %v4677_v43  ;;  %v4945_v1 = vadd.f32 %v4944_v63, %v4943_v45 }
 0x281   : > { %v3557_v2 = vpop.f32.mrf.mxu2  ;;  %v3877_v3 = vpop.f32.mrf.mxu3 }
 0x282   : > { %v3558_v5 = vadd.f32 %v8822_v51, %v3557_v2  ;;  %v3878_v6 = vadd.f32 %v8822_v51, %v3877_v3  ;;  %v2920_v8 = vpop.f32.mrf.mxu0  ;;  %v3240_v9 = vpop.f32.mrf.mxu1 }
 0x283   : > { %v2921_v12 = vadd.f32 %v8822_v51, %v2920_v8  ;;  %v3241_v13 = vadd.f32 %v8822_v51, %v3240_v9 }
 0x284   : > { %v4362_v14 = vmax.f32 %v3558_v5, 0.0  ;;  %v4490_v15 = vmax.f32 %v3878_v6, 0.0 }
 0x285   : > { %v4107_v16 = vmax.f32 %v2921_v12, 0.0  ;;  %v4235_v17 = vmax.f32 %v3241_v13, 0.0  ;;  %7513 = vmatmul.msk.bf16.gmra.mxu0 %vm1987_vm0, %v7794_v44  ;;  %7577 = vmatmul.msk.bf16.gmra.mxu1 %vm1987_vm0, %v7858_v4 }
 0x286   : > { %v5210_v18 = vsel %vm1987_vm0, %v4362_v14, 0.0  ;;  %v5476_v19 = vsel %vm1987_vm0, %v4490_v15, 0.0  ;;  %7641 = vmatmul.msk.bf16.gmra.mxu2 %vm1987_vm0, %v7922_v10  ;;  %7705 = vmatmul.msk.bf16.gmra.mxu3 %vm1987_vm0, %v7986_v11 }
 0x287   : > { %v5211_v20 = vadd.f32 %v5210_v18, %v5209_v60  ;;  %v5477_v21 = vadd.f32 %v5476_v19, %v5475_v61  ;;  %v4680_v22 = vsel %vm1987_vm0, %v4107_v16, 0.0  ;;  %v4946_v23 = vsel %vm1987_vm0, %v4235_v17, 0.0 }
 0x288   : > { %v4681_v24 = vadd.f32 %v4680_v22, %v4679_v0  ;;  %v4947_v25 = vadd.f32 %v4946_v23, %v4945_v1  ;;  %v7860_v22 = vld [vmem:[%s8217_s29 + $0x348] sm:$0xff] }
 0x289   : > { %v3560_v26 = vpop.f32.mrf.mxu2  ;;  %v3880_v27 = vpop.f32.mrf.mxu3 }
 0x28a   : > { %v3561_v28 = vadd.f32 %v8822_v51, %v3560_v26  ;;  %v3881_v29 = vadd.f32 %v8822_v51, %v3880_v27  ;;  %v2922_v30 = vpop.f32.mrf.mxu0  ;;  %v3242_v31 = vpop.f32.mrf.mxu1 }
 0x28b   : > { %v2923_v32 = vadd.f32 %v8822_v51, %v2922_v30  ;;  %v3243_v33 = vadd.f32 %v8822_v51, %v3242_v31  ;;  %v7988_v30 = vld [vmem:[%s8217_s29 + $0x748] sm:$0xff] }
 0x28c   : > { %v4363_v34 = vmax.f32 %v3561_v28, 0.0  ;;  %v4491_v35 = vmax.f32 %v3881_v29, 0.0  ;;  %v7924_v29 = vld [vmem:[%s8217_s29 + $0x548] sm:$0xff] }
 0x28d   : > { %v4108_v36 = vmax.f32 %v2923_v32, 0.0  ;;  %v4236_v37 = vmax.f32 %v3243_v33, 0.0 }
 0x28e   : > { %v5212_v38 = vsel %vm1987_vm0, %v4363_v34, 0.0  ;;  %v5478_v39 = vsel %vm1987_vm0, %v4491_v35, 0.0 }
 0x28f   : > { %v5213_v40 = vadd.f32 %v5212_v38, %v5211_v20  ;;  %v5479_v41 = vadd.f32 %v5478_v39, %v5477_v21  ;;  %v4682_v42 = vsel %vm1987_vm0, %v4108_v36, 0.0  ;;  %v4948_v43 = vsel %vm1987_vm0, %v4236_v37, 0.0  ;;  %v7796_v21 = vld [vmem:[%s8217_s29 + $0x148] sm:$0xff] }
 0x290   : > { %v9062_v45 = vadd.f32 %v4682_v42, %v4681_v24  ;;  %v9064_v46 = vadd.f32 %v4948_v43, %v4947_v25 }
 0x291   : > { %v3562_v47 = vpop.f32.mrf.mxu2  ;;  %v3882_v7 = vpop.f32.mrf.mxu3 }
 0x292   : > { %v3563_v50 = vadd.f32 %v8822_v51, %v3562_v47  ;;  %v3883_v52 = vadd.f32 %v8822_v51, %v3882_v7  ;;  %v2925_v53 = vpop.f32.mrf.mxu0  ;;  %v3245_v54 = vpop.f32.mrf.mxu1 }
 0x293   : > { %v2926_v63 = vadd.f32 %v8822_v51, %v2925_v53  ;;  %v3246_v0 = vadd.f32 %v8822_v51, %v3245_v54 }
 0x294   : > { %v4364_v57 = vmax.f32 %v3563_v50, 0.0  ;;  %v4492_v58 = vmax.f32 %v3883_v52, 0.0 }
 0x295   : > { %7514 = vmatmul.msk.bf16.gmra.mxu0 %vm1987_vm0, %v7795_v48  ;;  %7578 = vmatmul.msk.bf16.gmra.mxu1 %vm1987_vm0, %v7859_v49  ;;  %v4109_v4 = vmax.f32 %v2926_v63, 0.0  ;;  %v4237_v5 = vmax.f32 %v3246_v0, 0.0 }
 0x296   : > { %v5214_v59 = vsel %vm1987_vm0, %v4364_v57, 0.0  ;;  %v5480_v60 = vsel %vm1987_vm0, %v4492_v58, 0.0  ;;  %7642 = vmatmul.msk.bf16.gmra.mxu2 %vm1987_vm0, %v7923_v55  ;;  %7706 = vmatmul.msk.bf16.gmra.mxu3 %vm1987_vm0, %v7987_v56 }
 0x297   : > { %v9078_v61 = vadd.f32 %v5214_v59, %v5213_v40  ;;  %v9080_v62 = vadd.f32 %v5480_v60, %v5479_v41  ;;  %v4690_v13 = vsel %vm1987_vm0, %v4109_v4, 0.0  ;;  %v4956_v14 = vsel %vm1987_vm0, %v4237_v5, 0.0 }
 0x299   : > { %v3565_v1 = vpop.f32.mrf.mxu2  ;;  %v3885_v2 = vpop.f32.mrf.mxu3 }
 0x29a   : > { %v2927_v3 = vpop.f32.mrf.mxu0  ;;  %v3247_v44 = vpop.f32.mrf.mxu1  ;;  %v3566_v11 = vadd.f32 %v8822_v51, %v3565_v1  ;;  %v3886_v12 = vadd.f32 %v8822_v51, %v3885_v2 }
 0x29b   : > { %v2928_v6 = vadd.f32 %v8822_v51, %v2927_v3  ;;  %v3248_v8 = vadd.f32 %v8822_v51, %v3247_v44  ;;  %v9097_v51 = vld [vmem:[%s10199_s1 + $0x20] ss:$0 sm:$0xff] }
 0x29c   : > { %v4365_v23 = vmax.f32 %v3566_v11, 0.0  ;;  %v4493_v24 = vmax.f32 %v3886_v12, 0.0  ;;  %v7861_v11 = vld [vmem:[%s8217_s29 + $0x350] sm:$0xff] }
 0x29d   : > { %v4110_v9 = vmax.f32 %v2928_v6, 0.0  ;;  %v4238_v10 = vmax.f32 %v3248_v8, 0.0 }
 0x29e   : > { %v5222_v37 = vsel %vm1987_vm0, %v4365_v23, 0.0  ;;  %v5488_v38 = vsel %vm1987_vm0, %v4493_v24, 0.0 }
 0x29f   : > { %v4691_v15 = vsel %vm1987_vm0, %v4110_v9, 0.0  ;;  %v4957_v16 = vsel %vm1987_vm0, %v4238_v10, 0.0  ;;  %v7797_v10 = vld [vmem:[%s8217_s29 + $0x150] sm:$0xff] }
 0x2a0   : > { %v4692_v17 = vadd.f32 %v4691_v15, %v4690_v13  ;;  %v4958_v18 = vadd.f32 %v4957_v16, %v4956_v14  ;;  %v7925_v16 = vld [vmem:[%s8217_s29 + $0x550] sm:$0xff] }
 0x2a1   : > { %v3567_v19 = vpop.f32.mrf.mxu2  ;;  %v3887_v20 = vpop.f32.mrf.mxu3 }
 0x2a2   : > { %v3568_v25 = vadd.f32 %v9097_v51, %v3567_v19  ;;  %v3888_v26 = vadd.f32 %v9097_v51, %v3887_v20  ;;  %v2930_v27 = vpop.f32.mrf.mxu0  ;;  %v3250_v28 = vpop.f32.mrf.mxu1 }
 0x2a3   : > { %v2931_v31 = vadd.f32 %v9097_v51, %v2930_v27  ;;  %v3251_v32 = vadd.f32 %v9097_v51, %v3250_v28 }
 0x2a4   : > { %v4366_v33 = vmax.f32 %v3568_v25, 0.0  ;;  %v4494_v34 = vmax.f32 %v3888_v26, 0.0 }
 0x2a5   : > { %v4111_v35 = vmax.f32 %v2931_v31, 0.0  ;;  %v4239_v36 = vmax.f32 %v3251_v32, 0.0  ;;  %7515 = vmatmul.msk.bf16.gmra.mxu0 %vm1987_vm0, %v7796_v21  ;;  %7579 = vmatmul.msk.bf16.gmra.mxu1 %vm1987_vm0, %v7860_v22 }
 0x2a6   : > { %v5223_v39 = vsel %vm1987_vm0, %v4366_v33, 0.0  ;;  %v5489_v40 = vsel %vm1987_vm0, %v4494_v34, 0.0  ;;  %7643 = vmatmul.msk.bf16.gmra.mxu2 %vm1987_vm0, %v7924_v29  ;;  %7707 = vmatmul.msk.bf16.gmra.mxu3 %vm1987_vm0, %v7988_v30 }
 0x2a7   : > { %v5224_v41 = vadd.f32 %v5223_v39, %v5222_v37  ;;  %v5490_v42 = vadd.f32 %v5489_v40, %v5488_v38  ;;  %v4693_v43 = vsel %vm1987_vm0, %v4111_v35, 0.0  ;;  %v4959_v47 = vsel %vm1987_vm0, %v4239_v36, 0.0 }
 0x2a8   : > { %v4694_v7 = vadd.f32 %v4693_v43, %v4692_v17  ;;  %v4960_v48 = vadd.f32 %v4959_v47, %v4958_v18  ;;  %v7989_v17 = vld [vmem:[%s8217_s29 + $0x750] sm:$0xff] }
 0x2a9   : > { %v3570_v49 = vpop.f32.mrf.mxu2  ;;  %v3890_v50 = vpop.f32.mrf.mxu3 }
 0x2aa   : > { %v3571_v52 = vadd.f32 %v9097_v51, %v3570_v49  ;;  %v3891_v53 = vadd.f32 %v9097_v51, %v3890_v50  ;;  %v2932_v54 = vpop.f32.mrf.mxu0  ;;  %v3252_v55 = vpop.f32.mrf.mxu1 }
 0x2ab   : > { %v2933_v56 = vadd.f32 %v9097_v51, %v2932_v54  ;;  %v3253_v57 = vadd.f32 %v9097_v51, %v3252_v55 }
 0x2ac   : > { %v4367_v58 = vmax.f32 %v3571_v52, 0.0  ;;  %v4495_v59 = vmax.f32 %v3891_v53, 0.0 }
 0x2ad   : > { %v4112_v60 = vmax.f32 %v2933_v56, 0.0  ;;  %v4240_v63 = vmax.f32 %v3253_v57, 0.0  ;;  %v7798_v57 = vld [vmem:[%s8217_s29 + $0x158] sm:$0xff] }
 0x2ae   : > { %v5225_v0 = vsel %vm1987_vm0, %v4367_v58, 0.0  ;;  %v5491_v1 = vsel %vm1987_vm0, %v4495_v59, 0.0  ;;  %v7862_v58 = vld [vmem:[%s8217_s29 + $0x358] sm:$0xff] }
 0x2af   : > { %v5226_v2 = vadd.f32 %v5225_v0, %v5224_v41  ;;  %v5492_v3 = vadd.f32 %v5491_v1, %v5490_v42  ;;  %v4695_v44 = vsel %vm1987_vm0, %v4112_v60, 0.0  ;;  %v4961_v4 = vsel %vm1987_vm0, %v4240_v63, 0.0  ;;  %v7926_v1 = vld [vmem:[%s8217_s29 + $0x558] sm:$0xff] }
 0x2b0   : > { %v4696_v5 = vadd.f32 %v4695_v44, %v4694_v7  ;;  %v4962_v6 = vadd.f32 %v4961_v4, %v4960_v48 }
 0x2b1   : > { %v3572_v8 = vpop.f32.mrf.mxu2  ;;  %v3892_v9 = vpop.f32.mrf.mxu3 }
 0x2b2   : > { %v3573_v12 = vadd.f32 %v9097_v51, %v3572_v8  ;;  %v3893_v13 = vadd.f32 %v9097_v51, %v3892_v9  ;;  %v2935_v14 = vpop.f32.mrf.mxu0  ;;  %v3255_v15 = vpop.f32.mrf.mxu1 }
 0x2b3   : > { %v2936_v18 = vadd.f32 %v9097_v51, %v2935_v14  ;;  %v3256_v19 = vadd.f32 %v9097_v51, %v3255_v15 }
 0x2b4   : > { %v4368_v20 = vmax.f32 %v3573_v12, 0.0  ;;  %v4496_v21 = vmax.f32 %v3893_v13, 0.0 }
 0x2b5   : > { %v4113_v22 = vmax.f32 %v2936_v18, 0.0  ;;  %v4241_v23 = vmax.f32 %v3256_v19, 0.0  ;;  %7516 = vmatmul.msk.bf16.gmra.mxu0 %vm1987_vm0, %v7797_v10  ;;  %7580 = vmatmul.msk.bf16.gmra.mxu1 %vm1987_vm0, %v7861_v11 }
 0x2b6   : > { %v5227_v24 = vsel %vm1987_vm0, %v4368_v20, 0.0  ;;  %v5493_v25 = vsel %vm1987_vm0, %v4496_v21, 0.0  ;;  %7644 = vmatmul.msk.bf16.gmra.mxu2 %vm1987_vm0, %v7925_v16  ;;  %7708 = vmatmul.msk.bf16.gmra.mxu3 %vm1987_vm0, %v7989_v17 }
 0x2b7   : > { %v5228_v26 = vadd.f32 %v5227_v24, %v5226_v2  ;;  %v5494_v27 = vadd.f32 %v5493_v25, %v5492_v3  ;;  %v4697_v28 = vsel %vm1987_vm0, %v4113_v22, 0.0  ;;  %v4963_v29 = vsel %vm1987_vm0, %v4241_v23, 0.0  ;;  %v7990_v2 = vld [vmem:[%s8217_s29 + $0x758] sm:$0xff] }
 0x2b8   : > { %v4698_v30 = vadd.f32 %v4697_v28, %v4696_v5  ;;  %v4964_v31 = vadd.f32 %v4963_v29, %v4962_v6 }
 0x2b9   : > { %v3575_v32 = vpop.f32.mrf.mxu2  ;;  %v3895_v33 = vpop.f32.mrf.mxu3 }
 0x2ba   : > { %v3576_v34 = vadd.f32 %v9097_v51, %v3575_v32  ;;  %v3896_v35 = vadd.f32 %v9097_v51, %v3895_v33  ;;  %v2937_v36 = vpop.f32.mrf.mxu0  ;;  %v3257_v37 = vpop.f32.mrf.mxu1 }
 0x2bb   : > { %v2938_v38 = vadd.f32 %v9097_v51, %v2937_v36  ;;  %v3258_v39 = vadd.f32 %v9097_v51, %v3257_v37 }
 0x2bc   : > { %v4369_v40 = vmax.f32 %v3576_v34, 0.0  ;;  %v4497_v41 = vmax.f32 %v3896_v35, 0.0 }
 0x2bd   : > { %v4114_v42 = vmax.f32 %v2938_v38, 0.0  ;;  %v4242_v43 = vmax.f32 %v3258_v39, 0.0  ;;  %v7799_v39 = vld [vmem:[%s8217_s29 + $0x160] sm:$0xff] }
 0x2be   : > { %v5229_v47 = vsel %vm1987_vm0, %v4369_v40, 0.0  ;;  %v5495_v7 = vsel %vm1987_vm0, %v4497_v41, 0.0  ;;  %v7863_v40 = vld [vmem:[%s8217_s29 + $0x360] sm:$0xff] }
 0x2bf   : > { %v5230_v48 = vadd.f32 %v5229_v47, %v5228_v26  ;;  %v5496_v49 = vadd.f32 %v5495_v7, %v5494_v27  ;;  %v4699_v50 = vsel %vm1987_vm0, %v4114_v42, 0.0  ;;  %v4965_v52 = vsel %vm1987_vm0, %v4242_v43, 0.0  ;;  %v7927_v7 = vld [vmem:[%s8217_s29 + $0x560] sm:$0xff] }
 0x2c0   : > { %v4700_v53 = vadd.f32 %v4699_v50, %v4698_v30  ;;  %v4966_v54 = vadd.f32 %v4965_v52, %v4964_v31 }
 0x2c1   : > { %v3577_v55 = vpop.f32.mrf.mxu2  ;;  %v3897_v56 = vpop.f32.mrf.mxu3 }
 0x2c2   : > { %v3578_v59 = vadd.f32 %v9097_v51, %v3577_v55  ;;  %v3898_v60 = vadd.f32 %v9097_v51, %v3897_v56  ;;  %v2940_v63 = vpop.f32.mrf.mxu0  ;;  %v3260_v0 = vpop.f32.mrf.mxu1 }
 0x2c3   : > { %v2941_v3 = vadd.f32 %v9097_v51, %v2940_v63  ;;  %v3261_v44 = vadd.f32 %v9097_v51, %v3260_v0 }
 0x2c4   : > { %v4370_v4 = vmax.f32 %v3578_v59, 0.0  ;;  %v4498_v5 = vmax.f32 %v3898_v60, 0.0 }
 0x2c5   : > { %v4115_v6 = vmax.f32 %v2941_v3, 0.0  ;;  %v4243_v8 = vmax.f32 %v3261_v44, 0.0  ;;  %7517 = vmatmul.msk.bf16.gmra.mxu0 %vm1987_vm0, %v7798_v57  ;;  %7581 = vmatmul.msk.bf16.gmra.mxu1 %vm1987_vm0, %v7862_v58 }
 0x2c6   : > { %v5231_v9 = vsel %vm1987_vm0, %v4370_v4, 0.0  ;;  %v5497_v10 = vsel %vm1987_vm0, %v4498_v5, 0.0  ;;  %7645 = vmatmul.msk.bf16.gmra.mxu2 %vm1987_vm0, %v7926_v1  ;;  %7709 = vmatmul.msk.bf16.gmra.mxu3 %vm1987_vm0, %v7990_v2 }
 0x2c7   : > { %v5232_v11 = vadd.f32 %v5231_v9, %v5230_v48  ;;  %v5498_v12 = vadd.f32 %v5497_v10, %v5496_v49  ;;  %v4701_v13 = vsel %vm1987_vm0, %v4115_v6, 0.0  ;;  %v4967_v14 = vsel %vm1987_vm0, %v4243_v8, 0.0  ;;  %v7991_v48 = vld [vmem:[%s8217_s29 + $0x760] sm:$0xff] }
 0x2c8   : > { %v4702_v15 = vadd.f32 %v4701_v13, %v4700_v53  ;;  %v4968_v16 = vadd.f32 %v4967_v14, %v4966_v54 }
 0x2c9   : > { %v3580_v17 = vpop.f32.mrf.mxu2  ;;  %v3900_v18 = vpop.f32.mrf.mxu3 }
 0x2ca   : > { %v3581_v19 = vadd.f32 %v9097_v51, %v3580_v17  ;;  %v3901_v20 = vadd.f32 %v9097_v51, %v3900_v18  ;;  %v2942_v21 = vpop.f32.mrf.mxu0  ;;  %v3262_v22 = vpop.f32.mrf.mxu1 }
 0x2cb   : > { %v2943_v23 = vadd.f32 %v9097_v51, %v2942_v21  ;;  %v3263_v24 = vadd.f32 %v9097_v51, %v3262_v22 }
 0x2cc   : > { %v4371_v25 = vmax.f32 %v3581_v19, 0.0  ;;  %v4499_v26 = vmax.f32 %v3901_v20, 0.0 }
 0x2cd   : > { %v4116_v27 = vmax.f32 %v2943_v23, 0.0  ;;  %v4244_v28 = vmax.f32 %v3263_v24, 0.0  ;;  %v7800_v24 = vld [vmem:[%s8217_s29 + $0x168] sm:$0xff] }
 0x2ce   : > { %v5233_v29 = vsel %vm1987_vm0, %v4371_v25, 0.0  ;;  %v5499_v30 = vsel %vm1987_vm0, %v4499_v26, 0.0  ;;  %v7864_v25 = vld [vmem:[%s8217_s29 + $0x368] sm:$0xff] }
 0x2cf   : > { %v5234_v31 = vadd.f32 %v5233_v29, %v5232_v11  ;;  %v5500_v32 = vadd.f32 %v5499_v30, %v5498_v12  ;;  %v4703_v33 = vsel %vm1987_vm0, %v4116_v27, 0.0  ;;  %v4969_v34 = vsel %vm1987_vm0, %v4244_v28, 0.0  ;;  %v7928_v30 = vld [vmem:[%s8217_s29 + $0x568] sm:$0xff] }
 0x2d0   : > { %v4704_v35 = vadd.f32 %v4703_v33, %v4702_v15  ;;  %v4970_v36 = vadd.f32 %v4969_v34, %v4968_v16 }
 0x2d1   : > { %v3582_v37 = vpop.f32.mrf.mxu2  ;;  %v3902_v38 = vpop.f32.mrf.mxu3 }
 0x2d2   : > { %v3583_v41 = vadd.f32 %v9097_v51, %v3582_v37  ;;  %v3903_v42 = vadd.f32 %v9097_v51, %v3902_v38  ;;  %v2945_v43 = vpop.f32.mrf.mxu0  ;;  %v3265_v47 = vpop.f32.mrf.mxu1 }
 0x2d3   : > { %v2946_v49 = vadd.f32 %v9097_v51, %v2945_v43  ;;  %v3266_v50 = vadd.f32 %v9097_v51, %v3265_v47 }
 0x2d4   : > { %v4372_v52 = vmax.f32 %v3583_v41, 0.0  ;;  %v4500_v53 = vmax.f32 %v3903_v42, 0.0 }
 0x2d5   : > { %v4117_v54 = vmax.f32 %v2946_v49, 0.0  ;;  %v4245_v55 = vmax.f32 %v3266_v50, 0.0  ;;  %7518 = vmatmul.msk.bf16.gmra.mxu0 %vm1987_vm0, %v7799_v39  ;;  %7582 = vmatmul.msk.bf16.gmra.mxu1 %vm1987_vm0, %v7863_v40 }
 0x2d6   : > { %v5235_v56 = vsel %vm1987_vm0, %v4372_v52, 0.0  ;;  %v5501_v57 = vsel %vm1987_vm0, %v4500_v53, 0.0  ;;  %7646 = vmatmul.msk.bf16.gmra.mxu2 %vm1987_vm0, %v7927_v7  ;;  %7710 = vmatmul.msk.bf16.gmra.mxu3 %vm1987_vm0, %v7991_v48 }
 0x2d7   : > { %v5236_v58 = vadd.f32 %v5235_v56, %v5234_v31  ;;  %v5502_v59 = vadd.f32 %v5501_v57, %v5500_v32  ;;  %v4705_v60 = vsel %vm1987_vm0, %v4117_v54, 0.0  ;;  %v4971_v63 = vsel %vm1987_vm0, %v4245_v55, 0.0  ;;  %v7992_v31 = vld [vmem:[%s8217_s29 + $0x768] sm:$0xff] }
 0x2d8   : > { %v4706_v0 = vadd.f32 %v4705_v60, %v4704_v35  ;;  %v4972_v1 = vadd.f32 %v4971_v63, %v4970_v36 }
 0x2d9   : > { %v3585_v2 = vpop.f32.mrf.mxu2  ;;  %v3905_v3 = vpop.f32.mrf.mxu3 }
 0x2da   : > { %v3586_v44 = vadd.f32 %v9097_v51, %v3585_v2  ;;  %v3906_v4 = vadd.f32 %v9097_v51, %v3905_v3  ;;  %v2947_v5 = vpop.f32.mrf.mxu0  ;;  %v3267_v6 = vpop.f32.mrf.mxu1 }
 0x2db   : > { %v2948_v8 = vadd.f32 %v9097_v51, %v2947_v5  ;;  %v3268_v9 = vadd.f32 %v9097_v51, %v3267_v6 }
 0x2dc   : > { %v4373_v10 = vmax.f32 %v3586_v44, 0.0  ;;  %v4501_v11 = vmax.f32 %v3906_v4, 0.0 }
 0x2dd   : > { %v4118_v12 = vmax.f32 %v2948_v8, 0.0  ;;  %v4246_v13 = vmax.f32 %v3268_v9, 0.0  ;;  %v7801_v9 = vld [vmem:[%s8217_s29 + $0x170] sm:$0xff] }
 0x2de   : > { %v5237_v14 = vsel %vm1987_vm0, %v4373_v10, 0.0  ;;  %v5503_v15 = vsel %vm1987_vm0, %v4501_v11, 0.0  ;;  %v7865_v10 = vld [vmem:[%s8217_s29 + $0x370] sm:$0xff] }
 0x2df   : > { %v5238_v16 = vadd.f32 %v5237_v14, %v5236_v58  ;;  %v5504_v17 = vadd.f32 %v5503_v15, %v5502_v59  ;;  %v4707_v18 = vsel %vm1987_vm0, %v4118_v12, 0.0  ;;  %v4973_v19 = vsel %vm1987_vm0, %v4246_v13, 0.0  ;;  %v7929_v15 = vld [vmem:[%s8217_s29 + $0x570] sm:$0xff] }
 0x2e0   : > { %v4708_v20 = vadd.f32 %v4707_v18, %v4706_v0  ;;  %v4974_v21 = vadd.f32 %v4973_v19, %v4972_v1 }
 0x2e1   : > { %v3587_v22 = vpop.f32.mrf.mxu2  ;;  %v3907_v23 = vpop.f32.mrf.mxu3 }
 0x2e2   : > { %v3588_v26 = vadd.f32 %v9097_v51, %v3587_v22  ;;  %v3908_v27 = vadd.f32 %v9097_v51, %v3907_v23  ;;  %v2950_v28 = vpop.f32.mrf.mxu0  ;;  %v3270_v29 = vpop.f32.mrf.mxu1 }
 0x2e3   : > { %v2951_v32 = vadd.f32 %v9097_v51, %v2950_v28  ;;  %v3271_v33 = vadd.f32 %v9097_v51, %v3270_v29 }
 0x2e4   : > { %v4374_v34 = vmax.f32 %v3588_v26, 0.0  ;;  %v4502_v35 = vmax.f32 %v3908_v27, 0.0 }
 0x2e5   : > { %v4119_v36 = vmax.f32 %v2951_v32, 0.0  ;;  %v4247_v37 = vmax.f32 %v3271_v33, 0.0  ;;  %7519 = vmatmul.msk.bf16.gmra.mxu0 %vm1987_vm0, %v7800_v24  ;;  %7583 = vmatmul.msk.bf16.gmra.mxu1 %vm1987_vm0, %v7864_v25 }
 0x2e6   : > { %v5239_v38 = vsel %vm1987_vm0, %v4374_v34, 0.0  ;;  %v5505_v39 = vsel %vm1987_vm0, %v4502_v35, 0.0  ;;  %7647 = vmatmul.msk.bf16.gmra.mxu2 %vm1987_vm0, %v7928_v30  ;;  %7711 = vmatmul.msk.bf16.gmra.mxu3 %vm1987_vm0, %v7992_v31 }
 0x2e7   : > { %v5240_v40 = vadd.f32 %v5239_v38, %v5238_v16  ;;  %v5506_v41 = vadd.f32 %v5505_v39, %v5504_v17  ;;  %v4709_v42 = vsel %vm1987_vm0, %v4119_v36, 0.0  ;;  %v4975_v43 = vsel %vm1987_vm0, %v4247_v37, 0.0  ;;  %v7993_v16 = vld [vmem:[%s8217_s29 + $0x770] sm:$0xff] }
 0x2e8   : > { %v4710_v47 = vadd.f32 %v4709_v42, %v4708_v20  ;;  %v4976_v7 = vadd.f32 %v4975_v43, %v4974_v21 }
 0x2e9   : > { %v3590_v48 = vpop.f32.mrf.mxu2  ;;  %v3910_v49 = vpop.f32.mrf.mxu3 }
 0x2ea   : > { %v3591_v50 = vadd.f32 %v9097_v51, %v3590_v48  ;;  %v3911_v52 = vadd.f32 %v9097_v51, %v3910_v49  ;;  %v2952_v53 = vpop.f32.mrf.mxu0  ;;  %v3272_v54 = vpop.f32.mrf.mxu1 }
 0x2eb   : > { %v2953_v55 = vadd.f32 %v9097_v51, %v2952_v53  ;;  %v3273_v56 = vadd.f32 %v9097_v51, %v3272_v54 }
 0x2ec   : > { %v4375_v57 = vmax.f32 %v3591_v50, 0.0  ;;  %v4503_v58 = vmax.f32 %v3911_v52, 0.0 }
 0x2ed   : > { %v4120_v59 = vmax.f32 %v2953_v55, 0.0  ;;  %v4248_v60 = vmax.f32 %v3273_v56, 0.0  ;;  %v7802_v56 = vld [vmem:[%s8217_s29 + $0x178] sm:$0xff] }
 0x2ee   : > { %v5241_v63 = vsel %vm1987_vm0, %v4375_v57, 0.0  ;;  %v5507_v0 = vsel %vm1987_vm0, %v4503_v58, 0.0  ;;  %v7866_v57 = vld [vmem:[%s8217_s29 + $0x378] sm:$0xff] }
 0x2ef   : > { %v5242_v1 = vadd.f32 %v5241_v63, %v5240_v40  ;;  %v5508_v2 = vadd.f32 %v5507_v0, %v5506_v41  ;;  %v4711_v3 = vsel %vm1987_vm0, %v4120_v59, 0.0  ;;  %v4977_v44 = vsel %vm1987_vm0, %v4248_v60, 0.0  ;;  %v7930_v0 = vld [vmem:[%s8217_s29 + $0x578] sm:$0xff] }
 0x2f0   : > { %v4712_v4 = vadd.f32 %v4711_v3, %v4710_v47  ;;  %v4978_v5 = vadd.f32 %v4977_v44, %v4976_v7 }
 0x2f1   : > { %v3592_v6 = vpop.f32.mrf.mxu2  ;;  %v3912_v8 = vpop.f32.mrf.mxu3 }
 0x2f2   : > { %v3593_v11 = vadd.f32 %v9097_v51, %v3592_v6  ;;  %v3913_v12 = vadd.f32 %v9097_v51, %v3912_v8  ;;  %v2955_v13 = vpop.f32.mrf.mxu0  ;;  %v3275_v14 = vpop.f32.mrf.mxu1 }
 0x2f3   : > { %v2956_v17 = vadd.f32 %v9097_v51, %v2955_v13  ;;  %v3276_v18 = vadd.f32 %v9097_v51, %v3275_v14 }
 0x2f4   : > { %v4376_v19 = vmax.f32 %v3593_v11, 0.0  ;;  %v4504_v20 = vmax.f32 %v3913_v12, 0.0 }
 0x2f5   : > { %v4121_v21 = vmax.f32 %v2956_v17, 0.0  ;;  %v4249_v22 = vmax.f32 %v3276_v18, 0.0  ;;  %7520 = vmatmul.msk.bf16.gmra.mxu0 %vm1987_vm0, %v7801_v9  ;;  %7584 = vmatmul.msk.bf16.gmra.mxu1 %vm1987_vm0, %v7865_v10 }
 0x2f6   : > { %v5243_v23 = vsel %vm1987_vm0, %v4376_v19, 0.0  ;;  %v5509_v24 = vsel %vm1987_vm0, %v4504_v20, 0.0  ;;  %7648 = vmatmul.msk.bf16.gmra.mxu2 %vm1987_vm0, %v7929_v15  ;;  %7712 = vmatmul.msk.bf16.gmra.mxu3 %vm1987_vm0, %v7993_v16 }
 0x2f7   : > { %v5244_v25 = vadd.f32 %v5243_v23, %v5242_v1  ;;  %v5510_v26 = vadd.f32 %v5509_v24, %v5508_v2  ;;  %v4713_v27 = vsel %vm1987_vm0, %v4121_v21, 0.0  ;;  %v4979_v28 = vsel %vm1987_vm0, %v4249_v22, 0.0  ;;  %v7994_v1 = vld [vmem:[%s8217_s29 + $0x778] sm:$0xff] }
 0x2f8   : > { %v4714_v29 = vadd.f32 %v4713_v27, %v4712_v4  ;;  %v4980_v30 = vadd.f32 %v4979_v28, %v4978_v5 }
 0x2f9   : > { %v3595_v31 = vpop.f32.mrf.mxu2  ;;  %v3915_v32 = vpop.f32.mrf.mxu3 }
 0x2fa   : > { %v3596_v33 = vadd.f32 %v9097_v51, %v3595_v31  ;;  %v3916_v34 = vadd.f32 %v9097_v51, %v3915_v32  ;;  %v2957_v35 = vpop.f32.mrf.mxu0  ;;  %v3277_v36 = vpop.f32.mrf.mxu1 }
 0x2fb   : > { %v2958_v37 = vadd.f32 %v9097_v51, %v2957_v35  ;;  %v3278_v38 = vadd.f32 %v9097_v51, %v3277_v36 }
 0x2fc   : > { %v4377_v39 = vmax.f32 %v3596_v33, 0.0  ;;  %v4505_v40 = vmax.f32 %v3916_v34, 0.0 }
 0x2fd   : > { %v4122_v41 = vmax.f32 %v2958_v37, 0.0  ;;  %v4250_v42 = vmax.f32 %v3278_v38, 0.0  ;;  %v7803_v38 = vld [vmem:[%s8217_s29 + $0x180] sm:$0xff] }
 0x2fe   : > { %v5245_v43 = vsel %vm1987_vm0, %v4377_v39, 0.0  ;;  %v5511_v47 = vsel %vm1987_vm0, %v4505_v40, 0.0  ;;  %v7867_v39 = vld [vmem:[%s8217_s29 + $0x380] sm:$0xff] }
 0x2ff   : > { %v5246_v7 = vadd.f32 %v5245_v43, %v5244_v25  ;;  %v5512_v48 = vadd.f32 %v5511_v47, %v5510_v26  ;;  %v4715_v49 = vsel %vm1987_vm0, %v4122_v41, 0.0  ;;  %v4981_v50 = vsel %vm1987_vm0, %v4250_v42, 0.0  ;;  %v7931_v47 = vld [vmem:[%s8217_s29 + $0x580] sm:$0xff] }
 0x300   : > { %v4716_v52 = vadd.f32 %v4715_v49, %v4714_v29  ;;  %v4982_v53 = vadd.f32 %v4981_v50, %v4980_v30 }
 0x301   : > { %v3597_v54 = vpop.f32.mrf.mxu2  ;;  %v3917_v55 = vpop.f32.mrf.mxu3 }
 0x302   : > { %v3598_v58 = vadd.f32 %v9097_v51, %v3597_v54  ;;  %v3918_v59 = vadd.f32 %v9097_v51, %v3917_v55  ;;  %v2960_v60 = vpop.f32.mrf.mxu0  ;;  %v3280_v63 = vpop.f32.mrf.mxu1 }
 0x303   : > { %v2961_v2 = vadd.f32 %v9097_v51, %v2960_v60  ;;  %v3281_v3 = vadd.f32 %v9097_v51, %v3280_v63 }
 0x304   : > { %v4378_v44 = vmax.f32 %v3598_v58, 0.0  ;;  %v4506_v4 = vmax.f32 %v3918_v59, 0.0 }
 0x305   : > { %v4123_v5 = vmax.f32 %v2961_v2, 0.0  ;;  %v4251_v6 = vmax.f32 %v3281_v3, 0.0  ;;  %7521 = vmatmul.msk.bf16.gmra.mxu0 %vm1987_vm0, %v7802_v56  ;;  %7585 = vmatmul.msk.bf16.gmra.mxu1 %vm1987_vm0, %v7866_v57 }
 0x306   : > { %v5247_v8 = vsel %vm1987_vm0, %v4378_v44, 0.0  ;;  %v5513_v9 = vsel %vm1987_vm0, %v4506_v4, 0.0  ;;  %7649 = vmatmul.msk.bf16.gmra.mxu2 %vm1987_vm0, %v7930_v0  ;;  %7713 = vmatmul.msk.bf16.gmra.mxu3 %vm1987_vm0, %v7994_v1 }
 0x307   : > { %v5248_v10 = vadd.f32 %v5247_v8, %v5246_v7  ;;  %v5514_v11 = vadd.f32 %v5513_v9, %v5512_v48  ;;  %v4717_v12 = vsel %vm1987_vm0, %v4123_v5, 0.0  ;;  %v4983_v13 = vsel %vm1987_vm0, %v4251_v6, 0.0  ;;  %v7995_v7 = vld [vmem:[%s8217_s29 + $0x780] sm:$0xff] }
 0x308   : > { %v4718_v14 = vadd.f32 %v4717_v12, %v4716_v52  ;;  %v4984_v15 = vadd.f32 %v4983_v13, %v4982_v53 }
 0x309   : > { %v3600_v16 = vpop.f32.mrf.mxu2  ;;  %v3920_v17 = vpop.f32.mrf.mxu3 }
 0x30a   : > { %v3601_v18 = vadd.f32 %v9097_v51, %v3600_v16  ;;  %v3921_v19 = vadd.f32 %v9097_v51, %v3920_v17  ;;  %v2962_v20 = vpop.f32.mrf.mxu0  ;;  %v3282_v21 = vpop.f32.mrf.mxu1 }
 0x30b   : > { %v2963_v22 = vadd.f32 %v9097_v51, %v2962_v20  ;;  %v3283_v23 = vadd.f32 %v9097_v51, %v3282_v21 }
 0x30c   : > { %v4379_v24 = vmax.f32 %v3601_v18, 0.0  ;;  %v4507_v25 = vmax.f32 %v3921_v19, 0.0 }
 0x30d   : > { %v4124_v26 = vmax.f32 %v2963_v22, 0.0  ;;  %v4252_v27 = vmax.f32 %v3283_v23, 0.0  ;;  %v7804_v23 = vld [vmem:[%s8217_s29 + $0x188] sm:$0xff] }
 0x30e   : > { %v5249_v28 = vsel %vm1987_vm0, %v4379_v24, 0.0  ;;  %v5515_v29 = vsel %vm1987_vm0, %v4507_v25, 0.0  ;;  %v7868_v24 = vld [vmem:[%s8217_s29 + $0x388] sm:$0xff] }
 0x30f   : > { %v5250_v30 = vadd.f32 %v5249_v28, %v5248_v10  ;;  %v5516_v31 = vadd.f32 %v5515_v29, %v5514_v11  ;;  %v4719_v32 = vsel %vm1987_vm0, %v4124_v26, 0.0  ;;  %v4985_v33 = vsel %vm1987_vm0, %v4252_v27, 0.0  ;;  %v7932_v29 = vld [vmem:[%s8217_s29 + $0x588] sm:$0xff] }
 0x310   : > { %v4720_v34 = vadd.f32 %v4719_v32, %v4718_v14  ;;  %v4986_v35 = vadd.f32 %v4985_v33, %v4984_v15 }
 0x311   : > { %v3602_v36 = vpop.f32.mrf.mxu2  ;;  %v3922_v37 = vpop.f32.mrf.mxu3 }
 0x312   : > { %v3603_v40 = vadd.f32 %v9097_v51, %v3602_v36  ;;  %v3923_v41 = vadd.f32 %v9097_v51, %v3922_v37  ;;  %v2965_v42 = vpop.f32.mrf.mxu0  ;;  %v3285_v43 = vpop.f32.mrf.mxu1 }
 0x313   : > { %v2966_v48 = vadd.f32 %v9097_v51, %v2965_v42  ;;  %v3286_v49 = vadd.f32 %v9097_v51, %v3285_v43 }
 0x314   : > { %v4380_v50 = vmax.f32 %v3603_v40, 0.0  ;;  %v4508_v52 = vmax.f32 %v3923_v41, 0.0 }
 0x315   : > { %v4125_v53 = vmax.f32 %v2966_v48, 0.0  ;;  %v4253_v54 = vmax.f32 %v3286_v49, 0.0  ;;  %7522 = vmatmul.msk.bf16.gmra.mxu0 %vm1987_vm0, %v7803_v38  ;;  %7586 = vmatmul.msk.bf16.gmra.mxu1 %vm1987_vm0, %v7867_v39 }
 0x316   : > { %v5251_v55 = vsel %vm1987_vm0, %v4380_v50, 0.0  ;;  %v5517_v56 = vsel %vm1987_vm0, %v4508_v52, 0.0  ;;  %7650 = vmatmul.msk.bf16.gmra.mxu2 %vm1987_vm0, %v7931_v47  ;;  %7714 = vmatmul.msk.bf16.gmra.mxu3 %vm1987_vm0, %v7995_v7 }
 0x317   : > { %v5252_v57 = vadd.f32 %v5251_v55, %v5250_v30  ;;  %v5518_v58 = vadd.f32 %v5517_v56, %v5516_v31  ;;  %v4721_v59 = vsel %vm1987_vm0, %v4125_v53, 0.0  ;;  %v4987_v60 = vsel %vm1987_vm0, %v4253_v54, 0.0  ;;  %v7996_v30 = vld [vmem:[%s8217_s29 + $0x788] sm:$0xff] }
 0x318   : > { %v4722_v63 = vadd.f32 %v4721_v59, %v4720_v34  ;;  %v4988_v0 = vadd.f32 %v4987_v60, %v4986_v35 }
 0x319   : > { %v3605_v1 = vpop.f32.mrf.mxu2  ;;  %v3925_v2 = vpop.f32.mrf.mxu3 }
 0x31a   : > { %v3606_v3 = vadd.f32 %v9097_v51, %v3605_v1  ;;  %v3926_v44 = vadd.f32 %v9097_v51, %v3925_v2  ;;  %v2967_v4 = vpop.f32.mrf.mxu0  ;;  %v3287_v5 = vpop.f32.mrf.mxu1 }
 0x31b   : > { %v2968_v6 = vadd.f32 %v9097_v51, %v2967_v4  ;;  %v3288_v8 = vadd.f32 %v9097_v51, %v3287_v5 }
 0x31c   : > { %v4381_v9 = vmax.f32 %v3606_v3, 0.0  ;;  %v4509_v10 = vmax.f32 %v3926_v44, 0.0 }
 0x31d   : > { %v4126_v11 = vmax.f32 %v2968_v6, 0.0  ;;  %v4254_v12 = vmax.f32 %v3288_v8, 0.0  ;;  %v7805_v8 = vld [vmem:[%s8217_s29 + $0x190] sm:$0xff] }
 0x31e   : > { %v5253_v13 = vsel %vm1987_vm0, %v4381_v9, 0.0  ;;  %v5519_v14 = vsel %vm1987_vm0, %v4509_v10, 0.0  ;;  %v7869_v9 = vld [vmem:[%s8217_s29 + $0x390] sm:$0xff] }
 0x31f   : > { %v5254_v15 = vadd.f32 %v5253_v13, %v5252_v57  ;;  %v5520_v16 = vadd.f32 %v5519_v14, %v5518_v58  ;;  %v4723_v17 = vsel %vm1987_vm0, %v4126_v11, 0.0  ;;  %v4989_v18 = vsel %vm1987_vm0, %v4254_v12, 0.0  ;;  %v7933_v14 = vld [vmem:[%s8217_s29 + $0x590] sm:$0xff] }
 0x320   : > { %v4724_v19 = vadd.f32 %v4723_v17, %v4722_v63  ;;  %v4990_v20 = vadd.f32 %v4989_v18, %v4988_v0 }
 0x321   : > { %v3607_v21 = vpop.f32.mrf.mxu2  ;;  %v3927_v22 = vpop.f32.mrf.mxu3 }
 0x322   : > { %v3608_v25 = vadd.f32 %v9097_v51, %v3607_v21  ;;  %v3928_v26 = vadd.f32 %v9097_v51, %v3927_v22  ;;  %v2970_v27 = vpop.f32.mrf.mxu0  ;;  %v3290_v28 = vpop.f32.mrf.mxu1 }
 0x323   : > { %v2971_v31 = vadd.f32 %v9097_v51, %v2970_v27  ;;  %v3291_v32 = vadd.f32 %v9097_v51, %v3290_v28 }
 0x324   : > { %v4382_v33 = vmax.f32 %v3608_v25, 0.0  ;;  %v4510_v34 = vmax.f32 %v3928_v26, 0.0 }
 0x325   : > { %v4127_v35 = vmax.f32 %v2971_v31, 0.0  ;;  %v4255_v36 = vmax.f32 %v3291_v32, 0.0  ;;  %7523 = vmatmul.msk.bf16.gmra.mxu0 %vm1987_vm0, %v7804_v23  ;;  %7587 = vmatmul.msk.bf16.gmra.mxu1 %vm1987_vm0, %v7868_v24 }
 0x326   : > { %v5255_v37 = vsel %vm1987_vm0, %v4382_v33, 0.0  ;;  %v5521_v38 = vsel %vm1987_vm0, %v4510_v34, 0.0  ;;  %7651 = vmatmul.msk.bf16.gmra.mxu2 %vm1987_vm0, %v7932_v29  ;;  %7715 = vmatmul.msk.bf16.gmra.mxu3 %vm1987_vm0, %v7996_v30 }
 0x327   : > { %v5256_v39 = vadd.f32 %v5255_v37, %v5254_v15  ;;  %v5522_v40 = vadd.f32 %v5521_v38, %v5520_v16  ;;  %v4725_v41 = vsel %vm1987_vm0, %v4127_v35, 0.0  ;;  %v4991_v42 = vsel %vm1987_vm0, %v4255_v36, 0.0  ;;  %v7997_v15 = vld [vmem:[%s8217_s29 + $0x790] sm:$0xff] }
 0x328   : > { %v4726_v43 = vadd.f32 %v4725_v41, %v4724_v19  ;;  %v4992_v47 = vadd.f32 %v4991_v42, %v4990_v20 }
 0x329   : > { %v3610_v7 = vpop.f32.mrf.mxu2  ;;  %v3930_v48 = vpop.f32.mrf.mxu3 }
 0x32a   : > { %v3611_v49 = vadd.f32 %v9097_v51, %v3610_v7  ;;  %v3931_v50 = vadd.f32 %v9097_v51, %v3930_v48  ;;  %v2972_v52 = vpop.f32.mrf.mxu0  ;;  %v3292_v53 = vpop.f32.mrf.mxu1 }
 0x32b   : > { %v2973_v54 = vadd.f32 %v9097_v51, %v2972_v52  ;;  %v3293_v55 = vadd.f32 %v9097_v51, %v3292_v53 }
 0x32c   : > { %v4383_v56 = vmax.f32 %v3611_v49, 0.0  ;;  %v4511_v57 = vmax.f32 %v3931_v50, 0.0 }
 0x32d   : > { %v4128_v58 = vmax.f32 %v2973_v54, 0.0  ;;  %v4256_v59 = vmax.f32 %v3293_v55, 0.0  ;;  %v7806_v55 = vld [vmem:[%s8217_s29 + $0x198] sm:$0xff] }
 0x32e   : > { %v5257_v60 = vsel %vm1987_vm0, %v4383_v56, 0.0  ;;  %v5523_v63 = vsel %vm1987_vm0, %v4511_v57, 0.0  ;;  %v7870_v56 = vld [vmem:[%s8217_s29 + $0x398] sm:$0xff] }
 0x32f   : > { %v5258_v0 = vadd.f32 %v5257_v60, %v5256_v39  ;;  %v5524_v1 = vadd.f32 %v5523_v63, %v5522_v40  ;;  %v4727_v2 = vsel %vm1987_vm0, %v4128_v58, 0.0  ;;  %v4993_v3 = vsel %vm1987_vm0, %v4256_v59, 0.0  ;;  %v7934_v63 = vld [vmem:[%s8217_s29 + $0x598] sm:$0xff] }
 0x330   : > { %v4728_v44 = vadd.f32 %v4727_v2, %v4726_v43  ;;  %v4994_v4 = vadd.f32 %v4993_v3, %v4992_v47 }
 0x331   : > { %v3612_v5 = vpop.f32.mrf.mxu2  ;;  %v3932_v6 = vpop.f32.mrf.mxu3 }
 0x332   : > { %v3613_v10 = vadd.f32 %v9097_v51, %v3612_v5  ;;  %v3933_v11 = vadd.f32 %v9097_v51, %v3932_v6  ;;  %v2975_v12 = vpop.f32.mrf.mxu0  ;;  %v3295_v13 = vpop.f32.mrf.mxu1 }
 0x333   : > { %v2976_v16 = vadd.f32 %v9097_v51, %v2975_v12  ;;  %v3296_v17 = vadd.f32 %v9097_v51, %v3295_v13 }
 0x334   : > { %v4384_v18 = vmax.f32 %v3613_v10, 0.0  ;;  %v4512_v19 = vmax.f32 %v3933_v11, 0.0 }
 0x335   : > { %v4129_v20 = vmax.f32 %v2976_v16, 0.0  ;;  %v4257_v21 = vmax.f32 %v3296_v17, 0.0  ;;  %7524 = vmatmul.msk.bf16.gmra.mxu0 %vm1987_vm0, %v7805_v8  ;;  %7588 = vmatmul.msk.bf16.gmra.mxu1 %vm1987_vm0, %v7869_v9 }
 0x336   : > { %v5259_v22 = vsel %vm1987_vm0, %v4384_v18, 0.0  ;;  %v5525_v23 = vsel %vm1987_vm0, %v4512_v19, 0.0  ;;  %7652 = vmatmul.msk.bf16.gmra.mxu2 %vm1987_vm0, %v7933_v14  ;;  %7716 = vmatmul.msk.bf16.gmra.mxu3 %vm1987_vm0, %v7997_v15 }
 0x337   : > { %v5260_v24 = vadd.f32 %v5259_v22, %v5258_v0  ;;  %v5526_v25 = vadd.f32 %v5525_v23, %v5524_v1  ;;  %v4729_v26 = vsel %vm1987_vm0, %v4129_v20, 0.0  ;;  %v4995_v27 = vsel %vm1987_vm0, %v4257_v21, 0.0  ;;  %v7998_v0 = vld [vmem:[%s8217_s29 + $0x798] sm:$0xff]  ;;  %v9360_v21 = vld [vmem:[%s10199_s1 + $0x20] ss:$0 sm:$0xff] }
 0x338   : > { %v4730_v28 = vadd.f32 %v4729_v26, %v4728_v44  ;;  %v4996_v29 = vadd.f32 %v4995_v27, %v4994_v4 }
 0x339   : > { %v3615_v30 = vpop.f32.mrf.mxu2  ;;  %v3935_v31 = vpop.f32.mrf.mxu3 }
 0x33a   : > { %v3616_v32 = vadd.f32 %v9097_v51, %v3615_v30  ;;  %v3936_v33 = vadd.f32 %v9097_v51, %v3935_v31  ;;  %v2977_v34 = vpop.f32.mrf.mxu0  ;;  %v3297_v35 = vpop.f32.mrf.mxu1 }
 0x33b   : > { %v2978_v36 = vadd.f32 %v9097_v51, %v2977_v34  ;;  %v3298_v37 = vadd.f32 %v9097_v51, %v3297_v35 }
 0x33c   : > { %v4385_v38 = vmax.f32 %v3616_v32, 0.0  ;;  %v4513_v39 = vmax.f32 %v3936_v33, 0.0 }
 0x33d   : > { %v4130_v40 = vmax.f32 %v2978_v36, 0.0  ;;  %v4258_v41 = vmax.f32 %v3298_v37, 0.0  ;;  %v7807_v37 = vld [vmem:[%s8217_s29 + $0x1a0] sm:$0xff] }
 0x33e   : > { %v5261_v42 = vsel %vm1987_vm0, %v4385_v38, 0.0  ;;  %v5527_v43 = vsel %vm1987_vm0, %v4513_v39, 0.0  ;;  %v7871_v38 = vld [vmem:[%s8217_s29 + $0x3a0] sm:$0xff] }
 0x33f   : > { %v5262_v47 = vadd.f32 %v5261_v42, %v5260_v24  ;;  %v5528_v7 = vadd.f32 %v5527_v43, %v5526_v25  ;;  %v4731_v48 = vsel %vm1987_vm0, %v4130_v40, 0.0  ;;  %v4997_v49 = vsel %vm1987_vm0, %v4258_v41, 0.0  ;;  %v7935_v43 = vld [vmem:[%s8217_s29 + $0x5a0] sm:$0xff] }
 0x340   : > { %v4732_v50 = vadd.f32 %v4731_v48, %v4730_v28  ;;  %v4998_v52 = vadd.f32 %v4997_v49, %v4996_v29 }
 0x341   : > { %v3617_v53 = vpop.f32.mrf.mxu2  ;;  %v3937_v54 = vpop.f32.mrf.mxu3 }
 0x342   : > { %v3618_v57 = vadd.f32 %v9097_v51, %v3617_v53  ;;  %v3938_v58 = vadd.f32 %v9097_v51, %v3937_v54  ;;  %v2980_v59 = vpop.f32.mrf.mxu0  ;;  %v3300_v60 = vpop.f32.mrf.mxu1 }
 0x343   : > { %v2981_v1 = vadd.f32 %v9097_v51, %v2980_v59  ;;  %v3301_v2 = vadd.f32 %v9097_v51, %v3300_v60 }
 0x344   : > { %v4386_v3 = vmax.f32 %v3618_v57, 0.0  ;;  %v4514_v44 = vmax.f32 %v3938_v58, 0.0 }
 0x345   : > { %v4131_v4 = vmax.f32 %v2981_v1, 0.0  ;;  %v4259_v5 = vmax.f32 %v3301_v2, 0.0  ;;  %7525 = vmatmul.msk.bf16.gmra.mxu0 %vm1987_vm0, %v7806_v55  ;;  %7589 = vmatmul.msk.bf16.gmra.mxu1 %vm1987_vm0, %v7870_v56 }
 0x346   : > { %v5263_v6 = vsel %vm1987_vm0, %v4386_v3, 0.0  ;;  %v5529_v8 = vsel %vm1987_vm0, %v4514_v44, 0.0  ;;  %7653 = vmatmul.msk.bf16.gmra.mxu2 %vm1987_vm0, %v7934_v63  ;;  %7717 = vmatmul.msk.bf16.gmra.mxu3 %vm1987_vm0, %v7998_v0 }
 0x347   : > { %v5264_v9 = vadd.f32 %v5263_v6, %v5262_v47  ;;  %v5530_v10 = vadd.f32 %v5529_v8, %v5528_v7  ;;  %v4733_v11 = vsel %vm1987_vm0, %v4131_v4, 0.0  ;;  %v4999_v12 = vsel %vm1987_vm0, %v4259_v5, 0.0  ;;  %v7999_v47 = vld [vmem:[%s8217_s29 + $0x7a0] sm:$0xff] }
 0x348   : > { %v4734_v13 = vadd.f32 %v4733_v11, %v4732_v50  ;;  %v5000_v14 = vadd.f32 %v4999_v12, %v4998_v52 }
 0x349   : > { %v3620_v15 = vpop.f32.mrf.mxu2  ;;  %v3940_v16 = vpop.f32.mrf.mxu3 }
 0x34a   : > { %v3621_v17 = vadd.f32 %v9097_v51, %v3620_v15  ;;  %v3941_v18 = vadd.f32 %v9097_v51, %v3940_v16  ;;  %v2982_v19 = vpop.f32.mrf.mxu0  ;;  %v3302_v20 = vpop.f32.mrf.mxu1 }
 0x34b   : > { %v2983_v22 = vadd.f32 %v9360_v21, %v2982_v19  ;;  %v3303_v23 = vadd.f32 %v9360_v21, %v3302_v20 }
 0x34c   : > { %v4387_v24 = vmax.f32 %v3621_v17, 0.0  ;;  %v4515_v25 = vmax.f32 %v3941_v18, 0.0 }
 0x34d   : > { %v4132_v26 = vmax.f32 %v2983_v22, 0.0  ;;  %v4260_v27 = vmax.f32 %v3303_v23, 0.0  ;;  %v7808_v23 = vld [vmem:[%s8217_s29 + $0x1a8] sm:$0xff] }
 0x34e   : > { %v5265_v28 = vsel %vm1987_vm0, %v4387_v24, 0.0  ;;  %v5531_v51 = vsel %vm1987_vm0, %v4515_v25, 0.0  ;;  %v7872_v24 = vld [vmem:[%s8217_s29 + $0x3a8] sm:$0xff] }
 0x34f   : > { %v5266_v29 = vadd.f32 %v5265_v28, %v5264_v9  ;;  %v5532_v30 = vadd.f32 %v5531_v51, %v5530_v10  ;;  %v4735_v31 = vsel %vm1987_vm0, %v4132_v26, 0.0  ;;  %v5001_v32 = vsel %vm1987_vm0, %v4260_v27, 0.0  ;;  %v7936_v51 = vld [vmem:[%s8217_s29 + $0x5a8] sm:$0xff] }
 0x350   : > { %v4736_v33 = vadd.f32 %v4735_v31, %v4734_v13  ;;  %v5002_v34 = vadd.f32 %v5001_v32, %v5000_v14 }
 0x351   : > { %v3622_v35 = vpop.f32.mrf.mxu2  ;;  %v3942_v36 = vpop.f32.mrf.mxu3 }
 0x352   : > { %v3623_v39 = vadd.f32 %v9360_v21, %v3622_v35  ;;  %v3943_v40 = vadd.f32 %v9360_v21, %v3942_v36  ;;  %v2985_v41 = vpop.f32.mrf.mxu0  ;;  %v3305_v42 = vpop.f32.mrf.mxu1 }
 0x353   : > { %v2986_v7 = vadd.f32 %v9360_v21, %v2985_v41  ;;  %v3306_v48 = vadd.f32 %v9360_v21, %v3305_v42 }
 0x354   : > { %v4388_v49 = vmax.f32 %v3623_v39, 0.0  ;;  %v4516_v50 = vmax.f32 %v3943_v40, 0.0 }
 0x355   : > { %v4133_v52 = vmax.f32 %v2986_v7, 0.0  ;;  %v4261_v53 = vmax.f32 %v3306_v48, 0.0  ;;  %7526 = vmatmul.msk.bf16.gmra.mxu0 %vm1987_vm0, %v7807_v37  ;;  %7590 = vmatmul.msk.bf16.gmra.mxu1 %vm1987_vm0, %v7871_v38 }
 0x356   : > { %v5267_v54 = vsel %vm1987_vm0, %v4388_v49, 0.0  ;;  %v5533_v55 = vsel %vm1987_vm0, %v4516_v50, 0.0  ;;  %7654 = vmatmul.msk.bf16.gmra.mxu2 %vm1987_vm0, %v7935_v43  ;;  %7718 = vmatmul.msk.bf16.gmra.mxu3 %vm1987_vm0, %v7999_v47 }
 0x357   : > { %v5268_v56 = vadd.f32 %v5267_v54, %v5266_v29  ;;  %v5534_v57 = vadd.f32 %v5533_v55, %v5532_v30  ;;  %v4737_v58 = vsel %vm1987_vm0, %v4133_v52, 0.0  ;;  %v5003_v59 = vsel %vm1987_vm0, %v4261_v53, 0.0  ;;  %v8000_v29 = vld [vmem:[%s8217_s29 + $0x7a8] sm:$0xff] }
 0x358   : > { %v4738_v60 = vadd.f32 %v4737_v58, %v4736_v33  ;;  %v5004_v63 = vadd.f32 %v5003_v59, %v5002_v34 }
 0x359   : > { %v3625_v0 = vpop.f32.mrf.mxu2  ;;  %v3945_v1 = vpop.f32.mrf.mxu3 }
 0x35a   : > { %v3626_v2 = vadd.f32 %v9360_v21, %v3625_v0  ;;  %v3946_v3 = vadd.f32 %v9360_v21, %v3945_v1  ;;  %v2987_v44 = vpop.f32.mrf.mxu0  ;;  %v3307_v4 = vpop.f32.mrf.mxu1 }
 0x35b   : > { %v2988_v5 = vadd.f32 %v9360_v21, %v2987_v44  ;;  %v3308_v6 = vadd.f32 %v9360_v21, %v3307_v4 }
 0x35c   : > { %v4389_v8 = vmax.f32 %v3626_v2, 0.0  ;;  %v4517_v9 = vmax.f32 %v3946_v3, 0.0 }
 0x35d   : > { %v4134_v10 = vmax.f32 %v2988_v5, 0.0  ;;  %v4262_v11 = vmax.f32 %v3308_v6, 0.0  ;;  %v7809_v6 = vld [vmem:[%s8217_s29 + $0x1b0] sm:$0xff] }
 0x35e   : > { %v5269_v12 = vsel %vm1987_vm0, %v4389_v8, 0.0  ;;  %v5535_v13 = vsel %vm1987_vm0, %v4517_v9, 0.0  ;;  %v7873_v8 = vld [vmem:[%s8217_s29 + $0x3b0] sm:$0xff] }
 0x35f   : > { %v5270_v14 = vadd.f32 %v5269_v12, %v5268_v56  ;;  %v5536_v15 = vadd.f32 %v5535_v13, %v5534_v57  ;;  %v4739_v16 = vsel %vm1987_vm0, %v4134_v10, 0.0  ;;  %v5005_v17 = vsel %vm1987_vm0, %v4262_v11, 0.0  ;;  %v7937_v13 = vld [vmem:[%s8217_s29 + $0x5b0] sm:$0xff] }
 0x360   : > { %v4740_v18 = vadd.f32 %v4739_v16, %v4738_v60  ;;  %v5006_v19 = vadd.f32 %v5005_v17, %v5004_v63 }
 0x361   : > { %v3627_v20 = vpop.f32.mrf.mxu2  ;;  %v3947_v22 = vpop.f32.mrf.mxu3 }
 0x362   : > { %v3628_v25 = vadd.f32 %v9360_v21, %v3627_v20  ;;  %v3948_v26 = vadd.f32 %v9360_v21, %v3947_v22  ;;  %v2990_v27 = vpop.f32.mrf.mxu0  ;;  %v3310_v28 = vpop.f32.mrf.mxu1 }
 0x363   : > { %v2991_v30 = vadd.f32 %v9360_v21, %v2990_v27  ;;  %v3311_v31 = vadd.f32 %v9360_v21, %v3310_v28 }
 0x364   : > { %v4390_v32 = vmax.f32 %v3628_v25, 0.0  ;;  %v4518_v33 = vmax.f32 %v3948_v26, 0.0 }
 0x365   : > { %v4135_v34 = vmax.f32 %v2991_v30, 0.0  ;;  %v4263_v35 = vmax.f32 %v3311_v31, 0.0  ;;  %7527 = vmatmul.msk.bf16.gmra.mxu0 %vm1987_vm0, %v7808_v23  ;;  %7591 = vmatmul.msk.bf16.gmra.mxu1 %vm1987_vm0, %v7872_v24 }
 0x366   : > { %v5271_v36 = vsel %vm1987_vm0, %v4390_v32, 0.0  ;;  %v5537_v37 = vsel %vm1987_vm0, %v4518_v33, 0.0  ;;  %7655 = vmatmul.msk.bf16.gmra.mxu2 %vm1987_vm0, %v7936_v51  ;;  %7719 = vmatmul.msk.bf16.gmra.mxu3 %vm1987_vm0, %v8000_v29 }
 0x367   : > { %v5272_v38 = vadd.f32 %v5271_v36, %v5270_v14  ;;  %v5538_v39 = vadd.f32 %v5537_v37, %v5536_v15  ;;  %v4741_v40 = vsel %vm1987_vm0, %v4135_v34, 0.0  ;;  %v5007_v41 = vsel %vm1987_vm0, %v4263_v35, 0.0  ;;  %v8001_v14 = vld [vmem:[%s8217_s29 + $0x7b0] sm:$0xff] }
 0x368   : > { %v4742_v42 = vadd.f32 %v4741_v40, %v4740_v18  ;;  %v5008_v43 = vadd.f32 %v5007_v41, %v5006_v19 }
 0x369   : > { %v3630_v47 = vpop.f32.mrf.mxu2  ;;  %v3950_v7 = vpop.f32.mrf.mxu3 }
 0x36a   : > { %v3631_v48 = vadd.f32 %v9360_v21, %v3630_v47  ;;  %v3951_v49 = vadd.f32 %v9360_v21, %v3950_v7  ;;  %v2992_v50 = vpop.f32.mrf.mxu0  ;;  %v3312_v52 = vpop.f32.mrf.mxu1 }
 0x36b   : > { %v2993_v53 = vadd.f32 %v9360_v21, %v2992_v50  ;;  %v3313_v54 = vadd.f32 %v9360_v21, %v3312_v52 }
 0x36c   : > { %v4391_v55 = vmax.f32 %v3631_v48, 0.0  ;;  %v4519_v56 = vmax.f32 %v3951_v49, 0.0 }
 0x36d   : > { %v4136_v57 = vmax.f32 %v2993_v53, 0.0  ;;  %v4264_v58 = vmax.f32 %v3313_v54, 0.0  ;;  %v7810_v54 = vld [vmem:[%s8217_s29 + $0x1b8] sm:$0xff] }
 0x36e   : > { %v5273_v59 = vsel %vm1987_vm0, %v4391_v55, 0.0  ;;  %v5539_v60 = vsel %vm1987_vm0, %v4519_v56, 0.0  ;;  %v7874_v55 = vld [vmem:[%s8217_s29 + $0x3b8] sm:$0xff] }
 0x36f   : > { %v5274_v63 = vadd.f32 %v5273_v59, %v5272_v38  ;;  %v5540_v0 = vadd.f32 %v5539_v60, %v5538_v39  ;;  %v4743_v1 = vsel %vm1987_vm0, %v4136_v57, 0.0  ;;  %v5009_v2 = vsel %vm1987_vm0, %v4264_v58, 0.0  ;;  %v7938_v60 = vld [vmem:[%s8217_s29 + $0x5b8] sm:$0xff] }
 0x370   : > { %v4744_v3 = vadd.f32 %v4743_v1, %v4742_v42  ;;  %v5010_v44 = vadd.f32 %v5009_v2, %v5008_v43 }
 0x371   : > { %v3632_v4 = vpop.f32.mrf.mxu2  ;;  %v3952_v5 = vpop.f32.mrf.mxu3 }
 0x372   : > { %v3633_v9 = vadd.f32 %v9360_v21, %v3632_v4  ;;  %v3953_v10 = vadd.f32 %v9360_v21, %v3952_v5  ;;  %v2995_v11 = vpop.f32.mrf.mxu0  ;;  %v3315_v12 = vpop.f32.mrf.mxu1 }
 0x373   : > { %v2996_v15 = vadd.f32 %v9360_v21, %v2995_v11  ;;  %v3316_v16 = vadd.f32 %v9360_v21, %v3315_v12 }
 0x374   : > { %v4392_v17 = vmax.f32 %v3633_v9, 0.0  ;;  %v4520_v18 = vmax.f32 %v3953_v10, 0.0 }
 0x375   : > { %v4137_v19 = vmax.f32 %v2996_v15, 0.0  ;;  %v4265_v20 = vmax.f32 %v3316_v16, 0.0  ;;  %7528 = vmatmul.msk.bf16.gmra.mxu0 %vm1987_vm0, %v7809_v6  ;;  %7592 = vmatmul.msk.bf16.gmra.mxu1 %vm1987_vm0, %v7873_v8 }
 0x376   : > { %v5275_v22 = vsel %vm1987_vm0, %v4392_v17, 0.0  ;;  %v5541_v23 = vsel %vm1987_vm0, %v4520_v18, 0.0  ;;  %7656 = vmatmul.msk.bf16.gmra.mxu2 %vm1987_vm0, %v7937_v13  ;;  %7720 = vmatmul.msk.bf16.gmra.mxu3 %vm1987_vm0, %v8001_v14 }
 0x377   : > { %v5276_v24 = vadd.f32 %v5275_v22, %v5274_v63  ;;  %v5542_v25 = vadd.f32 %v5541_v23, %v5540_v0  ;;  %v4745_v26 = vsel %vm1987_vm0, %v4137_v19, 0.0  ;;  %v5011_v27 = vsel %vm1987_vm0, %v4265_v20, 0.0  ;;  %v8002_v63 = vld [vmem:[%s8217_s29 + $0x7b8] sm:$0xff] }
 0x378   : > { %v4746_v28 = vadd.f32 %v4745_v26, %v4744_v3  ;;  %v5012_v51 = vadd.f32 %v5011_v27, %v5010_v44 }
 0x379   : > { %v3635_v29 = vpop.f32.mrf.mxu2  ;;  %v3955_v30 = vpop.f32.mrf.mxu3 }
 0x37a   : > { %v3636_v31 = vadd.f32 %v9360_v21, %v3635_v29  ;;  %v3956_v32 = vadd.f32 %v9360_v21, %v3955_v30  ;;  %v2997_v33 = vpop.f32.mrf.mxu0  ;;  %v3317_v34 = vpop.f32.mrf.mxu1 }
 0x37b   : > { %v2998_v35 = vadd.f32 %v9360_v21, %v2997_v33  ;;  %v3318_v36 = vadd.f32 %v9360_v21, %v3317_v34 }
 0x37c   : > { %v4393_v37 = vmax.f32 %v3636_v31, 0.0  ;;  %v4521_v38 = vmax.f32 %v3956_v32, 0.0 }
 0x37d   : > { %v4138_v39 = vmax.f32 %v2998_v35, 0.0  ;;  %v4266_v40 = vmax.f32 %v3318_v36, 0.0  ;;  %v7811_v36 = vld [vmem:[%s8217_s29 + $0x1c0] sm:$0xff] }
 0x37e   : > { %v5277_v41 = vsel %vm1987_vm0, %v4393_v37, 0.0  ;;  %v5543_v42 = vsel %vm1987_vm0, %v4521_v38, 0.0  ;;  %v7875_v37 = vld [vmem:[%s8217_s29 + $0x3c0] sm:$0xff] }
 0x37f   : > { %v5278_v43 = vadd.f32 %v5277_v41, %v5276_v24  ;;  %v5544_v47 = vadd.f32 %v5543_v42, %v5542_v25  ;;  %v4747_v7 = vsel %vm1987_vm0, %v4138_v39, 0.0  ;;  %v5013_v48 = vsel %vm1987_vm0, %v4266_v40, 0.0  ;;  %v7939_v42 = vld [vmem:[%s8217_s29 + $0x5c0] sm:$0xff] }
 0x380   : > { %v4748_v49 = vadd.f32 %v4747_v7, %v4746_v28  ;;  %v5014_v50 = vadd.f32 %v5013_v48, %v5012_v51 }
 0x381   : > { %v3637_v52 = vpop.f32.mrf.mxu2  ;;  %v3957_v53 = vpop.f32.mrf.mxu3 }
 0x382   : > { %v3638_v56 = vadd.f32 %v9360_v21, %v3637_v52  ;;  %v3958_v57 = vadd.f32 %v9360_v21, %v3957_v53  ;;  %v3000_v58 = vpop.f32.mrf.mxu0  ;;  %v3320_v59 = vpop.f32.mrf.mxu1 }
 0x383   : > { %v3001_v0 = vadd.f32 %v9360_v21, %v3000_v58  ;;  %v3321_v1 = vadd.f32 %v9360_v21, %v3320_v59 }
 0x384   : > { %v4394_v2 = vmax.f32 %v3638_v56, 0.0  ;;  %v4522_v3 = vmax.f32 %v3958_v57, 0.0 }
 0x385   : > { %v4139_v44 = vmax.f32 %v3001_v0, 0.0  ;;  %v4267_v4 = vmax.f32 %v3321_v1, 0.0  ;;  %7529 = vmatmul.msk.bf16.gmra.mxu0 %vm1987_vm0, %v7810_v54  ;;  %7593 = vmatmul.msk.bf16.gmra.mxu1 %vm1987_vm0, %v7874_v55 }
 0x386   : > { %v5279_v5 = vsel %vm1987_vm0, %v4394_v2, 0.0  ;;  %v5545_v6 = vsel %vm1987_vm0, %v4522_v3, 0.0  ;;  %7657 = vmatmul.msk.bf16.gmra.mxu2 %vm1987_vm0, %v7938_v60  ;;  %7721 = vmatmul.msk.bf16.gmra.mxu3 %vm1987_vm0, %v8002_v63 }
 0x387   : > { %v5280_v8 = vadd.f32 %v5279_v5, %v5278_v43  ;;  %v5546_v9 = vadd.f32 %v5545_v6, %v5544_v47  ;;  %v4749_v10 = vsel %vm1987_vm0, %v4139_v44, 0.0  ;;  %v5015_v11 = vsel %vm1987_vm0, %v4267_v4, 0.0  ;;  %v8003_v43 = vld [vmem:[%s8217_s29 + $0x7c0] sm:$0xff] }
 0x388   : > { %v4750_v12 = vadd.f32 %v4749_v10, %v4748_v49  ;;  %v5016_v13 = vadd.f32 %v5015_v11, %v5014_v50 }
 0x389   : > { %v3640_v14 = vpop.f32.mrf.mxu2  ;;  %v3960_v15 = vpop.f32.mrf.mxu3 }
 0x38a   : > { %v3641_v16 = vadd.f32 %v9360_v21, %v3640_v14  ;;  %v3961_v17 = vadd.f32 %v9360_v21, %v3960_v15  ;;  %v3002_v18 = vpop.f32.mrf.mxu0  ;;  %v3322_v19 = vpop.f32.mrf.mxu1 }
 0x38b   : > { %v3003_v20 = vadd.f32 %v9360_v21, %v3002_v18  ;;  %v3323_v22 = vadd.f32 %v9360_v21, %v3322_v19 }
 0x38c   : > { %v4395_v23 = vmax.f32 %v3641_v16, 0.0  ;;  %v4523_v24 = vmax.f32 %v3961_v17, 0.0 }
 0x38d   : > { %v4140_v25 = vmax.f32 %v3003_v20, 0.0  ;;  %v4268_v26 = vmax.f32 %v3323_v22, 0.0  ;;  %v7812_v22 = vld [vmem:[%s8217_s29 + $0x1c8] sm:$0xff] }
 0x38e   : > { %v5281_v27 = vsel %vm1987_vm0, %v4395_v23, 0.0  ;;  %v5547_v28 = vsel %vm1987_vm0, %v4523_v24, 0.0  ;;  %v7876_v23 = vld [vmem:[%s8217_s29 + $0x3c8] sm:$0xff] }
 0x38f   : > { %v5282_v51 = vadd.f32 %v5281_v27, %v5280_v8  ;;  %v5548_v29 = vadd.f32 %v5547_v28, %v5546_v9  ;;  %v4751_v30 = vsel %vm1987_vm0, %v4140_v25, 0.0  ;;  %v5017_v31 = vsel %vm1987_vm0, %v4268_v26, 0.0  ;;  %v7940_v28 = vld [vmem:[%s8217_s29 + $0x5c8] sm:$0xff] }
 0x390   : > { %v4752_v32 = vadd.f32 %v4751_v30, %v4750_v12  ;;  %v5018_v33 = vadd.f32 %v5017_v31, %v5016_v13 }
 0x391   : > { %v3642_v34 = vpop.f32.mrf.mxu2  ;;  %v3962_v35 = vpop.f32.mrf.mxu3 }
 0x392   : > { %v3643_v38 = vadd.f32 %v9360_v21, %v3642_v34  ;;  %v3963_v39 = vadd.f32 %v9360_v21, %v3962_v35  ;;  %v3005_v40 = vpop.f32.mrf.mxu0  ;;  %v3325_v41 = vpop.f32.mrf.mxu1 }
 0x393   : > { %v3006_v47 = vadd.f32 %v9360_v21, %v3005_v40  ;;  %v3326_v7 = vadd.f32 %v9360_v21, %v3325_v41 }
 0x394   : > { %v4396_v48 = vmax.f32 %v3643_v38, 0.0  ;;  %v4524_v49 = vmax.f32 %v3963_v39, 0.0 }
 0x395   : > { %v4141_v50 = vmax.f32 %v3006_v47, 0.0  ;;  %v4269_v52 = vmax.f32 %v3326_v7, 0.0  ;;  %7530 = vmatmul.msk.bf16.gmra.mxu0 %vm1987_vm0, %v7811_v36  ;;  %7594 = vmatmul.msk.bf16.gmra.mxu1 %vm1987_vm0, %v7875_v37 }
 0x396   : > { %v5283_v53 = vsel %vm1987_vm0, %v4396_v48, 0.0  ;;  %v5549_v54 = vsel %vm1987_vm0, %v4524_v49, 0.0  ;;  %7658 = vmatmul.msk.bf16.gmra.mxu2 %vm1987_vm0, %v7939_v42  ;;  %7722 = vmatmul.msk.bf16.gmra.mxu3 %vm1987_vm0, %v8003_v43 }
 0x397   : > { %v5284_v55 = vadd.f32 %v5283_v53, %v5282_v51  ;;  %v5550_v56 = vadd.f32 %v5549_v54, %v5548_v29  ;;  %v4753_v57 = vsel %vm1987_vm0, %v4141_v50, 0.0  ;;  %v5019_v58 = vsel %vm1987_vm0, %v4269_v52, 0.0  ;;  %v8004_v51 = vld [vmem:[%s8217_s29 + $0x7c8] sm:$0xff] }
 0x398   : > { %v4754_v59 = vadd.f32 %v4753_v57, %v4752_v32  ;;  %v5020_v60 = vadd.f32 %v5019_v58, %v5018_v33 }
 0x399   : > { %v3645_v63 = vpop.f32.mrf.mxu2  ;;  %v3965_v0 = vpop.f32.mrf.mxu3 }
 0x39a   : > { %v3646_v1 = vadd.f32 %v9360_v21, %v3645_v63  ;;  %v3966_v2 = vadd.f32 %v9360_v21, %v3965_v0  ;;  %v3007_v3 = vpop.f32.mrf.mxu0  ;;  %v3327_v44 = vpop.f32.mrf.mxu1 }
 0x39b   : > { %v3008_v4 = vadd.f32 %v9360_v21, %v3007_v3  ;;  %v3328_v5 = vadd.f32 %v9360_v21, %v3327_v44 }
 0x39c   : > { %v4397_v6 = vmax.f32 %v3646_v1, 0.0  ;;  %v4525_v8 = vmax.f32 %v3966_v2, 0.0 }
 0x39d   : > { %v4142_v9 = vmax.f32 %v3008_v4, 0.0  ;;  %v4270_v10 = vmax.f32 %v3328_v5, 0.0  ;;  %v7813_v5 = vld [vmem:[%s8217_s29 + $0x1d0] sm:$0xff] }
 0x39e   : > { %v5285_v11 = vsel %vm1987_vm0, %v4397_v6, 0.0  ;;  %v5551_v12 = vsel %vm1987_vm0, %v4525_v8, 0.0  ;;  %v7877_v6 = vld [vmem:[%s8217_s29 + $0x3d0] sm:$0xff] }
 0x39f   : > { %v5286_v13 = vadd.f32 %v5285_v11, %v5284_v55  ;;  %v5552_v14 = vadd.f32 %v5551_v12, %v5550_v56  ;;  %v4755_v15 = vsel %vm1987_vm0, %v4142_v9, 0.0  ;;  %v5021_v16 = vsel %vm1987_vm0, %v4270_v10, 0.0  ;;  %v7941_v12 = vld [vmem:[%s8217_s29 + $0x5d0] sm:$0xff] }
 0x3a0   : > { %v4756_v17 = vadd.f32 %v4755_v15, %v4754_v59  ;;  %v5022_v18 = vadd.f32 %v5021_v16, %v5020_v60 }
 0x3a1   : > { %v3647_v19 = vpop.f32.mrf.mxu2  ;;  %v3967_v20 = vpop.f32.mrf.mxu3 }
 0x3a2   : > { %v3648_v24 = vadd.f32 %v9360_v21, %v3647_v19  ;;  %v3968_v25 = vadd.f32 %v9360_v21, %v3967_v20  ;;  %v3010_v26 = vpop.f32.mrf.mxu0  ;;  %v3330_v27 = vpop.f32.mrf.mxu1 }
 0x3a3   : > { %v3011_v29 = vadd.f32 %v9360_v21, %v3010_v26  ;;  %v3331_v30 = vadd.f32 %v9360_v21, %v3330_v27 }
 0x3a4   : > { %v4398_v31 = vmax.f32 %v3648_v24, 0.0  ;;  %v4526_v32 = vmax.f32 %v3968_v25, 0.0 }
 0x3a5   : > { %v4143_v33 = vmax.f32 %v3011_v29, 0.0  ;;  %v4271_v34 = vmax.f32 %v3331_v30, 0.0  ;;  %7531 = vmatmul.msk.bf16.gmra.mxu0 %vm1987_vm0, %v7812_v22  ;;  %7595 = vmatmul.msk.bf16.gmra.mxu1 %vm1987_vm0, %v7876_v23 }
 0x3a6   : > { %v5287_v35 = vsel %vm1987_vm0, %v4398_v31, 0.0  ;;  %v5553_v36 = vsel %vm1987_vm0, %v4526_v32, 0.0  ;;  %7659 = vmatmul.msk.bf16.gmra.mxu2 %vm1987_vm0, %v7940_v28  ;;  %7723 = vmatmul.msk.bf16.gmra.mxu3 %vm1987_vm0, %v8004_v51 }
 0x3a7   : > { %v5288_v37 = vadd.f32 %v5287_v35, %v5286_v13  ;;  %v5554_v38 = vadd.f32 %v5553_v36, %v5552_v14  ;;  %v4757_v39 = vsel %vm1987_vm0, %v4143_v33, 0.0  ;;  %v5023_v40 = vsel %vm1987_vm0, %v4271_v34, 0.0  ;;  %v8005_v13 = vld [vmem:[%s8217_s29 + $0x7d0] sm:$0xff] }
 0x3a8   : > { %v4758_v41 = vadd.f32 %v4757_v39, %v4756_v17  ;;  %v5024_v42 = vadd.f32 %v5023_v40, %v5022_v18 }
 0x3a9   : > { %v3650_v43 = vpop.f32.mrf.mxu2  ;;  %v3970_v47 = vpop.f32.mrf.mxu3 }
 0x3aa   : > { %v3651_v7 = vadd.f32 %v9360_v21, %v3650_v43  ;;  %v3971_v48 = vadd.f32 %v9360_v21, %v3970_v47  ;;  %v3012_v49 = vpop.f32.mrf.mxu0  ;;  %v3332_v50 = vpop.f32.mrf.mxu1 }
 0x3ab   : > { %v3013_v52 = vadd.f32 %v9360_v21, %v3012_v49  ;;  %v3333_v53 = vadd.f32 %v9360_v21, %v3332_v50 }
 0x3ac   : > { %v4399_v54 = vmax.f32 %v3651_v7, 0.0  ;;  %v4527_v55 = vmax.f32 %v3971_v48, 0.0 }
 0x3ad   : > { %v4144_v56 = vmax.f32 %v3013_v52, 0.0  ;;  %v4272_v57 = vmax.f32 %v3333_v53, 0.0  ;;  %v7814_v53 = vld [vmem:[%s8217_s29 + $0x1d8] sm:$0xff] }
 0x3ae   : > { %v5289_v58 = vsel %vm1987_vm0, %v4399_v54, 0.0  ;;  %v5555_v59 = vsel %vm1987_vm0, %v4527_v55, 0.0  ;;  %v7878_v54 = vld [vmem:[%s8217_s29 + $0x3d8] sm:$0xff] }
 0x3af   : > { %v5290_v60 = vadd.f32 %v5289_v58, %v5288_v37  ;;  %v5556_v63 = vadd.f32 %v5555_v59, %v5554_v38  ;;  %v4759_v0 = vsel %vm1987_vm0, %v4144_v56, 0.0  ;;  %v5025_v1 = vsel %vm1987_vm0, %v4272_v57, 0.0  ;;  %v7942_v59 = vld [vmem:[%s8217_s29 + $0x5d8] sm:$0xff] }
 0x3b0   : > { %v4760_v2 = vadd.f32 %v4759_v0, %v4758_v41  ;;  %v5026_v3 = vadd.f32 %v5025_v1, %v5024_v42 }
 0x3b1   : > { %v3652_v44 = vpop.f32.mrf.mxu2  ;;  %v3972_v4 = vpop.f32.mrf.mxu3 }
 0x3b2   : > { %v3653_v8 = vadd.f32 %v9360_v21, %v3652_v44  ;;  %v3973_v9 = vadd.f32 %v9360_v21, %v3972_v4  ;;  %v3015_v10 = vpop.f32.mrf.mxu0  ;;  %v3335_v11 = vpop.f32.mrf.mxu1 }
 0x3b3   : > { %v3016_v14 = vadd.f32 %v9360_v21, %v3015_v10  ;;  %v3336_v15 = vadd.f32 %v9360_v21, %v3335_v11 }
 0x3b4   : > { %v4400_v16 = vmax.f32 %v3653_v8, 0.0  ;;  %v4528_v17 = vmax.f32 %v3973_v9, 0.0 }
 0x3b5   : > { %v4145_v18 = vmax.f32 %v3016_v14, 0.0  ;;  %v4273_v19 = vmax.f32 %v3336_v15, 0.0  ;;  %7532 = vmatmul.msk.bf16.gmra.mxu0 %vm1987_vm0, %v7813_v5  ;;  %7596 = vmatmul.msk.bf16.gmra.mxu1 %vm1987_vm0, %v7877_v6 }
 0x3b6   : > { %v5291_v20 = vsel %vm1987_vm0, %v4400_v16, 0.0  ;;  %v5557_v22 = vsel %vm1987_vm0, %v4528_v17, 0.0  ;;  %7660 = vmatmul.msk.bf16.gmra.mxu2 %vm1987_vm0, %v7941_v12  ;;  %7724 = vmatmul.msk.bf16.gmra.mxu3 %vm1987_vm0, %v8005_v13 }
 0x3b7   : > { %v5292_v23 = vadd.f32 %v5291_v20, %v5290_v60  ;;  %v5558_v24 = vadd.f32 %v5557_v22, %v5556_v63  ;;  %v4761_v25 = vsel %vm1987_vm0, %v4145_v18, 0.0  ;;  %v5027_v26 = vsel %vm1987_vm0, %v4273_v19, 0.0  ;;  %v8006_v60 = vld [vmem:[%s8217_s29 + $0x7d8] sm:$0xff] }
 0x3b8   : > { %v4762_v27 = vadd.f32 %v4761_v25, %v4760_v2  ;;  %v5028_v28 = vadd.f32 %v5027_v26, %v5026_v3 }
 0x3b9   : > { %v3655_v51 = vpop.f32.mrf.mxu2  ;;  %v3975_v29 = vpop.f32.mrf.mxu3 }
 0x3ba   : > { %v3656_v30 = vadd.f32 %v9360_v21, %v3655_v51  ;;  %v3976_v31 = vadd.f32 %v9360_v21, %v3975_v29  ;;  %v3017_v32 = vpop.f32.mrf.mxu0  ;;  %v3337_v33 = vpop.f32.mrf.mxu1 }
 0x3bb   : > { %v3018_v34 = vadd.f32 %v9360_v21, %v3017_v32  ;;  %v3338_v35 = vadd.f32 %v9360_v21, %v3337_v33 }
 0x3bc   : > { %v4401_v36 = vmax.f32 %v3656_v30, 0.0  ;;  %v4529_v37 = vmax.f32 %v3976_v31, 0.0 }
 0x3bd   : > { %v4146_v38 = vmax.f32 %v3018_v34, 0.0  ;;  %v4274_v39 = vmax.f32 %v3338_v35, 0.0  ;;  %v7815_v35 = vld [vmem:[%s8217_s29 + $0x1e0] sm:$0xff] }
 0x3be   : > { %v5293_v40 = vsel %vm1987_vm0, %v4401_v36, 0.0  ;;  %v5559_v41 = vsel %vm1987_vm0, %v4529_v37, 0.0  ;;  %v7879_v36 = vld [vmem:[%s8217_s29 + $0x3e0] sm:$0xff] }
 0x3bf   : > { %v5294_v42 = vadd.f32 %v5293_v40, %v5292_v23  ;;  %v5560_v43 = vadd.f32 %v5559_v41, %v5558_v24  ;;  %v4763_v47 = vsel %vm1987_vm0, %v4146_v38, 0.0  ;;  %v5029_v7 = vsel %vm1987_vm0, %v4274_v39, 0.0  ;;  %v7943_v41 = vld [vmem:[%s8217_s29 + $0x5e0] sm:$0xff] }
 0x3c0   : > { %v4764_v48 = vadd.f32 %v4763_v47, %v4762_v27  ;;  %v5030_v49 = vadd.f32 %v5029_v7, %v5028_v28 }
 0x3c1   : > { %v3657_v50 = vpop.f32.mrf.mxu2  ;;  %v3977_v52 = vpop.f32.mrf.mxu3 }
 0x3c2   : > { %v3658_v55 = vadd.f32 %v9360_v21, %v3657_v50  ;;  %v3978_v56 = vadd.f32 %v9360_v21, %v3977_v52  ;;  %v3020_v57 = vpop.f32.mrf.mxu0  ;;  %v3340_v58 = vpop.f32.mrf.mxu1 }
 0x3c3   : > { %v3021_v63 = vadd.f32 %v9360_v21, %v3020_v57  ;;  %v3341_v0 = vadd.f32 %v9360_v21, %v3340_v58 }
 0x3c4   : > { %v4402_v1 = vmax.f32 %v3658_v55, 0.0  ;;  %v4530_v2 = vmax.f32 %v3978_v56, 0.0 }
 0x3c5   : > { %v4147_v3 = vmax.f32 %v3021_v63, 0.0  ;;  %v4275_v44 = vmax.f32 %v3341_v0, 0.0  ;;  %7533 = vmatmul.msk.bf16.gmra.mxu0 %vm1987_vm0, %v7814_v53  ;;  %7597 = vmatmul.msk.bf16.gmra.mxu1 %vm1987_vm0, %v7878_v54 }
 0x3c6   : > { %v5295_v4 = vsel %vm1987_vm0, %v4402_v1, 0.0  ;;  %v5561_v5 = vsel %vm1987_vm0, %v4530_v2, 0.0  ;;  %7661 = vmatmul.msk.bf16.gmra.mxu2 %vm1987_vm0, %v7942_v59  ;;  %7725 = vmatmul.msk.bf16.gmra.mxu3 %vm1987_vm0, %v8006_v60 }
 0x3c7   : > { %v5296_v6 = vadd.f32 %v5295_v4, %v5294_v42  ;;  %v5562_v8 = vadd.f32 %v5561_v5, %v5560_v43  ;;  %v4765_v9 = vsel %vm1987_vm0, %v4147_v3, 0.0  ;;  %v5031_v10 = vsel %vm1987_vm0, %v4275_v44, 0.0  ;;  %v8007_v42 = vld [vmem:[%s8217_s29 + $0x7e0] sm:$0xff] }
 0x3c8   : > { %v4766_v11 = vadd.f32 %v4765_v9, %v4764_v48  ;;  %v5032_v12 = vadd.f32 %v5031_v10, %v5030_v49 }
 0x3c9   : > { %v3660_v13 = vpop.f32.mrf.mxu2  ;;  %v3980_v14 = vpop.f32.mrf.mxu3 }
 0x3ca   : > { %v3661_v15 = vadd.f32 %v9360_v21, %v3660_v13  ;;  %v3981_v16 = vadd.f32 %v9360_v21, %v3980_v14  ;;  %v3022_v17 = vpop.f32.mrf.mxu0  ;;  %v3342_v18 = vpop.f32.mrf.mxu1 }
 0x3cb   : > { %v3023_v19 = vadd.f32 %v9360_v21, %v3022_v17  ;;  %v3343_v20 = vadd.f32 %v9360_v21, %v3342_v18 }
 0x3cc   : > { %v4403_v22 = vmax.f32 %v3661_v15, 0.0  ;;  %v4531_v23 = vmax.f32 %v3981_v16, 0.0 }
 0x3cd   : > { %v4148_v24 = vmax.f32 %v3023_v19, 0.0  ;;  %v4276_v25 = vmax.f32 %v3343_v20, 0.0  ;;  %v7816_v20 = vld [vmem:[%s8217_s29 + $0x1e8] sm:$0xff] }
 0x3ce   : > { %v5297_v26 = vsel %vm1987_vm0, %v4403_v22, 0.0  ;;  %v5563_v27 = vsel %vm1987_vm0, %v4531_v23, 0.0  ;;  %v7880_v22 = vld [vmem:[%s8217_s29 + $0x3e8] sm:$0xff] }
 0x3cf   : > { %v5298_v28 = vadd.f32 %v5297_v26, %v5296_v6  ;;  %v5564_v51 = vadd.f32 %v5563_v27, %v5562_v8  ;;  %v4767_v29 = vsel %vm1987_vm0, %v4148_v24, 0.0  ;;  %v5033_v30 = vsel %vm1987_vm0, %v4276_v25, 0.0  ;;  %v7944_v27 = vld [vmem:[%s8217_s29 + $0x5e8] sm:$0xff] }
 0x3d0   : > { %v4768_v31 = vadd.f32 %v4767_v29, %v4766_v11  ;;  %v5034_v32 = vadd.f32 %v5033_v30, %v5032_v12 }
 0x3d1   : > { %v3662_v33 = vpop.f32.mrf.mxu2  ;;  %v3982_v34 = vpop.f32.mrf.mxu3 }
 0x3d2   : > { %v3663_v37 = vadd.f32 %v9360_v21, %v3662_v33  ;;  %v3983_v38 = vadd.f32 %v9360_v21, %v3982_v34  ;;  %v3025_v39 = vpop.f32.mrf.mxu0  ;;  %v3345_v40 = vpop.f32.mrf.mxu1 }
 0x3d3   : > { %v3026_v43 = vadd.f32 %v9360_v21, %v3025_v39  ;;  %v3346_v47 = vadd.f32 %v9360_v21, %v3345_v40 }
 0x3d4   : > { %v4404_v7 = vmax.f32 %v3663_v37, 0.0  ;;  %v4532_v48 = vmax.f32 %v3983_v38, 0.0 }
 0x3d5   : > { %v4149_v49 = vmax.f32 %v3026_v43, 0.0  ;;  %v4277_v50 = vmax.f32 %v3346_v47, 0.0  ;;  %7534 = vmatmul.msk.bf16.gmra.mxu0 %vm1987_vm0, %v7815_v35  ;;  %7598 = vmatmul.msk.bf16.gmra.mxu1 %vm1987_vm0, %v7879_v36 }
 0x3d6   : > { %v5299_v52 = vsel %vm1987_vm0, %v4404_v7, 0.0  ;;  %v5565_v53 = vsel %vm1987_vm0, %v4532_v48, 0.0  ;;  %7662 = vmatmul.msk.bf16.gmra.mxu2 %vm1987_vm0, %v7943_v41  ;;  %7726 = vmatmul.msk.bf16.gmra.mxu3 %vm1987_vm0, %v8007_v42 }
 0x3d7   : > { %v5300_v54 = vadd.f32 %v5299_v52, %v5298_v28  ;;  %v5566_v55 = vadd.f32 %v5565_v53, %v5564_v51  ;;  %v4769_v56 = vsel %vm1987_vm0, %v4149_v49, 0.0  ;;  %v5035_v57 = vsel %vm1987_vm0, %v4277_v50, 0.0  ;;  %v8008_v28 = vld [vmem:[%s8217_s29 + $0x7e8] sm:$0xff] }
 0x3d8   : > { %v4770_v58 = vadd.f32 %v4769_v56, %v4768_v31  ;;  %v5036_v59 = vadd.f32 %v5035_v57, %v5034_v32 }
 0x3d9   : > { %v3665_v60 = vpop.f32.mrf.mxu2  ;;  %v3985_v63 = vpop.f32.mrf.mxu3 }
 0x3da   : > { %v3666_v0 = vadd.f32 %v9360_v21, %v3665_v60  ;;  %v3986_v1 = vadd.f32 %v9360_v21, %v3985_v63  ;;  %v3027_v2 = vpop.f32.mrf.mxu0  ;;  %v3347_v3 = vpop.f32.mrf.mxu1 }
 0x3db   : > { %v3028_v44 = vadd.f32 %v9360_v21, %v3027_v2  ;;  %v3348_v4 = vadd.f32 %v9360_v21, %v3347_v3 }
 0x3dc   : > { %v4405_v5 = vmax.f32 %v3666_v0, 0.0  ;;  %v4533_v6 = vmax.f32 %v3986_v1, 0.0 }
 0x3dd   : > { %v4150_v8 = vmax.f32 %v3028_v44, 0.0  ;;  %v4278_v9 = vmax.f32 %v3348_v4, 0.0  ;;  %v7817_v4 = vld [vmem:[%s8217_s29 + $0x1f0] sm:$0xff] }
 0x3de   : > { %v5301_v10 = vsel %vm1987_vm0, %v4405_v5, 0.0  ;;  %v5567_v11 = vsel %vm1987_vm0, %v4533_v6, 0.0  ;;  %v7881_v5 = vld [vmem:[%s8217_s29 + $0x3f0] sm:$0xff] }
 0x3df   : > { %v5302_v12 = vadd.f32 %v5301_v10, %v5300_v54  ;;  %v5568_v13 = vadd.f32 %v5567_v11, %v5566_v55  ;;  %v4771_v14 = vsel %vm1987_vm0, %v4150_v8, 0.0  ;;  %v5037_v15 = vsel %vm1987_vm0, %v4278_v9, 0.0  ;;  %v7945_v11 = vld [vmem:[%s8217_s29 + $0x5f0] sm:$0xff] }
 0x3e0   : > { %v4772_v16 = vadd.f32 %v4771_v14, %v4770_v58  ;;  %v5038_v17 = vadd.f32 %v5037_v15, %v5036_v59 }
 0x3e1   : > { %v3667_v18 = vpop.f32.mrf.mxu2  ;;  %v3987_v19 = vpop.f32.mrf.mxu3 }
 0x3e2   : > { %v3668_v23 = vadd.f32 %v9360_v21, %v3667_v18  ;;  %v3988_v24 = vadd.f32 %v9360_v21, %v3987_v19  ;;  %v3030_v25 = vpop.f32.mrf.mxu0  ;;  %v3350_v26 = vpop.f32.mrf.mxu1 }
 0x3e3   : > { %v3031_v51 = vadd.f32 %v9360_v21, %v3030_v25  ;;  %v3351_v29 = vadd.f32 %v9360_v21, %v3350_v26 }
 0x3e4   : > { %v4406_v30 = vmax.f32 %v3668_v23, 0.0  ;;  %v4534_v31 = vmax.f32 %v3988_v24, 0.0 }
 0x3e5   : > { %v4151_v32 = vmax.f32 %v3031_v51, 0.0  ;;  %v4279_v33 = vmax.f32 %v3351_v29, 0.0  ;;  %7535 = vmatmul.msk.bf16.gmra.mxu0 %vm1987_vm0, %v7816_v20  ;;  %7599 = vmatmul.msk.bf16.gmra.mxu1 %vm1987_vm0, %v7880_v22  ;;  %v9627_v51 = vld [vmem:[%s10199_s1 + $0x20] ss:$0 sm:$0xff] }
 0x3e6   : > { %v5303_v34 = vsel %vm1987_vm0, %v4406_v30, 0.0  ;;  %v5569_v35 = vsel %vm1987_vm0, %v4534_v31, 0.0  ;;  %7663 = vmatmul.msk.bf16.gmra.mxu2 %vm1987_vm0, %v7944_v27  ;;  %7727 = vmatmul.msk.bf16.gmra.mxu3 %vm1987_vm0, %v8008_v28 }
 0x3e7   : > { %v5304_v36 = vadd.f32 %v5303_v34, %v5302_v12  ;;  %v5570_v37 = vadd.f32 %v5569_v35, %v5568_v13  ;;  %v4773_v38 = vsel %vm1987_vm0, %v4151_v32, 0.0  ;;  %v5039_v39 = vsel %vm1987_vm0, %v4279_v33, 0.0  ;;  %v8009_v12 = vld [vmem:[%s8217_s29 + $0x7f0] sm:$0xff] }
 0x3e8   : > { %v4774_v40 = vadd.f32 %v4773_v38, %v4772_v16  ;;  %v5040_v41 = vadd.f32 %v5039_v39, %v5038_v17 }
 0x3e9   : > { %v3670_v42 = vpop.f32.mrf.mxu2  ;;  %v3990_v43 = vpop.f32.mrf.mxu3 }
 0x3ea   : > { %v3671_v47 = vadd.f32 %v9360_v21, %v3670_v42  ;;  %v3991_v7 = vadd.f32 %v9360_v21, %v3990_v43  ;;  %v3032_v48 = vpop.f32.mrf.mxu0  ;;  %v3352_v49 = vpop.f32.mrf.mxu1 }
 0x3eb   : > { %v3033_v50 = vadd.f32 %v9360_v21, %v3032_v48  ;;  %v3353_v52 = vadd.f32 %v9360_v21, %v3352_v49 }
 0x3ec   : > { %v4407_v53 = vmax.f32 %v3671_v47, 0.0  ;;  %v4535_v54 = vmax.f32 %v3991_v7, 0.0 }
 0x3ed   : > { %v4152_v55 = vmax.f32 %v3033_v50, 0.0  ;;  %v4280_v56 = vmax.f32 %v3353_v52, 0.0  ;;  %v7818_v52 = vld [vmem:[%s8217_s29 + $0x1f8] sm:$0xff] }
 0x3ee   : > { %v5305_v57 = vsel %vm1987_vm0, %v4407_v53, 0.0  ;;  %v5571_v58 = vsel %vm1987_vm0, %v4535_v54, 0.0  ;;  %v7882_v53 = vld [vmem:[%s8217_s29 + $0x3f8] sm:$0xff] }
 0x3ef   : > { %v5306_v59 = vadd.f32 %v5305_v57, %v5304_v36  ;;  %v5572_v60 = vadd.f32 %v5571_v58, %v5570_v37  ;;  %v4775_v63 = vsel %vm1987_vm0, %v4152_v55, 0.0  ;;  %v5041_v0 = vsel %vm1987_vm0, %v4280_v56, 0.0  ;;  %v7946_v58 = vld [vmem:[%s8217_s29 + $0x5f8] sm:$0xff] }
 0x3f0   : > { %v4776_v1 = vadd.f32 %v4775_v63, %v4774_v40  ;;  %v5042_v2 = vadd.f32 %v5041_v0, %v5040_v41 }
 0x3f1   : > { %v3672_v3 = vpop.f32.mrf.mxu2  ;;  %v3992_v44 = vpop.f32.mrf.mxu3 }
 0x3f2   : > { %v3673_v6 = vadd.f32 %v9360_v21, %v3672_v3  ;;  %v3993_v8 = vadd.f32 %v9360_v21, %v3992_v44  ;;  %v3035_v9 = vpop.f32.mrf.mxu0  ;;  %v3355_v10 = vpop.f32.mrf.mxu1 }
 0x3f3   : > { %v3036_v13 = vadd.f32 %v9360_v21, %v3035_v9  ;;  %v3356_v14 = vadd.f32 %v9360_v21, %v3355_v10 }
 0x3f4   : > { %v4408_v15 = vmax.f32 %v3673_v6, 0.0  ;;  %v4536_v16 = vmax.f32 %v3993_v8, 0.0 }
 0x3f5   : > { %v4153_v17 = vmax.f32 %v3036_v13, 0.0  ;;  %v4281_v18 = vmax.f32 %v3356_v14, 0.0  ;;  %7536 = vmatmul.msk.bf16.gmra.mxu0 %vm1987_vm0, %v7817_v4  ;;  %7600 = vmatmul.msk.bf16.gmra.mxu1 %vm1987_vm0, %v7881_v5 }
 0x3f6   : > { %v5307_v19 = vsel %vm1987_vm0, %v4408_v15, 0.0  ;;  %v5573_v20 = vsel %vm1987_vm0, %v4536_v16, 0.0  ;;  %7664 = vmatmul.msk.bf16.gmra.mxu2 %vm1987_vm0, %v7945_v11  ;;  %7728 = vmatmul.msk.bf16.gmra.mxu3 %vm1987_vm0, %v8009_v12 }
 0x3f7   : > { %v5308_v22 = vadd.f32 %v5307_v19, %v5306_v59  ;;  %v5574_v23 = vadd.f32 %v5573_v20, %v5572_v60  ;;  %v4777_v21 = vsel %vm1987_vm0, %v4153_v17, 0.0  ;;  %v5043_v24 = vsel %vm1987_vm0, %v4281_v18, 0.0  ;;  %v8010_v59 = vld [vmem:[%s8217_s29 + $0x7f8] sm:$0xff] }
 0x3f8   : > { %v4778_v25 = vadd.f32 %v4777_v21, %v4776_v1  ;;  %v5044_v26 = vadd.f32 %v5043_v24, %v5042_v2 }
 0x3f9   : > { %v3675_v27 = vpop.f32.mrf.mxu2  ;;  %v3995_v28 = vpop.f32.mrf.mxu3 }
 0x3fa   : > { %v3676_v29 = vadd.f32 %v9627_v51, %v3675_v27  ;;  %v3996_v30 = vadd.f32 %v9627_v51, %v3995_v28  ;;  %v3037_v31 = vpop.f32.mrf.mxu0  ;;  %v3357_v32 = vpop.f32.mrf.mxu1 }
 0x3fb   : > { %v3038_v33 = vadd.f32 %v9627_v51, %v3037_v31  ;;  %v3358_v34 = vadd.f32 %v9627_v51, %v3357_v32 }
 0x3fc   : > { %v4409_v35 = vmax.f32 %v3676_v29, 0.0  ;;  %v4537_v36 = vmax.f32 %v3996_v30, 0.0 }
 0x3fd   : > { %v4154_v37 = vmax.f32 %v3038_v33, 0.0  ;;  %v4282_v38 = vmax.f32 %v3358_v34, 0.0 }
 0x3fe   : > { %v5309_v39 = vsel %vm1987_vm0, %v4409_v35, 0.0  ;;  %v5575_v40 = vsel %vm1987_vm0, %v4537_v36, 0.0 }
 0x3ff   : > { %v5310_v41 = vadd.f32 %v5309_v39, %v5308_v22  ;;  %v5576_v42 = vadd.f32 %v5575_v40, %v5574_v23  ;;  %v4779_v43 = vsel %vm1987_vm0, %v4154_v37, 0.0  ;;  %v5045_v47 = vsel %vm1987_vm0, %v4282_v38, 0.0 }
 0x400   : > { %v4780_v7 = vadd.f32 %v4779_v43, %v4778_v25  ;;  %v5046_v48 = vadd.f32 %v5045_v47, %v5044_v26 }
 0x401   : > { %v3677_v49 = vpop.f32.mrf.mxu2  ;;  %v3997_v50 = vpop.f32.mrf.mxu3 }
 0x402   : > { %v3678_v54 = vadd.f32 %v9627_v51, %v3677_v49  ;;  %v3998_v55 = vadd.f32 %v9627_v51, %v3997_v50  ;;  %v3040_v56 = vpop.f32.mrf.mxu0  ;;  %v3360_v57 = vpop.f32.mrf.mxu1 }
 0x403   : > { %v3041_v60 = vadd.f32 %v9627_v51, %v3040_v56  ;;  %v3361_v63 = vadd.f32 %v9627_v51, %v3360_v57 }
 0x404   : > { %v4410_v0 = vmax.f32 %v3678_v54, 0.0  ;;  %v4538_v1 = vmax.f32 %v3998_v55, 0.0 }
 0x405   : > { %v4155_v2 = vmax.f32 %v3041_v60, 0.0  ;;  %v4283_v3 = vmax.f32 %v3361_v63, 0.0  ;;  %7537 = vmatmul.msk.bf16.gmra.mxu0 %vm1987_vm0, %v7818_v52  ;;  %7601 = vmatmul.msk.bf16.gmra.mxu1 %vm1987_vm0, %v7882_v53 }
 0x406   : > { %v5311_v44 = vsel %vm1987_vm0, %v4410_v0, 0.0  ;;  %v5577_v4 = vsel %vm1987_vm0, %v4538_v1, 0.0  ;;  %7665 = vmatmul.msk.bf16.gmra.mxu2 %vm1987_vm0, %v7946_v58  ;;  %7729 = vmatmul.msk.bf16.gmra.mxu3 %vm1987_vm0, %v8010_v59 }
 0x407   : > { %v5312_v5 = vadd.f32 %v5311_v44, %v5310_v41  ;;  %v5578_v6 = vadd.f32 %v5577_v4, %v5576_v42  ;;  %v4781_v8 = vsel %vm1987_vm0, %v4155_v2, 0.0  ;;  %v5047_v9 = vsel %vm1987_vm0, %v4283_v3, 0.0 }
 0x408   : > { %v4782_v10 = vadd.f32 %v4781_v8, %v4780_v7  ;;  %v5048_v11 = vadd.f32 %v5047_v9, %v5046_v48 }
 0x409   : > { %v3680_v12 = vpop.f32.mrf.mxu2  ;;  %v4000_v13 = vpop.f32.mrf.mxu3 }
 0x40a   : > { %v3681_v14 = vadd.f32 %v9627_v51, %v3680_v12  ;;  %v4001_v15 = vadd.f32 %v9627_v51, %v4000_v13  ;;  %v3042_v16 = vpop.f32.mrf.mxu0  ;;  %v3362_v17 = vpop.f32.mrf.mxu1 }
 0x40b   : > { %v3043_v18 = vadd.f32 %v9627_v51, %v3042_v16  ;;  %v3363_v19 = vadd.f32 %v9627_v51, %v3362_v17 }
 0x40c   : > { %v4411_v20 = vmax.f32 %v3681_v14, 0.0  ;;  %v4539_v22 = vmax.f32 %v4001_v15, 0.0 }
 0x40d   : > { %v4156_v23 = vmax.f32 %v3043_v18, 0.0  ;;  %v4284_v21 = vmax.f32 %v3363_v19, 0.0 }
 0x40e   : > { %v5313_v24 = vsel %vm1987_vm0, %v4411_v20, 0.0  ;;  %v5579_v25 = vsel %vm1987_vm0, %v4539_v22, 0.0 }
 0x40f   : > { %v5314_v26 = vadd.f32 %v5313_v24, %v5312_v5  ;;  %v5580_v27 = vadd.f32 %v5579_v25, %v5578_v6  ;;  %v4783_v28 = vsel %vm1987_vm0, %v4156_v23, 0.0  ;;  %v5049_v29 = vsel %vm1987_vm0, %v4284_v21, 0.0 }
 0x410   : > { %v4784_v30 = vadd.f32 %v4783_v28, %v4782_v10  ;;  %v5050_v31 = vadd.f32 %v5049_v29, %v5048_v11 }
 0x411   : > { %v3682_v32 = vpop.f32.mrf.mxu2  ;;  %v4002_v33 = vpop.f32.mrf.mxu3 }
 0x412   : > { %v3683_v34 = vadd.f32 %v9627_v51, %v3682_v32  ;;  %v4003_v35 = vadd.f32 %v9627_v51, %v4002_v33  ;;  %v3045_v36 = vpop.f32.mrf.mxu0  ;;  %v3365_v37 = vpop.f32.mrf.mxu1 }
 0x413   : > { %v3046_v38 = vadd.f32 %v9627_v51, %v3045_v36  ;;  %v3366_v39 = vadd.f32 %v9627_v51, %v3365_v37 }
 0x414   : > { %v4412_v40 = vmax.f32 %v3683_v34, 0.0  ;;  %v4540_v41 = vmax.f32 %v4003_v35, 0.0 }
 0x415   : > { %v4157_v42 = vmax.f32 %v3046_v38, 0.0  ;;  %v4285_v43 = vmax.f32 %v3366_v39, 0.0 }
 0x416   : > { %v5315_v47 = vsel %vm1987_vm0, %v4412_v40, 0.0  ;;  %v5581_v7 = vsel %vm1987_vm0, %v4540_v41, 0.0 }
 0x417   : > { %v5316_v48 = vadd.f32 %v5315_v47, %v5314_v26  ;;  %v5582_v49 = vadd.f32 %v5581_v7, %v5580_v27  ;;  %v4785_v50 = vsel %vm1987_vm0, %v4157_v42, 0.0  ;;  %v5051_v52 = vsel %vm1987_vm0, %v4285_v43, 0.0 }
 0x418   : > { %v4786_v53 = vadd.f32 %v4785_v50, %v4784_v30  ;;  %v5052_v54 = vadd.f32 %v5051_v52, %v5050_v31 }
 0x419   : > { %v3685_v55 = vpop.f32.mrf.mxu2  ;;  %v4005_v56 = vpop.f32.mrf.mxu3 }
 0x41a   : > { %v3686_v57 = vadd.f32 %v9627_v51, %v3685_v55  ;;  %v4006_v58 = vadd.f32 %v9627_v51, %v4005_v56  ;;  %v3047_v59 = vpop.f32.mrf.mxu0  ;;  %v3367_v60 = vpop.f32.mrf.mxu1 }
 0x41b   : > { %v3048_v63 = vadd.f32 %v9627_v51, %v3047_v59  ;;  %v3368_v0 = vadd.f32 %v9627_v51, %v3367_v60 }
 0x41c   : > { %v4413_v1 = vmax.f32 %v3686_v57, 0.0  ;;  %v4541_v2 = vmax.f32 %v4006_v58, 0.0 }
 0x41d   : > { %v4158_v3 = vmax.f32 %v3048_v63, 0.0  ;;  %v4286_v44 = vmax.f32 %v3368_v0, 0.0 }
 0x41e   : > { %v5317_v4 = vsel %vm1987_vm0, %v4413_v1, 0.0  ;;  %v5583_v5 = vsel %vm1987_vm0, %v4541_v2, 0.0 }
 0x41f   : > { %v5318_v6 = vadd.f32 %v5317_v4, %v5316_v48  ;;  %v5584_v8 = vadd.f32 %v5583_v5, %v5582_v49  ;;  %v4787_v9 = vsel %vm1987_vm0, %v4158_v3, 0.0  ;;  %v5053_v10 = vsel %vm1987_vm0, %v4286_v44, 0.0 }
 0x420   : > { %v4788_v11 = vadd.f32 %v4787_v9, %v4786_v53  ;;  %v5054_v12 = vadd.f32 %v5053_v10, %v5052_v54 }
 0x421   : > { %v3687_v13 = vpop.f32.mrf.mxu2  ;;  %v4007_v14 = vpop.f32.mrf.mxu3 }
 0x422   : > { %v3688_v15 = vadd.f32 %v9627_v51, %v3687_v13  ;;  %v4008_v16 = vadd.f32 %v9627_v51, %v4007_v14  ;;  %v3050_v17 = vpop.f32.mrf.mxu0  ;;  %v3370_v18 = vpop.f32.mrf.mxu1 }
 0x423   : > { %v3051_v19 = vadd.f32 %v9627_v51, %v3050_v17  ;;  %v3371_v20 = vadd.f32 %v9627_v51, %v3370_v18 }
 0x424   : > { %v4414_v22 = vmax.f32 %v3688_v15, 0.0  ;;  %v4542_v23 = vmax.f32 %v4008_v16, 0.0 }
 0x425   : > { %v4159_v21 = vmax.f32 %v3051_v19, 0.0  ;;  %v4287_v24 = vmax.f32 %v3371_v20, 0.0 }
 0x426   : > { %v5319_v25 = vsel %vm1987_vm0, %v4414_v22, 0.0  ;;  %v5585_v26 = vsel %vm1987_vm0, %v4542_v23, 0.0 }
 0x427   : > { %v5320_v27 = vadd.f32 %v5319_v25, %v5318_v6  ;;  %v5586_v28 = vadd.f32 %v5585_v26, %v5584_v8  ;;  %v4789_v29 = vsel %vm1987_vm0, %v4159_v21, 0.0  ;;  %v5055_v30 = vsel %vm1987_vm0, %v4287_v24, 0.0 }
 0x428   : > { %v4790_v31 = vadd.f32 %v4789_v29, %v4788_v11  ;;  %v5056_v32 = vadd.f32 %v5055_v30, %v5054_v12 }
 0x429   : > { %v3690_v33 = vpop.f32.mrf.mxu2  ;;  %v4010_v34 = vpop.f32.mrf.mxu3 }
 0x42a   : > { %v3691_v35 = vadd.f32 %v9627_v51, %v3690_v33  ;;  %v4011_v36 = vadd.f32 %v9627_v51, %v4010_v34  ;;  %v3052_v37 = vpop.f32.mrf.mxu0  ;;  %v3372_v38 = vpop.f32.mrf.mxu1 }
 0x42b   : > { %v3053_v39 = vadd.f32 %v9627_v51, %v3052_v37  ;;  %v3373_v40 = vadd.f32 %v9627_v51, %v3372_v38  ;;  %v8161_v38 = vmov 512.0  }
 0x42c   : > { %v4415_v41 = vmax.f32 %v3691_v35, 0.0  ;;  %v4543_v42 = vmax.f32 %v4011_v36, 0.0  ;;  %8037 = vrcp.f32 %v8161_v38 }
 0x42d   : > { %v4160_v43 = vmax.f32 %v3053_v39, 0.0  ;;  %v4288_v47 = vmax.f32 %v3373_v40, 0.0 }
 0x42e   : > { %v5321_v7 = vsel %vm1987_vm0, %v4415_v41, 0.0  ;;  %v5587_v48 = vsel %vm1987_vm0, %v4543_v42, 0.0 }
 0x42f   : > { %v5322_v49 = vadd.f32 %v5321_v7, %v5320_v27  ;;  %v5588_v50 = vadd.f32 %v5587_v48, %v5586_v28  ;;  %v4791_v52 = vsel %vm1987_vm0, %v4160_v43, 0.0  ;;  %v5057_v53 = vsel %vm1987_vm0, %v4288_v47, 0.0 }
 0x430   : > { %v4792_v54 = vadd.f32 %v4791_v52, %v4790_v31  ;;  %v5058_v55 = vadd.f32 %v5057_v53, %v5056_v32  ;;  %v4684_v47 = vrot.slane %v9062_v45, 4 }
 0x431   : > { %v3692_v56 = vpop.f32.mrf.mxu2  ;;  %v4012_v57 = vpop.f32.mrf.mxu3 }
 0x432   : > { %v3693_v58 = vadd.f32 %v9627_v51, %v3692_v56  ;;  %v4013_v59 = vadd.f32 %v9627_v51, %v4012_v57  ;;  %v3055_v60 = vpop.f32.mrf.mxu0  ;;  %v3375_v63 = vpop.f32.mrf.mxu1  ;;  %v4685_v53 = vadd.f32 %v4684_v47, %v9062_v45  ;;  %v5216_v57 = vrot.slane %v9078_v61, 4 }
 0x433   : > { %v3056_v0 = vadd.f32 %v9627_v51, %v3055_v60  ;;  %v3376_v1 = vadd.f32 %v9627_v51, %v3375_v63  ;;  %v9721_v43 = vpop.eup %8037 }
 0x434   : > { %v4416_v2 = vmax.f32 %v3693_v58, 0.0  ;;  %v4544_v3 = vmax.f32 %v4013_v59, 0.0  ;;  %v4686_v63 = vrot.slane %v4685_v53, 2  ;;  %vm5626_vm1 = vweird.f32 %v9721_v43 }
 0x435   : > { %v4161_v44 = vmax.f32 %v3056_v0, 0.0  ;;  %v4289_v4 = vmax.f32 %v3376_v1, 0.0 }
 0x436   : > { %v5323_v5 = vsel %vm1987_vm0, %v4416_v2, 0.0  ;;  %v5589_v6 = vsel %vm1987_vm0, %v4544_v3, 0.0 }
 0x437   : > { %v5324_v8 = vadd.f32 %v5323_v5, %v5322_v49  ;;  %v5590_v9 = vadd.f32 %v5589_v6, %v5588_v50  ;;  %v4793_v10 = vsel %vm1987_vm0, %v4161_v44, 0.0  ;;  %v5059_v11 = vsel %vm1987_vm0, %v4289_v4, 0.0 }
 0x438   : > { %v9701_v12 = vadd.f32 %v4793_v10, %v4792_v54  ;;  %v9703_v13 = vadd.f32 %v5059_v11, %v5058_v55  ;;  %v5622_v49 = vmul.f32 512.0, %v9721_v43  ;;  %v4950_v54 = vrot.slane %v9064_v46, 4 }
 0x439   : > { %v3695_v14 = vpop.f32.mrf.mxu2  ;;  %v4015_v15 = vpop.f32.mrf.mxu3  ;;  %v9746_v44 = vadd.f32 %v5216_v57, %v9078_v61  ;;  %v5482_v4 = vrot.slane %v9080_v62, 4  ;;  %v9762_v61 = vadd.f32 %v4686_v63, %v4685_v53 }
 0x43a   : > { %v3696_v16 = vadd.f32 %v9627_v51, %v3695_v14  ;;  %v4016_v17 = vadd.f32 %v9627_v51, %v4015_v15  ;;  %v3057_v18 = vpop.f32.mrf.mxu0  ;;  %v3377_v19 = vpop.f32.mrf.mxu1  ;;  %v5623_v58 = vsub.f32 1.0, %v5622_v49  ;;  %v9741_v0 = vadd.f32 %v4950_v54, %v9064_v46 }
 0x43b   : > { %v3058_v55 = vadd.f32 %v9627_v51, %v3057_v18  ;;  %v3378_v56 = vadd.f32 %v9627_v51, %v3377_v19 }
 0x43c   : > { %v4417_v20 = vmax.f32 %v3696_v16, 0.0  ;;  %v4545_v22 = vmax.f32 %v4016_v17, 0.0  ;;  %v9756_v46 = vmul.f32 %v9721_v43, %v5623_v58  ;;  %v4952_v16 = vrot.slane %v9741_v0, 2 }
 0x43d   : > { %v4162_v1 = vmax.f32 %v3058_v55, 0.0  ;;  %v4290_v2 = vmax.f32 %v3378_v56, 0.0 }
 0x43e   : > { %v5325_v23 = vsel %vm1987_vm0, %v4417_v20, 0.0  ;;  %v5591_v21 = vsel %vm1987_vm0, %v4545_v22, 0.0 }
 0x43f   : > { %v9709_v24 = vadd.f32 %v5325_v23, %v5324_v8  ;;  %v9711_v25 = vadd.f32 %v5591_v21, %v5590_v9  ;;  %v4795_v19 = vsel %vm1987_vm0, %v4162_v1, 0.0  ;;  %v5061_v20 = vsel %vm1987_vm0, %v4290_v2, 0.0 }
 0x440   : > { %v5218_v21 = vrot.slane %v9746_v44, 2  ;;  %v5062_v38 = vadd.f32 %v5061_v20, %v9703_v13 }
 0x441   : > { %v3697_v26 = vpop.f32.mrf.mxu2  ;;  %v4017_v27 = vpop.f32.mrf.mxu3 }
 0x442   : > { %v3060_v28 = vpop.f32.mrf.mxu0  ;;  %v3380_v29 = vpop.f32.mrf.mxu1  ;;  %v3698_v59 = vadd.f32 %v9627_v51, %v3697_v26  ;;  %v4018_v60 = vadd.f32 %v9627_v51, %v4017_v27  ;;  %v9771_v26 = vadd.f32 %v5482_v4, %v9080_v62 }
 0x443   : > { %v3061_v45 = vadd.f32 %v9627_v51, %v3060_v28  ;;  %v3381_v3 = vadd.f32 %v9627_v51, %v3380_v29 }
 0x444   : > { %v4418_v10 = vmax.f32 %v3698_v59, 0.0  ;;  %v4546_v11 = vmax.f32 %v4018_v60, 0.0 }
 0x445   : > { %v4163_v22 = vmax.f32 %v3061_v45, 0.0  ;;  %v4291_v23 = vmax.f32 %v3381_v3, 0.0 }
 0x446   : > { %v5327_v29 = vsel %vm1987_vm0, %v4418_v10, 0.0 }
 0x447   : > { %v4797_v53 = vsel %vm1987_vm0, %v4163_v22, 0.0  ;;  %v5063_v62 = vsel %vm1987_vm0, %v4291_v23, 0.0  ;;  %v5328_v56 = vadd.f32 %v5327_v29, %v9709_v24 }
 0x449   : > { %v3700_v30 = vpop.f32.mrf.mxu2  ;;  %v4020_v31 = vpop.f32.mrf.mxu3 }
 0x44a   : > { %v3062_v32 = vpop.f32.mrf.mxu0  ;;  %v3382_v33 = vpop.f32.mrf.mxu1  ;;  %v3701_v5 = vadd.f32 %v9627_v51, %v3700_v30  ;;  %v4021_v6 = vadd.f32 %v9627_v51, %v4020_v31  ;;  %v5593_v30 = vsel %vm1987_vm0, %v4546_v11, 0.0 }
 0x44b   : > { %v3063_v17 = vadd.f32 %v9627_v51, %v3062_v32  ;;  %v3383_v18 = vadd.f32 %v9627_v51, %v3382_v33  ;;  %v4796_v33 = vadd.f32 %v4795_v19, %v9701_v12 }
 0x44c   : > { %v4419_v27 = vmax.f32 %v3701_v5, 0.0  ;;  %v4547_v28 = vmax.f32 %v4021_v6, 0.0 }
 0x44d   : > { %v4164_v47 = vmax.f32 %v3063_v17, 0.0  ;;  %v4292_v49 = vmax.f32 %v3383_v18, 0.0  ;;  %v4798_v63 = vadd.f32 %v4797_v53, %v4796_v33 }
 0x44e   : > { %v5595_v12 = vsel %vm1987_vm0, %v4547_v28, 0.0 }
 0x44f   : > { %v4799_v1 = vsel %vm1987_vm0, %v4164_v47, 0.0  ;;  %v5065_v2 = vsel %vm1987_vm0, %v4292_v49, 0.0 }
 0x450   : > { %v4800_v20 = vadd.f32 %v4799_v1, %v4798_v63 }
 0x451   : > { %v3702_v34 = vpop.f32.mrf.mxu2  ;;  %v4022_v35 = vpop.f32.mrf.mxu3 }
 0x452   : > { %v3065_v36 = vpop.f32.mrf.mxu0  ;;  %v3385_v37 = vpop.f32.mrf.mxu1  ;;  %v3703_v31 = vadd.f32 %v9627_v51, %v3702_v34  ;;  %v4023_v32 = vadd.f32 %v9627_v51, %v4022_v35  ;;  %v5594_v34 = vadd.f32 %v5593_v30, %v9711_v25  ;;  %v5329_v35 = vsel %vm1987_vm0, %v4419_v27, 0.0 }
 0x453   : > { %v3066_v54 = vadd.f32 %v9627_v51, %v3065_v36  ;;  %v3386_v55 = vadd.f32 %v9627_v51, %v3385_v37  ;;  %v5064_v25 = vadd.f32 %v5063_v62, %v5062_v38 }
 0x454   : > { %v4420_v58 = vmax.f32 %v3703_v31, 0.0  ;;  %v4548_v59 = vmax.f32 %v4023_v32, 0.0  ;;  %v5596_v6 = vadd.f32 %v5595_v12, %v5594_v34 }
 0x455   : > { %v4165_v45 = vmax.f32 %v3066_v54, 0.0  ;;  %v4293_v3 = vmax.f32 %v3386_v55, 0.0  ;;  %v5066_v22 = vadd.f32 %v5065_v2, %v5064_v25 }
 0x456   : > { %v5331_v11 = vsel %vm1987_vm0, %v4420_v58, 0.0  ;;  %v5597_v17 = vsel %vm1987_vm0, %v4548_v59, 0.0 }
 0x457   : > { %v4801_v23 = vsel %vm1987_vm0, %v4165_v45, 0.0  ;;  %v5598_v29 = vadd.f32 %v5597_v17, %v5596_v6 }
 0x458   : > { %v4802_v62 = vadd.f32 %v4801_v23, %v4800_v20 }
 0x459   : > { %v9713_v39 = vpop.f32.mrf.mxu2  ;;  %v9715_v40 = vpop.f32.mrf.mxu3 }
 0x45a   : > { %v9717_v41 = vpop.f32.mrf.mxu0  ;;  %v9719_v42 = vpop.f32.mrf.mxu1  ;;  %v3706_v60 = vadd.f32 %v9627_v51, %v9713_v39  ;;  %v4026_v36 = vadd.f32 %v9627_v51, %v9715_v40  ;;  %v5330_v39 = vadd.f32 %v5329_v35, %v5328_v56 }
 0x45b   : > { %v3068_v4 = vadd.f32 %v9627_v51, %v9717_v41  ;;  %v3388_v5 = vadd.f32 %v9627_v51, %v9719_v42 }
 0x45c   : > { %v4421_v18 = vmax.f32 %v3706_v60, 0.0  ;;  %v4549_v19 = vmax.f32 %v4026_v36, 0.0  ;;  %v5332_v28 = vadd.f32 %v5331_v11, %v5330_v39 }
 0x45d   : > { %v4166_v27 = vmax.f32 %v3068_v4, 0.0 }
 0x45e   : > { %v5333_v38 = vsel %vm1987_vm0, %v4421_v18, 0.0  ;;  %v5599_v47 = vsel %vm1987_vm0, %v4549_v19, 0.0 }
 0x45f   : > { %v4803_v34 = vsel %vm1987_vm0, %v4166_v27, 0.0  ;;  %v5600_v59 = vadd.f32 %v5599_v47, %v5598_v29 }
 0x460   : > { %v4804_v2 = vadd.f32 %v4803_v34, %v4802_v62 }
 0x461   : > { %v9724_v7 = vpop.f32.mrf.mxu2  ;;  %v9726_v48 = vpop.f32.mrf.mxu3 }
 0x462   : > { %v9729_v50 = vpop.f32.mrf.mxu0  ;;  %v9731_v52 = vpop.f32.mrf.mxu1  ;;  %v3708_v40 = vadd.f32 %v9627_v51, %v9724_v7  ;;  %v4028_v10 = vadd.f32 %v9627_v51, %v9726_v48  ;;  %v5067_v7 = vsel %vm1987_vm0, %v4293_v3, 0.0  ;;  %v4294_v48 = vmax.f32 %v3388_v5, 0.0 }
 0x463   : > { %v3071_v41 = vadd.f32 %v9627_v51, %v9729_v50  ;;  %v3391_v42 = vadd.f32 %v9627_v51, %v9731_v52  ;;  %v5068_v54 = vadd.f32 %v5067_v7, %v5066_v22 }
 0x464   : > { %v4422_v30 = vmax.f32 %v3708_v40, 0.0  ;;  %v4550_v31 = vmax.f32 %v4028_v10, 0.0  ;;  %v5069_v35 = vsel %vm1987_vm0, %v4294_v48, 0.0 }
 0x465   : > { %v4167_v55 = vmax.f32 %v3071_v41, 0.0  ;;  %v4295_v56 = vmax.f32 %v3391_v42, 0.0  ;;  %v5070_v45 = vadd.f32 %v5069_v35, %v5068_v54 }
 0x466   : > { %v5601_v60 = vsel %vm1987_vm0, %v4550_v31, 0.0 }
 0x467   : > { %v4805_v3 = vsel %vm1987_vm0, %v4167_v55, 0.0  ;;  %v5602_v40 = vadd.f32 %v5601_v60, %v5600_v59 }
 0x469   : > { %v9751_v8 = vpop.f32.mrf.mxu2  ;;  %v9753_v9 = vpop.f32.mrf.mxu3 }
 0x46a   : > { %v9758_v14 = vpop.f32.mrf.mxu0  ;;  %v9760_v15 = vpop.f32.mrf.mxu1  ;;  %v3711_v50 = vadd.f32 %v9627_v51, %v9751_v8  ;;  %v4031_v52 = vadd.f32 %v9627_v51, %v9753_v9  ;;  %v5334_v8 = vadd.f32 %v5333_v38, %v5332_v28  ;;  %v5335_v9 = vsel %vm1987_vm0, %v4422_v30, 0.0 }
 0x46b   : > { %v3073_v12 = vadd.f32 %v9627_v51, %v9758_v14  ;;  %v3393_v58 = vadd.f32 %v9627_v51, %v9760_v15  ;;  %v5071_v14 = vsel %vm1987_vm0, %v4295_v56, 0.0 }
 0x46c   : > { %v4423_v36 = vmax.f32 %v3711_v50, 0.0  ;;  %v4551_v63 = vmax.f32 %v4031_v52, 0.0  ;;  %v5336_v6 = vadd.f32 %v5335_v9, %v5334_v8  ;;  %v5072_v42 = vadd.f32 %v5071_v14, %v5070_v45 }
 0x46d   : > { %v4168_v4 = vmax.f32 %v3073_v12, 0.0  ;;  %v4296_v15 = vmax.f32 %v3393_v58, 0.0 }
 0x46e   : > { %v5337_v17 = vsel %vm1987_vm0, %v4423_v36, 0.0  ;;  %v5603_v18 = vsel %vm1987_vm0, %v4551_v63, 0.0 }
 0x46f   : > { %v4807_v7 = vsel %vm1987_vm0, %v4168_v4, 0.0  ;;  %v5073_v27 = vsel %vm1987_vm0, %v4296_v15, 0.0  ;;  %v5338_v29 = vadd.f32 %v5337_v17, %v5336_v6  ;;  %v5604_v30 = vadd.f32 %v5603_v18, %v5602_v40 }
 0x470   : > { %v5074_v62 = vadd.f32 %v5073_v27, %v5072_v42 }
 0x471   : > { %v9787_v57 = vpop.f32.mrf.mxu2  ;;  %v9789_v13 = vpop.f32.mrf.mxu3 }
 0x472   : > { %v3075_v37 = vpop.f32.mrf.mxu0  ;;  %v3395_v24 = vpop.f32.mrf.mxu1  ;;  %v3713_v5 = vadd.f32 %v9627_v51, %v9787_v57  ;;  %v4033_v39 = vadd.f32 %v9627_v51, %v9789_v13  ;;  %v4806_v57 = vadd.f32 %v4805_v3, %v4804_v2 }
 0x473   : > { %v3076_v25 = vadd.f32 %v9627_v51, %v3075_v37  ;;  %v3396_v1 = vadd.f32 %v9627_v51, %v3395_v24 }
 0x474   : > { %v4424_v48 = vmax.f32 %v3713_v5, 0.0  ;;  %v4552_v28 = vmax.f32 %v4033_v39, 0.0 }
 0x475   : > { %v4169_v19 = vmax.f32 %v3076_v25, 0.0  ;;  %v4297_v20 = vmax.f32 %v3396_v1, 0.0 }
 0x476   : > { %v5339_v56 = vsel %vm1987_vm0, %v4424_v48, 0.0  ;;  %v5605_v34 = vsel %vm1987_vm0, %v4552_v28, 0.0 }
 0x477   : > { %v4809_v47 = vsel %vm1987_vm0, %v4169_v19, 0.0  ;;  %v5075_v50 = vsel %vm1987_vm0, %v4297_v20, 0.0  ;;  %v5340_v20 = vadd.f32 %v5339_v56, %v5338_v29 }
 0x478   : > { %v5076_v8 = vadd.f32 %v5075_v50, %v5074_v62 }
 0x479   : > { %v3715_v32 = vpop.f32.mrf.mxu2  ;;  %v4035_v33 = vpop.f32.mrf.mxu3 }
 0x47a   : > { %v3077_v49 = vpop.f32.mrf.mxu0  ;;  %v3397_v53 = vpop.f32.mrf.mxu1  ;;  %v3716_v52 = vadd.f32 %v9627_v51, %v3715_v32 }
 0x47b   : > { %v3078_v37 = vadd.f32 %v9627_v51, %v3077_v49  ;;  %v3398_v24 = vadd.f32 %v9627_v51, %v3397_v53  ;;  %v4036_v49 = vadd.f32 %v9627_v51, %v4035_v33  ;;  %v4808_v53 = vadd.f32 %v4807_v7, %v4806_v57 }
 0x47c   : > { %v4425_v60 = vmax.f32 %v3716_v52, 0.0 }
 0x47d   : > { %v4170_v31 = vmax.f32 %v3078_v37, 0.0  ;;  %v4298_v38 = vmax.f32 %v3398_v24, 0.0  ;;  %v4810_v58 = vadd.f32 %v4809_v47, %v4808_v53  ;;  %v4553_v36 = vmax.f32 %v4036_v49, 0.0 }
 0x47e   : > { %v4688_v49 = vrot.slane %v9762_v61, 1  ;;  %v4953_v53 = vadd.f32 %v4952_v16, %v9741_v0  ;;  %v5625_v16 = vadd.f32 %v9721_v43, %v9756_v46 }
 0x47f   : > { %v4811_v59 = vsel %vm1987_vm0, %v4170_v31, 0.0  ;;  %v5077_v32 = vsel %vm1987_vm0, %v4298_v38, 0.0  ;;  %v5607_v17 = vsel %vm1987_vm0, %v4553_v36, 0.0 }
 0x480   : > { %v4812_v15 = vadd.f32 %v4811_v59, %v4810_v58  ;;  %v5078_v5 = vadd.f32 %v5077_v32, %v5076_v8  ;;  %v5484_v58 = vrot.slane %v9771_v26, 2 }
 0x481   : > { %v3717_v10 = vpop.f32.mrf.mxu2  ;;  %v4037_v11 = vpop.f32.mrf.mxu3 }
 0x482   : > { %v3080_v22 = vpop.f32.mrf.mxu0  ;;  %v3400_v41 = vpop.f32.mrf.mxu1  ;;  %v3718_v35 = vadd.f32 %v9627_v51, %v3717_v10  ;;  %v4038_v12 = vadd.f32 %v9627_v51, %v4037_v11  ;;  %v5341_v11 = vsel %vm1987_vm0, %v4425_v60, 0.0 }
 0x483   : > { %v3081_v13 = vadd.f32 %v9627_v51, %v3080_v22  ;;  %v3401_v23 = vadd.f32 %v9627_v51, %v3400_v41  ;;  %v5606_v22 = vadd.f32 %v5605_v34, %v5604_v30  ;;  %v5342_v27 = vadd.f32 %v5341_v11, %v5340_v20 }
 0x484   : > { %v4426_v39 = vmax.f32 %v3718_v35, 0.0  ;;  %v4554_v6 = vmax.f32 %v4038_v12, 0.0  ;;  %v5219_v12 = vadd.f32 %v5218_v21, %v9746_v44 }
 0x485   : > { %v4171_v54 = vmax.f32 %v3081_v13, 0.0  ;;  %v4299_v55 = vmax.f32 %v3401_v23, 0.0  ;;  %v5608_v48 = vadd.f32 %v5607_v17, %v5606_v22 }
 0x486   : > { %v5343_v42 = vsel %vm1987_vm0, %v4426_v39, 0.0  ;;  %v5609_v13 = vsel %vm1987_vm0, %v4554_v6, 0.0  ;;  %v5220_v21 = vrot.slane %v5219_v12, 1 }
 0x487   : > { %v4813_v45 = vsel %vm1987_vm0, %v4171_v54, 0.0  ;;  %v5079_v3 = vsel %vm1987_vm0, %v4299_v55, 0.0  ;;  %v5344_v62 = vadd.f32 %v5343_v42, %v5342_v27  ;;  %v5610_v54 = vadd.f32 %v5609_v13, %v5608_v48 }
 0x488   : > { %v4814_v18 = vadd.f32 %v4813_v45, %v4812_v15  ;;  %v5080_v19 = vadd.f32 %v5079_v3, %v5078_v5  ;;  %v5485_v45 = vadd.f32 %v5484_v58, %v9771_v26 }
 0x489   : > { %v3720_v9 = vpop.f32.mrf.mxu2  ;;  %v4040_v33 = vpop.f32.mrf.mxu3 }
 0x48a   : > { %v3721_v63 = vadd.f32 %v9627_v51, %v3720_v9  ;;  %v4041_v25 = vadd.f32 %v9627_v51, %v4040_v33  ;;  %v3082_v1 = vpop.f32.mrf.mxu0  ;;  %v3402_v2 = vpop.f32.mrf.mxu1  ;;  %v4954_v33 = vrot.slane %v4953_v53, 1  ;;  %v5486_v11 = vrot.slane %v5485_v45, 1 }
 0x48b   : > { %v3083_v14 = vadd.f32 %v9627_v51, %v3082_v1  ;;  %v3403_v4 = vadd.f32 %v9627_v51, %v3402_v2  ;;  %v4689_v2 = vadd.f32 %v4688_v49, %v9762_v61 }
 0x48c   : > { %v4427_v40 = vmax.f32 %v3721_v63, 0.0  ;;  %v4555_v37 = vmax.f32 %v4041_v25, 0.0  ;;  %v4955_v15 = vadd.f32 %v4954_v33, %v4953_v53  ;;  %v5487_v42 = vadd.f32 %v5486_v11, %v5485_v45 }
 0x48d   : > { %v4172_v24 = vmax.f32 %v3083_v14, 0.0  ;;  %v4300_v10 = vmax.f32 %v3403_v4, 0.0  ;;  %v5627_v4 = vsel %vm5626_vm1, %v9721_v43, %v5625_v16 }
 0x48e   : > { %v5345_v28 = vsel %vm1987_vm0, %v4427_v40, 0.0  ;;  %v5611_v31 = vsel %vm1987_vm0, %v4555_v37, 0.0  ;;  %v5221_v40 = vadd.f32 %v5220_v21, %v5219_v12  ;;  %v5630_v61 = vmul.f32 %v5627_v4, %v4955_v15 }
 0x48f   : > { %v4815_v41 = vsel %vm1987_vm0, %v4172_v24, 0.0  ;;  %v5081_v57 = vsel %vm1987_vm0, %v4300_v10, 0.0  ;;  %v5346_v8 = vadd.f32 %v5345_v28, %v5344_v62  ;;  %v5628_v10 = vmul.f32 %v5627_v4, %v4689_v2 }
 0x490   : > { %v4816_v23 = vadd.f32 %v4815_v41, %v4814_v18  ;;  %v5082_v7 = vadd.f32 %v5081_v57, %v5080_v19  ;;  %v5632_v20 = vmul.f32 %v5627_v4, %v5221_v40  ;;  %v5634_v28 = vmul.f32 %v5627_v4, %v5487_v42 }
 0x491   : > { %v3722_v38 = vpop.f32.mrf.mxu2  ;;  %v4042_v47 = vpop.f32.mrf.mxu3 }
 0x492   : > { %v4817_v29 = vrot.slane %v4816_v23, 4  ;;  %v5083_v30 = vrot.slane %v5082_v7, 4  ;;  %v3723_v50 = vadd.f32 %v9627_v51, %v3722_v38  ;;  %v4043_v52 = vadd.f32 %v9627_v51, %v4042_v47 }
 0x493   : > { %v5612_v51 = vadd.f32 %v5611_v31, %v5610_v54 }
 0x494   : > { %v4818_v55 = vadd.f32 %v4817_v29, %v4816_v23  ;;  %v5084_v56 = vadd.f32 %v5083_v30, %v5082_v7  ;;  %v4428_v34 = vmax.f32 %v3723_v50, 0.0  ;;  %v4556_v35 = vmax.f32 %v4043_v52, 0.0 }
 0x496   : > { %v4819_v59 = vrot.slane %v4818_v55, 2  ;;  %v5085_v32 = vrot.slane %v5084_v56, 2  ;;  %v5347_v9 = vsel %vm1987_vm0, %v4428_v34, 0.0  ;;  %v5613_v0 = vsel %vm1987_vm0, %v4556_v35, 0.0 }
 0x497   : > { %v5348_v60 = vadd.f32 %v5347_v9, %v5346_v8  ;;  %v5614_v36 = vadd.f32 %v5613_v0, %v5612_v51 }
 0x498   : > { %v4820_v63 = vadd.f32 %v4819_v59, %v4818_v55  ;;  %v5086_v44 = vadd.f32 %v5085_v32, %v5084_v56 }
 0x499   : > { %v5349_v25 = vrot.slane %v5348_v60, 4  ;;  %v5615_v1 = vrot.slane %v5614_v36, 4 }
 0x49a   : > { %v4821_v3 = vrot.slane %v4820_v63, 1  ;;  %v5087_v14 = vrot.slane %v5086_v44, 1 }
 0x49b   : > { %v5350_v46 = vadd.f32 %v5349_v25, %v5348_v60  ;;  %v5616_v5 = vadd.f32 %v5615_v1, %v5614_v36 }
 0x49c   : > { %v4822_v39 = vadd.f32 %v4821_v3, %v4820_v63  ;;  %v5088_v6 = vadd.f32 %v5087_v14, %v5086_v44 }
 0x49d   : > { %v5351_v37 = vrot.slane %v5350_v46, 2  ;;  %v5617_v24 = vrot.slane %v5616_v5, 2 }
 0x49e   : > { %v5629_v17 = vmul.f32 %v5627_v4, %v4822_v39  ;;  %v5631_v43 = vmul.f32 %v5627_v4, %v5088_v6 }
 0x49f   : > { %v5352_v26 = vadd.f32 %v5351_v37, %v5350_v46  ;;  %v5618_v18 = vadd.f32 %v5617_v24, %v5616_v5 }
 0x4a0   : > { %v5646_v19 = vsel %vm5645_vm2, %v5629_v17, %v5628_v10 }
 0x4a1   : > { %v5648_v22 = vsel %vm5647_vm3, %v5630_v61, %v5646_v19  ;;  %v5353_v41 = vrot.slane %v5352_v26, 1  ;;  %v5619_v57 = vrot.slane %v5618_v18, 1 }
 0x4a2   : > { %v5650_v13 = vsel %vm5649_vm4, %v5631_v43, %v5648_v22 }
 0x4a3   : > { %v5354_v23 = vadd.f32 %v5353_v41, %v5352_v26  ;;  %v5652_v7 = vsel %vm5651_vm5, %v5632_v20, %v5650_v13  ;;  %v5620_v27 = vadd.f32 %v5619_v57, %v5618_v18 }
 0x4a5   : > { %v5633_v48 = vmul.f32 %v5627_v4, %v5354_v23  ;;  %v5635_v38 = vmul.f32 %v5627_v4, %v5620_v27 }
 0x4a6   : > { %5665 = sbr.rel (%p7731_p4) target bundleno = 6014 (0x177e), region = 40 }
 0x4a7   : > { %v5654_v31 = vsel %vm5653_vm6, %v5633_v48, %v5652_v7 }
 0x4a8   : > { %v5656_v47 = vsel %vm5655_vm7, %v5634_v28, %v5654_v31 }
 0x4a9   : > { %v5658_v29 = vsel %vm5657_vm8, %v5635_v38, %v5656_v47 }
 0x4aa   : > { %5661 = vst.msk [vmem:[%s5660_s19] sm:$0xff] %vm1987_vm0, %v5658_v29  ;;  %s8163_s19 = smov (!%p7731_p4), 32  }
 0x4ab   : > { %v5669_v30 = vld [vmem:[%s10200_s2 + $0x18] sm:$0xff]  ;;  %v5668_v50 = vld [vmem:[%s10200_s2 + $0x10] sm:$0xff]  ;;  %v5667_v53 = vld [vmem:[%s10200_s2 + $0x8] sm:$0xff] }
 0x4ac   : > { %v9897_v52 = vld [vmem:[%s10200_s2 + $0x38] sm:$0xff]  ;;  %5698 = vmatpush.msra.mxu0 %v5669_v30  ;;  %v9903_v49 = vld [vmem:[%s10200_s2 + $0x30] sm:$0xff]  ;;  %v9911_v62 = vld [vmem:[%s10200_s2 + $0x28] sm:$0xff] }
 0x4ad   : > { %5724 = vmatpush.msra.mxu1 %v9897_v52  ;;  %6001 = vmatpush.msra.mxu2 %v9897_v52  ;;  %v5666_v54 = vld [vmem:[%s10200_s2] sm:$0xff] }
 0x4ae   : > { %6067 = vmatpush.msra.mxu3 %v9897_v52  ;;  %5699 = vmatpush.msra.mxu0 %v5668_v50  ;;  %v9922_v55 = vld [vmem:[%s10200_s2 + $0x20] sm:$0xff] }
 0x4af   : > { %5725 = vmatpush.msra.mxu1 %v9903_v49  ;;  %6002 = vmatpush.msra.mxu2 %v9903_v49  ;;  %v5675_v34 = vld [vmem:[%s10199_s1 + $0x21] sm:$0x3]  ;;  %v9952_v35 = vld [vmem:[%s10200_s2 + $0x40] ss:$0 sm:$0xff]  ;;  %v5676_v32 = vld [vmem:[%s10199_s1 + $0x23] sm:$0x3] }
 0x4b0   : > { %6068 = vmatpush.msra.mxu3 %v9903_v49  ;;  %5700 = vmatpush.msra.mxu0 %v5667_v53 }
 0x4b1   : > { %5726 = vmatpush.msra.mxu1 %v9911_v62  ;;  %v5677_v56 = vld [vmem:[#allocation2] sm:$0xff]  ;;  %6003 = vmatpush.msra.mxu2 %v9911_v62 }
 0x4b2   : > { %6069 = vmatpush.msra.mxu3 %v9911_v62  ;;  %5701 = vmatpush.msra.mxu0 %v5666_v54 }
 0x4b3   : > { %5727 = vmatpush.msra.mxu1 %v9922_v55  ;;  %7732 = vmatmul.msk.f32.vlgmr.msra.gmra.mxu0 %vm1987_vm0, %v5677_v56 }
 0x4b4   : > { %7734 = vmatmul.msk.f32.vlgmr.msra.gmra.mxu1 %vm1987_vm0, %v5675_v34  ;;  %6004 = vmatpush.msra.mxu2 %v9922_v55 }
 0x4b5   : > { %5791 = vmatpush.msrb.mxu1 %v9897_v52  ;;  %6070 = vmatpush.msra.mxu3 %v9922_v55 }
 0x4b6   : > { %6137 = vmatpush.msrb.mxu0 %v9897_v52 }
 0x4b7   : > { %5792 = vmatpush.msrb.mxu1 %v9903_v49 }
 0x4b8   : > { %6138 = vmatpush.msrb.mxu0 %v9903_v49 }
 0x4b9   : > { %5793 = vmatpush.msrb.mxu1 %v9911_v62 }
 0x4ba   : > { %6139 = vmatpush.msrb.mxu0 %v9911_v62 }
 0x4bb   : > { %5794 = vmatpush.msrb.mxu1 %v9922_v55 }
 0x4bc   : > { %6140 = vmatpush.msrb.mxu0 %v9922_v55 }
 0x4bd   : > { %5861 = vmatpush.msra.mxu1 %v9897_v52 }
 0x4bf   : > { %5862 = vmatpush.msra.mxu1 %v9903_v49 }
 0x4c1   : > { %5863 = vmatpush.msra.mxu1 %v9911_v62 }
 0x4c3   : > { %5864 = vmatpush.msra.mxu1 %v9922_v55 }
 0x530   : > { %v5703_v12 = vpop.f32.mrf.mxu0 }
 0x531   : > { %v5729_v58 = vpop.f32.mrf.mxu1  ;;  %v9955_v8 = vadd.f32 %v9952_v35, %v5703_v12 }
 0x533   : > { %v5732_v51 = vadd.f32 %v5729_v58, %v9955_v8 }
 0x535   : > { %8057 = vtanh.f32 %v5732_v51  ;;  %v7735_v9 = vmul.f32 -1.442695, %v5732_v51 }
 0x537   : > { %8059 = vpow2.f32 %v7735_v9 }
 0x53b   : > { %v8058_v59 = vpop.eup %8057 }
 0x53c   : > { %5759 = vrot.lane.b32.xlu0 %v8058_v59, %s8162_s14 }
 0x53d   : > { %v8060_v0 = vpop.eup %8059 }
 0x53e   : > { %v5736_v16 = vadd.f32 1.0, %v8060_v0 }
 0x540   : > { %8061 = vrcp.f32 %v5736_v16  ;;  %v5748_v21 = vand.u32 2147483648, %v5736_v16  ;;  %vm5742_vm10 = vweird.f32 %v5736_v16  ;;  %v5746_v25 = vand.u32 2147483647, %v5736_v16 }
 0x542   : > { %v5749_v2 = vor.u32 1.1754944e-38, %v5748_v21  ;;  %vm5747_vm12 = vcmp.eq.f32.partialorder %v5746_v25, 8.507059e+37 }
 0x544   : > { %5754 = vrot.lane.b32.xlu0 %v5676_v32, %s8163_s19 }
 0x546   : > { %v8062_v33 = vpop.eup %8061 }
 0x547   : > { %v5738_v60 = vmul.f32 %v8062_v33, %v5736_v16  ;;  %vm5743_vm9 = vweird.f32 %v8062_v33 }
 0x548   : > { %vm5744_vm11 = vmor %vm5742_vm10, %vm5743_vm9 }
 0x549   : > { %v5739_v36 = vsub.f32 1.0, %v5738_v60 }
 0x54b   : > { %v5740_v63 = vmul.f32 %v8062_v33, %v5739_v36 }
 0x54d   : > { %v5741_v44 = vadd.f32 %v8062_v33, %v5740_v63 }
 0x54f   : > { %v5745_v1 = vsel %vm5744_vm11, %v8062_v33, %v5741_v44 }
 0x550   : > { %v5750_v3 = vsel %vm5747_vm12, %v5749_v2, %v5745_v1 }
 0x5ae   : > { %v5760_v45 = vpop.permute.xlu0 %5759 }
 0x5af   : > { %v5762_v14 = vmul.f32 %v5760_v45, %v5750_v3 }
 0x5b1   : > { %5764 = vrot.lane.b32.xlu1 %v5762_v14, %s8163_s19 }
 0x5b6   : > { %v5755_v4 = vpop.permute.xlu0 %5754 }
 0x5b7   : > { %v5757_v15 = vmul.f32 %v5755_v4, %v5750_v3 }
 0x623   : > { %v5765_v46 = vpop.permute.xlu1 %5764 }
 0x624   : > { %v5767_v5 = vadd.f32 %v5765_v46, %v5757_v15 }
 0x626   : > { %8063 = vtanh.f32 %v5767_v5  ;;  %v5824_v28 = vrot.slane %v5767_v5, 6 }
 0x62c   : > { %v8064_v39 = vpop.eup %8063 }
 0x62d   : > { %5770 = vrot.lane.b32.xlu1 %v8064_v39, %s8162_s14 }
 0x69f   : > { %v5771_v6 = vpop.permute.xlu1 %5770 }
 0x6a0   : > { %v5773_v40 = vmul.f32 %v5771_v6, %v5750_v3 }
 0x6a2   : > { %5775 = vrot.lane.b32.xlu2 %v5773_v40, %s8163_s19 }
 0x6fc   : > { %v9966_v37 = vpop.permute.xlu2 %5775 }
 0x6fd   : > { %7736 = vmatmul.msk.f32.vlgmr.msrb.gmra.mxu1 %vm1987_vm0, %v9966_v37 }
 0x6fe   : > { %5931 = vmatpush.msrb.mxu1 %v9897_v52 }
 0x700   : > { %5932 = vmatpush.msrb.mxu1 %v9903_v49 }
 0x702   : > { %5933 = vmatpush.msrb.mxu1 %v9911_v62 }
 0x704   : > { %5934 = vmatpush.msrb.mxu1 %v9922_v55 }
 0x77a   : > { %v5796_v24 = vpop.f32.mrf.mxu1 }
 0x77b   : > { %v5800_v10 = vrot.slane %v5796_v24, 6 }
 0x77d   : > { %v5802_v11 = vadd.f32 %v5800_v10, %v9955_v8 }
 0x77f   : > { %8065 = vtanh.f32 %v5802_v11  ;;  %v7737_v61 = vmul.f32 -1.442695, %v5802_v11 }
 0x781   : > { %8067 = vpow2.f32 %v7737_v61 }
 0x785   : > { %v8066_v17 = vpop.eup %8065 }
 0x786   : > { %5828 = vrot.lane.b32.xlu2 %v8066_v17, %s8162_s14 }
 0x787   : > { %v8068_v26 = vpop.eup %8067 }
 0x788   : > { %v5806_v18 = vadd.f32 1.0, %v8068_v26 }
 0x78a   : > { %8069 = vrcp.f32 %v5806_v18  ;;  %v5818_v57 = vand.u32 2147483648, %v5806_v18  ;;  %vm5812_vm14 = vweird.f32 %v5806_v18  ;;  %v5816_v42 = vand.u32 2147483647, %v5806_v18 }
 0x78c   : > { %v5819_v23 = vor.u32 1.1754944e-38, %v5818_v57  ;;  %vm5817_vm1 = vcmp.eq.f32.partialorder %v5816_v42, 8.507059e+37 }
 0x790   : > { %v8070_v19 = vpop.eup %8069 }
 0x791   : > { %v5808_v43 = vmul.f32 %v8070_v19, %v5806_v18  ;;  %vm5813_vm13 = vweird.f32 %v8070_v19 }
 0x792   : > { %vm5814_vm15 = vmor %vm5812_vm14, %vm5813_vm13 }
 0x793   : > { %v5809_v20 = vsub.f32 1.0, %v5808_v43 }
 0x795   : > { %v5810_v22 = vmul.f32 %v8070_v19, %v5809_v20 }
 0x797   : > { %v5811_v41 = vadd.f32 %v8070_v19, %v5810_v22 }
 0x799   : > { %v5815_v13 = vsel %vm5814_vm15, %v8070_v19, %v5811_v41 }
 0x79a   : > { %v5820_v27 = vsel %vm5817_vm1, %v5819_v23, %v5815_v13 }
 0x79b   : > { %v5826_v31 = vmul.f32 %v5824_v28, %v5820_v27 }
 0x7e0   : > { %v5829_v7 = vpop.permute.xlu2 %5828 }
 0x7e1   : > { %v5831_v48 = vmul.f32 %v5829_v7, %v5820_v27 }
 0x7e3   : > { %5833 = vrot.lane.b32.xlu0 %v5831_v48, %s8163_s19 }
 0x855   : > { %v5834_v38 = vpop.permute.xlu0 %5833 }
 0x856   : > { %v5836_v47 = vadd.f32 %v5834_v38, %v5826_v31  ;;  %v5678_v38 = vld [vmem:[#allocation2 + $0x8] sm:$0xff] }
 0x857   : > { %7733 = vmatmul.msk.f32.gmra.mxu0 %vm1987_vm0, %v5678_v38 }
 0x858   : > { %8071 = vtanh.f32 %v5836_v47  ;;  %v5894_v21 = vrot.slane %v5836_v47, 6 }
 0x85e   : > { %v8072_v29 = vpop.eup %8071 }
 0x85f   : > { %5839 = vrot.lane.b32.xlu1 %v8072_v29, %s8162_s14 }
 0x8d1   : > { %v5840_v30 = vpop.permute.xlu1 %5839 }
 0x8d2   : > { %v9978_v50 = vmul.f32 %v5840_v30, %v5820_v27 }
 0x8d4   : > { %v5844_v53 = vrot.slane %v9978_v50, 2  ;;  %v5706_v29 = vpop.f32.mrf.mxu0  ;;  %v6298_v50 = vld [vmem:[%s10201_s3 + $0x68] sm:$0xff] }
 0x8d5   : > { %v10013_v30 = vadd.f32 %v9952_v35, %v5706_v29 }
 0x8d6   : > { %5845 = vrot.lane.b32.xlu2 %v5844_v53, %s8163_s19 }
 0x930   : > { %v5846_v54 = vpop.permute.xlu2 %5845 }
 0x931   : > { %7738 = vmatmul.msk.f32.vlgmr.msra.gmra.mxu1 %vm1987_vm0, %v5846_v54 }
 0x932   : > { %6207 = vmatpush.msra.mxu1 %v9897_v52 }
 0x934   : > { %6208 = vmatpush.msra.mxu1 %v9903_v49 }
 0x936   : > { %6209 = vmatpush.msra.mxu1 %v9911_v62 }
 0x938   : > { %6210 = vmatpush.msra.mxu1 %v9922_v55 }
 0x9ae   : > { %v5866_v56 = vpop.f32.mrf.mxu1 }
 0x9af   : > { %v5870_v34 = vrot.slane %v5866_v56, 4 }
 0x9b1   : > { %v5872_v12 = vadd.f32 %v5870_v34, %v9955_v8 }
 0x9b3   : > { %8073 = vtanh.f32 %v5872_v12  ;;  %v7739_v51 = vmul.f32 -1.442695, %v5872_v12 }
 0x9b5   : > { %8075 = vpow2.f32 %v7739_v51 }
 0x9b9   : > { %v8074_v58 = vpop.eup %8073 }
 0x9ba   : > { %5898 = vrot.lane.b32.xlu0 %v8074_v58, %s8162_s14 }
 0x9bb   : > { %v8076_v59 = vpop.eup %8075 }
 0x9bc   : > { %v5876_v32 = vadd.f32 1.0, %v8076_v59 }
 0x9be   : > { %8077 = vrcp.f32 %v5876_v32  ;;  %v5888_v55 = vand.u32 2147483648, %v5876_v32  ;;  %vm5882_vm3 = vweird.f32 %v5876_v32  ;;  %v5886_v16 = vand.u32 2147483647, %v5876_v32 }
 0x9c0   : > { %v5889_v60 = vor.u32 1.1754944e-38, %v5888_v55  ;;  %vm5887_vm5 = vcmp.eq.f32.partialorder %v5886_v16, 8.507059e+37 }
 0x9c4   : > { %v8078_v52 = vpop.eup %8077 }
 0x9c5   : > { %v5878_v9 = vmul.f32 %v8078_v52, %v5876_v32  ;;  %vm5883_vm2 = vweird.f32 %v8078_v52 }
 0x9c6   : > { %vm5884_vm4 = vmor %vm5882_vm3, %vm5883_vm2 }
 0x9c7   : > { %v5879_v49 = vsub.f32 1.0, %v5878_v9 }
 0x9c9   : > { %v5880_v0 = vmul.f32 %v8078_v52, %v5879_v49 }
 0x9cb   : > { %v5881_v62 = vadd.f32 %v8078_v52, %v5880_v0 }
 0x9cd   : > { %v5885_v33 = vsel %vm5884_vm4, %v8078_v52, %v5881_v62 }
 0x9ce   : > { %v5890_v63 = vsel %vm5887_vm5, %v5889_v60, %v5885_v33 }
 0x9cf   : > { %v5896_v25 = vmul.f32 %v5894_v21, %v5890_v63 }
 0xa2c   : > { %v5899_v36 = vpop.permute.xlu0 %5898 }
 0xa2d   : > { %v5901_v44 = vmul.f32 %v5899_v36, %v5890_v63 }
 0xa2f   : > { %5903 = vrot.lane.b32.xlu1 %v5901_v44, %s8163_s19 }
 0xaa1   : > { %v5904_v1 = vpop.permute.xlu1 %5903 }
 0xaa2   : > { %v5906_v2 = vadd.f32 %v5904_v1, %v5896_v25 }
 0xaa4   : > { %8079 = vtanh.f32 %v5906_v2  ;;  %v5964_v42 = vrot.slane %v5906_v2, 6 }
 0xaaa   : > { %v8080_v45 = vpop.eup %8079 }
 0xaab   : > { %5909 = vrot.lane.b32.xlu2 %v8080_v45, %s8162_s14 }
 0xb05   : > { %v5910_v3 = vpop.permute.xlu2 %5909 }
 0xb06   : > { %v9993_v14 = vmul.f32 %v5910_v3, %v5890_v63 }
 0xb08   : > { %v5914_v4 = vrot.slane %v9993_v14, 4  ;;  %v6287_v14 = vld [vmem:[%s10201_s3 + $0x10] sm:$0xff] }
 0xb0a   : > { %5915 = vrot.lane.b32.xlu0 %v5914_v4, %s8163_s19 }
 0xb7c   : > { %v5916_v15 = vpop.permute.xlu0 %5915 }
 0xb7d   : > { %7740 = vmatmul.msk.f32.vlgmr.msrb.gmra.mxu1 %vm1987_vm0, %v5916_v15 }
 0xbfa   : > { %v5936_v46 = vpop.f32.mrf.mxu1 }
 0xbfb   : > { %v5940_v5 = vrot.slane %v5936_v46, 2 }
 0xbfd   : > { %v5942_v39 = vadd.f32 %v5940_v5, %v9955_v8 }
 0xbff   : > { %8081 = vtanh.f32 %v5942_v39  ;;  %v7741_v40 = vmul.f32 -1.442695, %v5942_v39 }
 0xc01   : > { %8083 = vpow2.f32 %v7741_v40 }
 0xc05   : > { %v8082_v6 = vpop.eup %8081 }
 0xc06   : > { %5968 = vrot.lane.b32.xlu1 %v8082_v6, %s8162_s14 }
 0xc07   : > { %v8084_v24 = vpop.eup %8083 }
 0xc08   : > { %v5946_v10 = vadd.f32 1.0, %v8084_v24 }
 0xc0a   : > { %8085 = vrcp.f32 %v5946_v10  ;;  %v5958_v19 = vand.u32 2147483648, %v5946_v10  ;;  %vm5952_vm7 = vweird.f32 %v5946_v10  ;;  %v5956_v43 = vand.u32 2147483647, %v5946_v10 }
 0xc0c   : > { %v5959_v20 = vor.u32 1.1754944e-38, %v5958_v19  ;;  %vm5957_vm9 = vcmp.eq.f32.partialorder %v5956_v43, 8.507059e+37 }
 0xc10   : > { %v8086_v11 = vpop.eup %8085 }
 0xc11   : > { %v5948_v17 = vmul.f32 %v8086_v11, %v5946_v10  ;;  %vm5953_vm6 = vweird.f32 %v8086_v11 }
 0xc12   : > { %vm5954_vm8 = vmor %vm5952_vm7, %vm5953_vm6 }
 0xc13   : > { %v5949_v61 = vsub.f32 1.0, %v5948_v17 }
 0xc15   : > { %v5950_v26 = vmul.f32 %v8086_v11, %v5949_v61 }
 0xc17   : > { %v5951_v18 = vadd.f32 %v8086_v11, %v5950_v26 }
 0xc19   : > { %v5955_v8 = vsel %vm5954_vm8, %v8086_v11, %v5951_v18 }
 0xc1a   : > { %v5960_v41 = vsel %vm5957_vm9, %v5959_v20, %v5955_v8 }
 0xc1b   : > { %v5966_v13 = vmul.f32 %v5964_v42, %v5960_v41 }
 0xc78   : > { %v5969_v22 = vpop.permute.xlu1 %5968 }
 0xc79   : > { %v5971_v57 = vmul.f32 %v5969_v22, %v5960_v41 }
 0xc7b   : > { %5973 = vrot.lane.b32.xlu2 %v5971_v57, %s8163_s19 }
 0xcd5   : > { %v5974_v23 = vpop.permute.xlu2 %5973 }
 0xcd6   : > { %v5976_v7 = vadd.f32 %v5974_v23, %v5966_v13 }
 0xcd8   : > { %8087 = vtanh.f32 %v5976_v7  ;;  %v6031_v36 = vrot.slane %v5976_v7, 6 }
 0xcde   : > { %v8088_v27 = vpop.eup %8087 }
 0xcdf   : > { %5979 = vrot.lane.b32.xlu0 %v8088_v27, %s8162_s14 }
 0xd51   : > { %v5980_v48 = vpop.permute.xlu0 %5979 }
 0xd52   : > { %v10004_v28 = vmul.f32 %v5980_v48, %v5960_v41 }
 0xd54   : > { %v5984_v31 = vrot.slane %v10004_v28, 6  ;;  %v6325_v28 = vld [vmem:[%s10201_s3 + $0x140] sm:$0xff] }
 0xd55   : > { %6380 = vmatpush.msra.mxu0 %v6325_v28 }
 0xd56   : > { %5985 = vrot.lane.b32.xlu1 %v5984_v31, %s8163_s19 }
 0xdc8   : > { %v5986_v47 = vpop.permute.xlu1 %5985 }
 0xdc9   : > { %7742 = vmatmul.msk.f32.vlgmr.msra.gmra.mxu2 %vm1987_vm0, %v5986_v47 }
 0xe4c   : > { %v6006_v54 = vpop.f32.mrf.mxu2 }
 0xe4d   : > { %v6009_v56 = vadd.f32 %v6006_v54, %v10013_v30 }
 0xe4f   : > { %8089 = vtanh.f32 %v6009_v56  ;;  %v7743_v12 = vmul.f32 -1.442695, %v6009_v56 }
 0xe51   : > { %8091 = vpow2.f32 %v7743_v12 }
 0xe55   : > { %v8090_v34 = vpop.eup %8089 }
 0xe56   : > { %6035 = vrot.lane.b32.xlu2 %v8090_v34, %s8162_s14 }
 0xe57   : > { %v8092_v58 = vpop.eup %8091 }
 0xe58   : > { %v6013_v51 = vadd.f32 1.0, %v8092_v58 }
 0xe5a   : > { %8093 = vrcp.f32 %v6013_v51  ;;  %v6025_v35 = vand.u32 2147483648, %v6013_v51  ;;  %vm6019_vm11 = vweird.f32 %v6013_v51  ;;  %v6023_v0 = vand.u32 2147483647, %v6013_v51 }
 0xe5c   : > { %v6026_v55 = vor.u32 1.1754944e-38, %v6025_v35  ;;  %vm6024_vm13 = vcmp.eq.f32.partialorder %v6023_v0, 8.507059e+37 }
 0xe60   : > { %v8094_v59 = vpop.eup %8093 }
 0xe61   : > { %v6015_v32 = vmul.f32 %v8094_v59, %v6013_v51  ;;  %vm6020_vm10 = vweird.f32 %v8094_v59 }
 0xe62   : > { %vm6021_vm12 = vmor %vm6019_vm11, %vm6020_vm10  ;;  %vm6278_vm11 = vcmask 523264  }
 0xe63   : > { %v6016_v52 = vsub.f32 1.0, %v6015_v32 }
 0xe65   : > { %v6017_v9 = vmul.f32 %v8094_v59, %v6016_v52 }
 0xe67   : > { %v6018_v49 = vadd.f32 %v8094_v59, %v6017_v9 }
 0xe69   : > { %v6022_v62 = vsel %vm6021_vm12, %v8094_v59, %v6018_v49  ;;  %vm6280_vm12 = vcmask 785408  }
 0xe6a   : > { %v6027_v33 = vsel %vm6024_vm13, %v6026_v55, %v6022_v62 }
 0xe6b   : > { %v6033_v63 = vmul.f32 %v6031_v36, %v6027_v33 }
 0xeb0   : > { %v6036_v16 = vpop.permute.xlu2 %6035 }
 0xeb1   : > { %v6038_v60 = vmul.f32 %v6036_v16, %v6027_v33 }
 0xeb3   : > { %6040 = vrot.lane.b32.xlu0 %v6038_v60, %s8163_s19 }
 0xf25   : > { %v6041_v44 = vpop.permute.xlu0 %6040 }
 0xf26   : > { %v6043_v21 = vadd.f32 %v6041_v44, %v6033_v63 }
 0xf28   : > { %8095 = vtanh.f32 %v6043_v21  ;;  %v6100_v41 = vrot.slane %v6043_v21, 6 }
 0xf2e   : > { %v8096_v25 = vpop.eup %8095 }
 0xf2f   : > { %6046 = vrot.lane.b32.xlu1 %v8096_v25, %s8162_s14 }
 0xfa1   : > { %v6047_v1 = vpop.permute.xlu1 %6046 }
 0xfa2   : > { %v6049_v2 = vmul.f32 %v6047_v1, %v6027_v33 }
 0xfa4   : > { %6051 = vrot.lane.b32.xlu2 %v6049_v2, %s8163_s19 }
 0xffe   : > { %v10020_v45 = vpop.permute.xlu2 %6051 }
 0xfff   : > { %7744 = vmatmul.msk.f32.vlgmr.msra.gmra.mxu3 %vm1987_vm0, %v10020_v45 }
0x1082   : > { %v6072_v3 = vpop.f32.mrf.mxu3 }
0x1083   : > { %v6076_v15 = vrot.slane %v6072_v3, 6 }
0x1085   : > { %v6078_v46 = vadd.f32 %v6076_v15, %v10013_v30 }
0x1087   : > { %8097 = vtanh.f32 %v6078_v46  ;;  %v7745_v39 = vmul.f32 -1.442695, %v6078_v46 }
0x1089   : > { %8099 = vpow2.f32 %v7745_v39 }
0x108d   : > { %v8098_v5 = vpop.eup %8097 }
0x108e   : > { %6104 = vrot.lane.b32.xlu0 %v8098_v5, %s8162_s14 }
0x108f   : > { %v8100_v6 = vpop.eup %8099 }
0x1090   : > { %v6082_v40 = vadd.f32 1.0, %v8100_v6 }
0x1092   : > { %8101 = vrcp.f32 %v6082_v40  ;;  %v6094_v26 = vand.u32 2147483648, %v6082_v40  ;;  %vm6088_vm15 = vweird.f32 %v6082_v40  ;;  %v6092_v18 = vand.u32 2147483647, %v6082_v40 }
0x1094   : > { %v6095_v43 = vor.u32 1.1754944e-38, %v6094_v26  ;;  %vm6093_vm2 = vcmp.eq.f32.partialorder %v6092_v18, 8.507059e+37  ;;  %v6296_v18 = vld [vmem:[%s10201_s3 + $0x58] sm:$0xff] }
0x1098   : > { %v8102_v24 = vpop.eup %8101 }
0x1099   : > { %v6084_v10 = vmul.f32 %v8102_v24, %v6082_v40  ;;  %vm6089_vm14 = vweird.f32 %v8102_v24 }
0x109a   : > { %vm6090_vm1 = vmor %vm6088_vm15, %vm6089_vm14 }
0x109b   : > { %v6085_v11 = vsub.f32 1.0, %v6084_v10 }
0x109d   : > { %v6086_v17 = vmul.f32 %v8102_v24, %v6085_v11 }
0x109f   : > { %v6087_v61 = vadd.f32 %v8102_v24, %v6086_v17  ;;  %v6300_v17 = vld [vmem:[%s10201_s3 + $0x78] sm:$0xff] }
0x10a0   : > { %6328 = vmatpush.msrb.mxu2 %v6300_v17  ;;  %v6321_v17 = vld [vmem:[%s10201_s3 + $0x120] sm:$0xff] }
0x10a1   : > { %v6091_v19 = vsel %vm6090_vm1, %v8102_v24, %v6087_v61 }
0x10a2   : > { %v6096_v20 = vsel %vm6093_vm2, %v6095_v43, %v6091_v19  ;;  %v6295_v19 = vld [vmem:[%s10201_s3 + $0x50] sm:$0xff] }
0x10a3   : > { %v6102_v57 = vmul.f32 %v6100_v41, %v6096_v20  ;;  %v6292_v41 = vld [vmem:[%s10201_s3 + $0x38] sm:$0xff] }
0x1100   : > { %v6105_v8 = vpop.permute.xlu0 %6104 }
0x1101   : > { %v6107_v22 = vmul.f32 %v6105_v8, %v6096_v20  ;;  %v6294_v8 = vld [vmem:[%s10201_s3 + $0x48] sm:$0xff] }
0x1103   : > { %6109 = vrot.lane.b32.xlu1 %v6107_v22, %s8163_s19 }
0x1175   : > { %v6110_v42 = vpop.permute.xlu1 %6109 }
0x1176   : > { %v6112_v13 = vadd.f32 %v6110_v42, %v6102_v57 }
0x1178   : > { %8103 = vtanh.f32 %v6112_v13  ;;  %v6170_v60 = vrot.slane %v6112_v13, 6  ;;  %v6291_v13 = vld [vmem:[%s10201_s3 + $0x30] sm:$0xff] }
0x117e   : > { %v8104_v23 = vpop.eup %8103 }
0x117f   : > { %6115 = vrot.lane.b32.xlu2 %v8104_v23, %s8162_s14 }
0x11d9   : > { %v6116_v7 = vpop.permute.xlu2 %6115 }
0x11da   : > { %v6118_v27 = vmul.f32 %v6116_v7, %v6096_v20  ;;  %v6293_v20 = vld [vmem:[%s10201_s3 + $0x40] sm:$0xff] }
0x11dc   : > { %v6120_v48 = vrot.slane %v6118_v27, 2 }
0x11de   : > { %6121 = vrot.lane.b32.xlu0 %v6120_v48, %s8163_s19  ;;  %v8044_v6 = vpack.i.bf16 %v6120_v48, %v5844_v53  ;;  %v6297_v53 = vld [vmem:[%s10201_s3 + $0x60] sm:$0xff] }
0x1250   : > { %v6122_v38 = vpop.permute.xlu0 %6121 }
0x1251   : > { %7746 = vmatmul.msk.f32.vlgmr.msrb.gmra.mxu0 %vm1987_vm0, %v6122_v38 }
0x12ce   : > { %v6142_v47 = vpop.f32.mrf.mxu0 }
0x12cf   : > { %v6146_v29 = vrot.slane %v6142_v47, 4 }
0x12d1   : > { %v6148_v54 = vadd.f32 %v6146_v29, %v10013_v30  ;;  %v6290_v29 = vld [vmem:[%s10201_s3 + $0x28] sm:$0xff] }
0x12d3   : > { %8105 = vtanh.f32 %v6148_v54  ;;  %v7747_v34 = vmul.f32 -1.442695, %v6148_v54  ;;  %v6289_v54 = vld [vmem:[%s10201_s3 + $0x20] sm:$0xff] }
0x12d5   : > { %8107 = vpow2.f32 %v7747_v34  ;;  %v6285_v34 = vld [vmem:[%s10201_s3] sm:$0xff] }
0x12d9   : > { %v8106_v56 = vpop.eup %8105 }
0x12da   : > { %6174 = vrot.lane.b32.xlu1 %v8106_v56, %s8162_s14  ;;  %v6288_v56 = vld [vmem:[%s10201_s3 + $0x18] sm:$0xff] }
0x12db   : > { %v8108_v12 = vpop.eup %8107 }
0x12dc   : > { %v6152_v58 = vadd.f32 1.0, %v8108_v12  ;;  %v6316_v12 = vld [vmem:[%s10201_s3 + $0xf8] sm:$0xff] }
0x12dd   : > { %6348 = vmatpush.msrb.mxu3 %v6316_v12 }
0x12de   : > { %8109 = vrcp.f32 %v6152_v58  ;;  %v6164_v49 = vand.u32 2147483648, %v6152_v58  ;;  %vm6158_vm4 = vweird.f32 %v6152_v58  ;;  %v6162_v35 = vand.u32 2147483647, %v6152_v58 }
0x12e0   : > { %v6165_v62 = vor.u32 1.1754944e-38, %v6164_v49  ;;  %vm6163_vm6 = vcmp.eq.f32.partialorder %v6162_v35, 8.507059e+37  ;;  %v6309_v49 = vld [vmem:[%s10201_s3 + $0xc0] sm:$0xff]  ;;  %v6308_v35 = vld [vmem:[%s10201_s3 + $0xb8] sm:$0xff] }
0x12e4   : > { %v8110_v51 = vpop.eup %8109 }
0x12e5   : > { %v6154_v59 = vmul.f32 %v8110_v51, %v6152_v58  ;;  %vm6159_vm3 = vweird.f32 %v8110_v51  ;;  %v6315_v58 = vld [vmem:[%s10201_s3 + $0xf0] sm:$0xff] }
0x12e6   : > { %vm6160_vm5 = vmor %vm6158_vm4, %vm6159_vm3  ;;  %6349 = vmatpush.msrb.mxu3 %v6315_v58 }
0x12e7   : > { %v6155_v32 = vsub.f32 1.0, %v6154_v59  ;;  %v6313_v59 = vld [vmem:[%s10201_s3 + $0xe0] sm:$0xff] }
0x12e9   : > { %v6156_v52 = vmul.f32 %v8110_v51, %v6155_v32  ;;  %v6312_v32 = vld [vmem:[%s10201_s3 + $0xd8] sm:$0xff] }
0x12eb   : > { %v6157_v9 = vadd.f32 %v8110_v51, %v6156_v52  ;;  %v6311_v52 = vld [vmem:[%s10201_s3 + $0xd0] sm:$0xff] }
0x12ed   : > { %v6161_v0 = vsel %vm6160_vm5, %v8110_v51, %v6157_v9  ;;  %v6314_v51 = vld [vmem:[%s10201_s3 + $0xe8] sm:$0xff] }
0x12ee   : > { %v6166_v16 = vsel %vm6163_vm6, %v6165_v62, %v6161_v0  ;;  %6350 = vmatpush.msrb.mxu3 %v6314_v51  ;;  %v6310_v9 = vld [vmem:[%s10201_s3 + $0xc8] sm:$0xff]  ;;  %v6307_v62 = vld [vmem:[%s10201_s3 + $0xb0] sm:$0xff] }
0x12ef   : > { %v6172_v36 = vmul.f32 %v6170_v60, %v6166_v16 }
0x12f0   : > { %6351 = vmatpush.msrb.mxu3 %v6313_v59 }
0x12f2   : > { %6352 = vmatpush.msrb.mxu3 %v6312_v32 }
0x12f4   : > { %6353 = vmatpush.msrb.mxu3 %v6311_v52 }
0x12f6   : > { %6354 = vmatpush.msrb.mxu3 %v6310_v9 }
0x12f8   : > { %6355 = vmatpush.msrb.mxu3 %v6309_v49 }
0x12fa   : > { %6356 = vmatpush.msrb.mxu3 %v6308_v35 }
0x12fc   : > { %6357 = vmatpush.msrb.mxu3 %v6307_v62 }
0x134c   : > { %v6175_v55 = vpop.permute.xlu1 %6174 }
0x134d   : > { %v6177_v33 = vmul.f32 %v6175_v55, %v6166_v16 }
0x134f   : > { %6179 = vrot.lane.b32.xlu2 %v6177_v33, %s8163_s19 }
0x13a9   : > { %v6180_v63 = vpop.permute.xlu2 %6179 }
0x13aa   : > { %v10033_v44 = vadd.f32 %v6180_v63, %v6172_v36  ;;  %v6305_v36 = vld [vmem:[%s10201_s3 + $0xa0] sm:$0xff] }
0x13ac   : > { %8111 = vtanh.f32 %v10033_v44  ;;  %v6240_v0 = vrot.slane %v10033_v44, 6  ;;  %v6304_v44 = vld [vmem:[%s10201_s3 + $0x98] sm:$0xff] }
0x13b2   : > { %v8112_v21 = vpop.eup %8111 }
0x13b3   : > { %6185 = vrot.lane.b32.xlu0 %v8112_v21, %s8162_s14 }
0x1425   : > { %v6186_v25 = vpop.permute.xlu0 %6185 }
0x1426   : > { %v6188_v1 = vmul.f32 %v6186_v25, %v6166_v16  ;;  %v6306_v16 = vld [vmem:[%s10201_s3 + $0xa8] sm:$0xff] }
0x1427   : > { %6358 = vmatpush.msrb.mxu3 %v6306_v16 }
0x1428   : > { %v6190_v2 = vrot.slane %v6188_v1, 4 }
0x1429   : > { %6359 = vmatpush.msrb.mxu3 %v6305_v36 }
0x142a   : > { %6191 = vrot.lane.b32.xlu1 %v6190_v2, %s8163_s19  ;;  %v8049_v47 = vpack.i.bf16 %v6190_v2, %v5914_v4  ;;  %v6286_v4 = vld [vmem:[%s10201_s3 + $0x8] sm:$0xff] }
0x142b   : > { %6360 = vmatpush.msrb.mxu3 %v6304_v44 }
0x149c   : > { %v6192_v3 = vpop.permute.xlu1 %6191 }
0x149d   : > { %7748 = vmatmul.msk.f32.vlgmr.msra.gmra.mxu1 %vm1987_vm0, %v6192_v3 }
0x151a   : > { %v6212_v15 = vpop.f32.mrf.mxu1 }
0x151b   : > { %v6216_v46 = vrot.slane %v6212_v15, 2 }
0x151d   : > { %v6218_v5 = vadd.f32 %v6216_v46, %v10013_v30  ;;  %v6299_v30 = vld [vmem:[%s10201_s3 + $0x70] sm:$0xff] }
0x151e   : > { %6329 = vmatpush.msrb.mxu2 %v6299_v30  ;;  %v6320_v30 = vld [vmem:[%s10201_s3 + $0x118] sm:$0xff] }
0x151f   : > { %8113 = vtanh.f32 %v6218_v5  ;;  %v7749_v40 = vmul.f32 -1.442695, %v6218_v5 }
0x1520   : > { %6330 = vmatpush.msrb.mxu2 %v6298_v50 }
0x1521   : > { %8115 = vpow2.f32 %v7749_v40 }
0x1522   : > { %6331 = vmatpush.msrb.mxu2 %v6297_v53 }
0x1524   : > { %6332 = vmatpush.msrb.mxu2 %v6296_v18  ;;  %v6319_v18 = vld [vmem:[%s10201_s3 + $0x110] sm:$0xff] }
0x1525   : > { %v8114_v39 = vpop.eup %8113 }
0x1526   : > { %6244 = vrot.lane.b32.xlu2 %v8114_v39, %s8162_s14  ;;  %6333 = vmatpush.msrb.mxu2 %v6295_v19  ;;  %v6318_v19 = vld [vmem:[%s10201_s3 + $0x108] sm:$0xff] }
0x1527   : > { %v8116_v24 = vpop.eup %8115 }
0x1528   : > { %v6222_v10 = vadd.f32 1.0, %v8116_v24  ;;  %6334 = vmatpush.msrb.mxu2 %v6294_v8  ;;  %v6303_v24 = vld [vmem:[%s10201_s3 + $0x90] sm:$0xff] }
0x1529   : > { %6361 = vmatpush.msrb.mxu3 %v6303_v24 }
0x152a   : > { %8117 = vrcp.f32 %v6222_v10  ;;  %v6234_v57 = vand.u32 2147483648, %v6222_v10  ;;  %6335 = vmatpush.msrb.mxu2 %v6293_v20  ;;  %vm6228_vm8 = vweird.f32 %v6222_v10  ;;  %v6232_v42 = vand.u32 2147483647, %v6222_v10 }
0x152c   : > { %6336 = vmatpush.msrb.mxu2 %v6292_v41  ;;  %v6235_v7 = vor.u32 1.1754944e-38, %v6234_v57  ;;  %vm6233_vm10 = vcmp.eq.f32.partialorder %v6232_v42, 8.507059e+37  ;;  %v8056_v57 = vld [vmem:[%s10201_s3 + $0x148] ss:$0 sm:$0xff] }
0x152e   : > { %8045 = vrot.lane.b32.xlu2 %v8044_v6, %s8162_s14  ;;  %6337 = vmatpush.msrb.mxu2 %v6291_v13 }
0x1530   : > { %v8118_v11 = vpop.eup %8117  ;;  %6338 = vmatpush.msrb.mxu2 %v6290_v29 }
0x1531   : > { %v6224_v61 = vmul.f32 %v8118_v11, %v6222_v10  ;;  %vm6229_vm7 = vweird.f32 %v8118_v11  ;;  %v6323_v10 = vld [vmem:[%s10201_s3 + $0x130] sm:$0xff] }
0x1532   : > { %vm6230_vm9 = vmor %vm6228_vm8, %vm6229_vm7  ;;  %6339 = vmatpush.msrb.mxu2 %v6289_v54 }
0x1533   : > { %v6225_v26 = vsub.f32 1.0, %v6224_v61 }
0x1534   : > { %6340 = vmatpush.msrb.mxu2 %v6288_v56 }
0x1535   : > { %v6226_v43 = vmul.f32 %v8118_v11, %v6225_v26 }
0x1536   : > { %6341 = vmatpush.msrb.mxu2 %v6287_v14 }
0x1537   : > { %v6227_v22 = vadd.f32 %v8118_v11, %v6226_v43  ;;  %v8055_v43 = vld [vmem:[%s10201_s3 + $0x100] ss:$0 sm:$0xff] }
0x1538   : > { %6342 = vmatpush.msrb.mxu2 %v6286_v4 }
0x1539   : > { %v6231_v23 = vsel %vm6230_vm9, %v8118_v11, %v6227_v22  ;;  %v6322_v11 = vld [vmem:[%s10201_s3 + $0x128] sm:$0xff] }
0x153a   : > { %v10074_v48 = vsel %vm6233_vm10, %v6235_v7, %v6231_v23  ;;  %6343 = vmatpush.msrb.mxu2 %v6285_v34 }
0x153b   : > { %v6242_v55 = vmul.f32 %v6240_v0, %v10074_v48 }
0x1580   : > { %v6245_v27 = vpop.permute.xlu2 %6244 }
0x1581   : > { %v6247_v38 = vmul.f32 %v6245_v27, %v10074_v48 }
0x1583   : > { %6249 = vrot.lane.b32.xlu0 %v6247_v38, %s8163_s19 }
0x1588   : > { %v8046_v63 = vpop.permute.xlu2 %8045 }
0x1589   : > { %v8048_v21 = vunpack.i.h.bf16 %v8046_v63  ;;  %v8047_v25 = vunpack.i.l.bf16 %v8046_v63 }
0x158b   : > { %8050 = vrot.lane.b32.xlu0 %v8049_v47, %s8164_s17  ;;  %v6282_v46 = vsel %vm1987_vm0, %v10020_v45, %v8048_v21  ;;  %v6277_v5 = vsel %vm1987_vm0, %v9966_v37, %v8047_v25  ;;  %v6302_v37 = vld [vmem:[%s10201_s3 + $0x88] sm:$0xff]  ;;  %v6301_v45 = vld [vmem:[%s10201_s3 + $0x80] sm:$0xff]  ;;  %vm6392_vm0 = vcmask 58368  }
0x158c   : > { %6362 = vmatpush.msrb.mxu3 %v6302_v37 }
0x158e   : > { %6363 = vmatpush.msrb.mxu3 %v6301_v45 }
0x15f5   : > { %v6250_v33 = vpop.permute.xlu0 %6249 }
0x15f6   : > { %v6252_v60 = vadd.f32 %v6250_v33, %v6242_v55 }
0x15f8   : > { %8119 = vtanh.f32 %v6252_v60 }
0x15fd   : > { %v8051_v1 = vpop.permute.xlu0 %8050 }
0x15fe   : > { %v8120_v2 = vpop.eup %8119  ;;  %v8053_v3 = vunpack.i.h.bf16 %v8051_v1  ;;  %v8052_v15 = vunpack.i.l.bf16 %v8051_v1 }
0x15ff   : > { %6255 = vrot.lane.b32.xlu1 %v8120_v2, %s8162_s14 }
0x1600   : > { %v6279_v39 = vsel %vm6278_vm11, %v6277_v5, %v8052_v15  ;;  %v6283_v6 = vsel %vm6278_vm11, %v6282_v46, %v8053_v3 }
0x1601   : > { %v6281_v40 = vsel %vm6280_vm12, %v6279_v39, %v5984_v31  ;;  %v6324_v31 = vld [vmem:[%s10201_s3 + $0x138] sm:$0xff] }
0x1602   : > { %6344 = vmatmul.f32.vlgmr.msrb.gmra.mxu2 %v6281_v40  ;;  %6381 = vmatpush.msra.mxu0 %v6324_v31 }
0x1604   : > { %6382 = vmatpush.msra.mxu0 %v6323_v10 }
0x1606   : > { %6383 = vmatpush.msra.mxu0 %v6322_v11 }
0x1608   : > { %6384 = vmatpush.msra.mxu0 %v6321_v17 }
0x160a   : > { %6385 = vmatpush.msra.mxu0 %v6320_v30 }
0x160c   : > { %6386 = vmatpush.msra.mxu0 %v6319_v18 }
0x160e   : > { %6387 = vmatpush.msra.mxu0 %v6318_v19 }
0x1671   : > { %v6256_v61 = vpop.permute.xlu1 %6255 }
0x1672   : > { %v6258_v50 = vmul.f32 %v6256_v61, %v10074_v48 }
0x1674   : > { %v6275_v53 = vrot.slane %v6258_v50, 6 }
0x1676   : > { %v6284_v26 = vsel %vm6280_vm12, %v6283_v6, %v6275_v53 }
0x1677   : > { %6364 = vmatmul.f32.vlgmr.msrb.gmra.mxu3 %v6284_v26 }
0x1685   : > { %v6345_v8 = vpop.f32.mrf.mxu2 }
0x1686   : > { %v6346_v20 = vadd.f32 %v8055_v43, %v6345_v8 }
0x16fa   : > { %v6365_v22 = vpop.f32.mrf.mxu3 }
0x16fb   : > { %v6366_v41 = vadd.f32 %v6365_v22, %v6346_v20 }
0x16fd   : > { %7750 = vmatmul.msk.f32.vlgmr.msra.gmra.mxu0 %vm6278_vm11, %v6366_v41 }
0x177a   : > { %v6389_v42 = vpop.f32.mrf.mxu0 }
0x177b   : > { %v6390_v13 = vadd.f32 %v8056_v57, %v6389_v42 }
0x177d   : > { %6393 = vst.msk [vmem:[#allocation3] sm:$0x3] %vm6392_vm0, %v6390_v13 }
0x177e PF: > { %p8021_p5 = scmp.eq.s32.totalorder %s8197_s16, 1  ;;  %s8165_s9 = smov [#allocation3]  }
0x177f   : > { %s6400_s10 = sshll.u32 %s8165_s9, 4  ;;  %s6402_s12 = sshll.u32 %s10202_s4, 4  ;;  %s6401_s10 = int_to_ptr.vmem [resolvable:$true] %s6400_s10  ;;  %s6403_s12 = int_to_ptr.hbm [resolvable:$true] %s6402_s12 }
0x1780   : > { %8018 = dma.vmem_to_hbm [thread:$0]  (%p8021_p5), %s6401_s10, 32, %s6403_s12, [#allocation4]  }
0x1781   : > { %8154 = dma.done.wait (%p8021_p5), [#allocation4], 32  }
0x1782   : > { %8156 = vsyncadd (%p8021_p5), [#allocation4], 4294967264 }
0x1783 PF: > { %s15_s15 = sadd.s32 1, %s8159_s15  }
0x1784   : > { %p12_p6 = scmp.ge.s32.totalorder %s15_s15, 4  }
0x1786   :  { %14 = sbr.rel (!%p12_p6) target bundleno = 1 (0x1), region = 68 }
0x178b   :  { %6416 = vsyncpa [#allocation4], 1 }
0x178c   :  { %6418 = vsyncpa [#allocation4 + $0x1], 1 }

</bundles_post_ra>
